<compile_context>
chip_gen: v5e
topology: v5e:2x2
jax: 0.10.0
libtpu: 0.0.40
codegen_flags: <defaults>
</compile_context>

<pallas_src>
import functools
import math

import jax
import jax.numpy as jnp
from jax.experimental import pallas as pl
from jax.experimental.pallas import tpu as pltpu


# ----------------------------------------------------------------------------
# Kernel 1: patch encoder projection  (MXU matmul + bias [+ relu])
#   stands in for fnet / cnet (8x spatial downsampling to odim / cdim channels)
#   Tiled over M; weights/bias stay resident; bf16 operands, f32 accumulation.
# ----------------------------------------------------------------------------
def _proj_kernel(x_ref, w_ref, b_ref, out_ref, *, apply_relu):
    acc = jnp.dot(x_ref[...], w_ref[...], preferred_element_type=jnp.float32)
    acc = acc + b_ref[...]
    if apply_relu:
        acc = jnp.maximum(acc, 0.0)
    out_ref[...] = acc


def patch_encoder(x_bf16, w_bf16, b_f32, apply_relu, tm=512):
    """x_bf16: (M, K) bf16 patch rows; w_bf16: (K, Nout) bf16; b_f32: (1, Nout)."""
    m, k = x_bf16.shape
    _, nout = w_bf16.shape
    tm = min(tm, m)                      # tm=512 (mult of 8) or full M
    grid_m = pl.cdiv(m, tm)
    return pl.pallas_call(
        functools.partial(_proj_kernel, apply_relu=apply_relu),
        out_shape=jax.ShapeDtypeStruct((m, nout), jnp.float32),
        grid=(grid_m,),
        in_specs=[
            pl.BlockSpec((tm, k), lambda i: (i, 0)),
            pl.BlockSpec((k, nout), lambda i: (0, 0)),    # resident weights
            pl.BlockSpec((1, nout), lambda i: (0, 0)),    # resident bias
        ],
        out_specs=pl.BlockSpec((tm, nout), lambda i: (i, 0)),
        compiler_params=pltpu.CompilerParams(dimension_semantics=("parallel",)),
    )(x_bf16, w_bf16, b_f32)


def fold_norm_into_proj(w, b):
    """Fold img_norm = 2*(x/255) - 1 into a linear projection:
       x_norm @ w + b == x_raw @ ((2/255)*w) + (b - ones@w)."""
    w_eff = (2.0 / 255.0) * w
    b_eff = b - jnp.sum(w, axis=0, keepdims=True)
    return w_eff.astype(jnp.bfloat16), b_eff.astype(jnp.float32)


# ----------------------------------------------------------------------------
# Kernel 2: all-pairs correlation  corr[n] = fmap1[n] fmap2[n]^T / sqrt(C)
#   Feature maps stay in (N, HW, C) layout (no host transposes); the MXU
#   contraction over C expresses the transpose.  Tiled over (N, HW, HW);
#   the 1/sqrt(C) scale is folded into the bf16 cast of fmap1 by the caller.
# ----------------------------------------------------------------------------
def _corr_kernel(f1_ref, f2_ref, out_ref):
    f1 = f1_ref[0]                        # (tm, C) bf16
    f2 = f2_ref[0]                        # (tn, C) bf16
    out_ref[0] = jax.lax.dot_general(
        f1, f2, dimension_numbers=(((1,), (1,)), ((), ())),
        preferred_element_type=jnp.float32)


def all_pairs_correlation(f1_b, f2_b, tm=512, tn=512):
    """f1_b, f2_b: (N, HW, C) bf16; f1_b already carries the 1/sqrt(C) scale."""
    n, hw, c = f1_b.shape
    # v6e can afford larger tiles (~1024); v7x (64 MiB VMEM) prefers <=512.
    tm = min(tm, hw)
    tn = min(tn, hw)
    grid = (n, pl.cdiv(hw, tm), pl.cdiv(hw, tn))
    return pl.pallas_call(
        _corr_kernel,
        out_shape=jax.ShapeDtypeStruct((n, hw, hw), jnp.float32),
        grid=grid,
        in_specs=[
            pl.BlockSpec((1, tm, c), lambda i, j, k: (i, j, 0)),
            pl.BlockSpec((1, tn, c), lambda i, j, k: (i, k, 0)),
        ],
        out_specs=pl.BlockSpec((1, tm, tn), lambda i, j, k: (i, j, k)),
        compiler_params=pltpu.CompilerParams(
            dimension_semantics=("parallel", "parallel", "parallel")),
    )(f1_b, f2_b)


# ----------------------------------------------------------------------------
# Kernel 3: _upsample_flow convex combination (lane-dense: spatial -> HW lanes)
#   softmax over the 9 mask logits + weighted sum of the 3x3 flow neighborhood
# ----------------------------------------------------------------------------
def _upsample_kernel(mask_ref, uf_ref, out_ref, *, logit_scale):
    m = mask_ref[0]                       # (9, 64, T) mask logits
    if logit_scale != 1.0:
        m = m * logit_scale               # fold the 0.25 mask pre-scale in-kernel
    uf = uf_ref[0]                        # (9, 2, T) unfolded 8*flow neighborhood
    mmax = jnp.max(m, axis=0, keepdims=True)
    e = jnp.exp(m - mmax)
    inv = pl.reciprocal(jnp.sum(e, axis=0, keepdims=True), approx=True)  # EUP slot
    wgt = e * inv                         # softmax over the 9 taps
    acc = jnp.zeros(out_ref.shape[1:], jnp.float32)     # (2, 64, T)
    for k in range(9):                    # static unroll
        acc = acc + wgt[k][None, :, :] * uf[k][:, None, :]
    out_ref[0] = acc


def upsample_flow(flow, mask, logit_scale=1.0, thw=1024):
    """Exact port of DEQFlowBase._upsample_flow: [N,2,H,W] -> [N,2,8H,8W].
       `mask` is the raw (N, 576, H, W) logits; softmax(logit_scale*mask) is
       computed inside the kernel."""
    n, _, h, w = flow.shape
    hw = h * w
    mask9 = mask.reshape(n, 9, 64, hw)                   # free reshape, lane-dense
    # glue: F.unfold(8*flow, [3,3], padding=1) -> 9 shifted copies (tiny tensor)
    # TODO(synk): the 9 taps could be generated in-kernel from one padded flow
    #             tile (pltpu.roll / static slices) to avoid this 9x duplication.
    fp = jnp.pad(8.0 * flow, ((0, 0), (0, 0), (1, 1), (1, 1)))
    uf = jnp.stack(
        [fp[:, :, ky:ky + h, kx:kx + w] for ky in range(3) for kx in range(3)],
        axis=1,
    ).reshape(n, 9, 2, hw)                               # (N, 9, 2, HW)
    thw_ = hw if hw <= thw else thw
    grid = (n, pl.cdiv(hw, thw_))
    out = pl.pallas_call(
        functools.partial(_upsample_kernel, logit_scale=logit_scale),
        out_shape=jax.ShapeDtypeStruct((n, 2, 64, hw), jnp.float32),
        grid=grid,
        in_specs=[
            pl.BlockSpec((1, 9, 64, thw_), lambda i, j: (i, 0, 0, j)),
            pl.BlockSpec((1, 9, 2, thw_), lambda i, j: (i, 0, 0, j)),
        ],
        out_specs=pl.BlockSpec((1, 2, 64, thw_), lambda i, j: (i, 0, 0, j)),
        compiler_params=pltpu.CompilerParams(
            dimension_semantics=("parallel", "parallel")),
    )(mask9, uf)
    # pixel shuffle: permute(0,1,4,2,5,3).reshape(N,2,8H,8W)
    # TODO(synk): could be folded into the kernel output layout ((2,H,8,W,8)
    #             slab) to save this host-side transpose of the largest tensor.
    out = out.reshape(n, 2, 8, 8, h, w)
    out = jnp.transpose(out, (0, 1, 4, 2, 5, 3))
    return out.reshape(n, 2, 8 * h, 8 * w)


# ----------------------------------------------------------------------------
# Plain-JAX glue mirroring the module
# ----------------------------------------------------------------------------
HDIM = 128   # default (non small/large/huge/gigantic) config
CDIM = 128
ODIM = 256
CORR_LEVELS = 4
CORR_RADIUS = 4


def coords_grid(n, h, w):
    ys, xs = jnp.meshgrid(jnp.arange(h, dtype=jnp.float32),
                          jnp.arange(w, dtype=jnp.float32), indexing="ij")
    coords = jnp.stack([xs, ys], axis=0)                 # channel0 = x, channel1 = y
    return jnp.broadcast_to(coords[None], (n, 2, h, w))


def patchify8(img):
    n, c, h, w = img.shape
    hc, wc = h // 8, w // 8
    x = img.reshape(n, c, hc, 8, wc, 8)
    x = jnp.transpose(x, (0, 2, 4, 1, 3, 5))             # (N, Hc, Wc, C, 8, 8)
    return x.reshape(n * hc * wc, c * 64), hc, wc


def build_corr_pyramid(corr, hc, wc, num_levels):
    n, hw, _ = corr.shape
    cur = corr.reshape(n * hw, 1, hc, wc)
    pyramid = [cur]
    h, w = hc, wc
    for _ in range(num_levels - 1):
        if h < 2 or w < 2:
            break  # TODO(synk): full-resolution inputs yield all 4 pyramid levels
        cur = cur.reshape(cur.shape[0], 1, h // 2, 2, w // 2, 2).mean(axis=(3, 5))
        h, w = h // 2, w // 2
        pyramid.append(cur)
    return pyramid


def init_params(key):
    k1, k2 = jax.random.split(key)
    pdim = 3 * 8 * 8
    return {
        "fnet_w": jax.random.normal(k1, (pdim, ODIM), jnp.float32) / math.sqrt(pdim),
        "fnet_b": jnp.zeros((1, ODIM), jnp.float32),
        "cnet_w": jax.random.normal(k2, (pdim, CDIM), jnp.float32) / math.sqrt(pdim),
        "cnet_b": jnp.zeros((1, CDIM), jnp.float32),
    }


def deqflow_base_forward(params, image1, image2, flow_init=None, up_mask=None):
    n = image1.shape[0]
    hc, wc = image1.shape[2] // 8, image1.shape[3] // 8
    hw = hc * wc

    # 1. image normalization is folded into the projection weights (no kernel)
    fw, fb = fold_norm_into_proj(params["fnet_w"], params["fnet_b"])
    cw, cb = fold_norm_into_proj(params["cnet_w"], params["cnet_b"])

    # 2. feature encoder: patchify both RAW images once and run a single tiled
    #    Pallas MXU projection over the concatenated batch (bf16 operands).
    imgs = jnp.concatenate([image1, image2], axis=0).astype(jnp.float32)
    p_all, _, _ = patchify8(imgs)
    p_all_b = p_all.astype(jnp.bfloat16)                 # (2*N*HW, 192)
    f_all = patch_encoder(p_all_b, fw, fb, apply_relu=False)   # (2*N*HW, ODIM) f32
    fmap1 = f_all[: n * hw].reshape(n, hw, ODIM)         # (N, HW, C), no NCHW trip
    fmap2 = f_all[n * hw:].reshape(n, hw, ODIM)

    # 3. CorrBlock: all-pairs correlation (tiled Pallas matmul, bf16 operands,
    #    1/sqrt(C) folded into the fmap1 cast) + avg-pool pyramid (glue)
    scale = 1.0 / math.sqrt(float(ODIM))
    f1_b = (fmap1 * scale).astype(jnp.bfloat16)
    f2_b = fmap2.astype(jnp.bfloat16)
    corr = all_pairs_correlation(f1_b, f2_b)
    corr_pyramid = build_corr_pyramid(corr, hc, wc, CORR_LEVELS)
    # TODO(synk): CorrBlock.__call__ bilinear radius-4 lookup needs the (undefined)
    #             update_block consumer; not reproduced here.

    # 4. context net + relu (relu fused into the Pallas projection kernel);
    #    reuses the image1 patch rows already materialized for fnet.
    p1_b = p_all_b[: n * hw]
    inp = patch_encoder(p1_b, cw, cb, apply_relu=True)   # (N*HW, CDIM)
    inp = inp.reshape(n, hc, wc, CDIM)                   # NHWC (no NCHW transpose)

    # 5. flow initialization
    coords0 = coords_grid(n, hc, wc)
    coords1 = coords_grid(n, hc, wc)
    if flow_init is not None:
        coords1 = coords1 + flow_init
    net = jnp.zeros((n, HDIM, hc, wc), jnp.float32)

    # 6. list2vec: z_star = cat([net.view(N,hdim,-1), coords1.view(N,2,-1)], dim=1)
    z_star = jnp.concatenate(
        [net.reshape(n, HDIM, -1), coords1.reshape(n, 2, -1)], axis=1)

    # 7. _deq_forward raises NotImplementedError in DEQFlowBase, so the faithful
    #    base-class forward ends here.  We additionally exercise the fully-specified
    #    _upsample_flow helper (Pallas) on flow = coords1 - coords0 with a synthetic
    #    mask standing in for update_block.mask(net); the 0.25 scale is folded
    #    into the kernel (logit_scale).
    flow_up = None
    if up_mask is not None:
        flow_up = upsample_flow(coords1 - coords0, up_mask, logit_scale=0.25)

    return {
        "fmap1": fmap1.reshape(n, hc, wc, ODIM),   # NHWC layout (no transpose)
        "fmap2": fmap2.reshape(n, hc, wc, ODIM),
        "corr_pyramid": corr_pyramid,
        "inp": inp,                                # NHWC layout
        "coords0": coords0,
        "coords1": coords1,
        "z_star": z_star,
        "flow_up": flow_up,
    }


# ----------------------------------------------------------------------------
if __name__ == "__main__":
    key = jax.random.PRNGKey(0)
    kp, k1, k2, k3, k4 = jax.random.split(key, 5)

    N, H_IMG, W_IMG = 2, 32, 32                          # /8 -> 4x4 feature maps
    image1 = jax.random.uniform(k1, (N, 3, H_IMG, W_IMG), jnp.float32, 0.0, 255.0)
    image2 = jax.random.uniform(k2, (N, 3, H_IMG, W_IMG), jnp.float32, 0.0, 255.0)
    flow_init = 0.5 * jax.random.normal(k3, (N, 2, H_IMG // 8, W_IMG // 8), jnp.float32)
    up_mask = jax.random.normal(k4, (N, 64 * 9, H_IMG // 8, W_IMG // 8), jnp.float32)

    params = init_params(kp)
    fwd = jax.jit(deqflow_base_forward)
    out = fwd(params, image1, image2, flow_init=flow_init, up_mask=up_mask)
    jax.tree_util.tree_map(jax.block_until_ready, out)

    assert out["z_star"].shape == (N, HDIM + 2, (H_IMG // 8) * (W_IMG // 8))
    assert out["flow_up"].shape == (N, 2, H_IMG, W_IMG)
    assert out["corr_pyramid"][0].shape[0] == N * (H_IMG // 8) * (W_IMG // 8)
    print("KERNEL_OK")
</pallas_src>

<mosaic_0001>
module attributes {stable_mosaic.version = 11 : i64} {
  func.func @_upsample_kernel(%arg0: i32, %arg1: i32, %arg2: memref<1x9x64x16xf32, #tpu.memory_space<vmem>>, %arg3: memref<1x9x2x16xf32, #tpu.memory_space<vmem>>, %arg4: memref<1x2x64x16xf32, #tpu.memory_space<vmem>>) attributes {dimension_semantics = [#tpu.dimension_semantics<parallel>, #tpu.dimension_semantics<parallel>], iteration_bounds = array<i64: 2, 1>, scalar_prefetch = 0 : i64, scratch_operands = 0 : i64, tpu.core_type = #tpu.core_type<tc>, window_params = [{transform_indices = @transform_0, window_bounds = array<i64: 1, 9, 64, 16>}, {transform_indices = @transform_1, window_bounds = array<i64: 1, 9, 2, 16>}, {transform_indices = @transform_2, window_bounds = array<i64: 1, 2, 64, 16>}]} {
    %c0 = arith.constant 0 : index
    %c0_0 = arith.constant 0 : index
    %c0_1 = arith.constant 0 : index
    %c0_2 = arith.constant 0 : index
    %0 = vector.load %arg2[%c0, %c0_0, %c0_1, %c0_2] : memref<1x9x64x16xf32, #tpu.memory_space<vmem>>, vector<1x9x64x16xf32>
    %1 = vector.shape_cast %0 : vector<1x9x64x16xf32> to vector<9x64x16xf32>
    %cst = arith.constant 2.500000e-01 : f32
    %2 = vector.broadcast %cst : f32 to vector<9x64x16xf32>
    %3 = arith.mulf %1, %2 : vector<9x64x16xf32>
    %c0_3 = arith.constant 0 : index
    %c0_4 = arith.constant 0 : index
    %c0_5 = arith.constant 0 : index
    %c0_6 = arith.constant 0 : index
    %4 = vector.load %arg3[%c0_3, %c0_4, %c0_5, %c0_6] : memref<1x9x2x16xf32, #tpu.memory_space<vmem>>, vector<1x9x2x16xf32>
    %5 = vector.shape_cast %4 : vector<1x9x2x16xf32> to vector<9x2x16xf32>
    %cst_7 = arith.constant dense<0xFF800000> : vector<64x16xf32>
    %6 = vector.multi_reduction <maximumf>, %3, %cst_7 [0] : vector<9x64x16xf32> to vector<64x16xf32>
    %7 = vector.shape_cast %6 : vector<64x16xf32> to vector<1x64x16xf32>
    %8 = vector.broadcast %7 : vector<1x64x16xf32> to vector<9x64x16xf32>
    %9 = arith.subf %3, %8 : vector<9x64x16xf32>
    %10 = math.exp %9 : vector<9x64x16xf32>
    %cst_8 = arith.constant dense<0.000000e+00> : vector<64x16xf32>
    %11 = vector.multi_reduction <add>, %10, %cst_8 [0] : vector<9x64x16xf32> to vector<64x16xf32>
    %12 = vector.shape_cast %11 : vector<64x16xf32> to vector<1x64x16xf32>
    %13 = tpu.reciprocal %12 {approx = true} : vector<1x64x16xf32> -> vector<1x64x16xf32>
    %14 = vector.broadcast %13 : vector<1x64x16xf32> to vector<9x64x16xf32>
    %15 = arith.mulf %10, %14 : vector<9x64x16xf32>
    %cst_9 = arith.constant 0.000000e+00 : f32
    %16 = vector.broadcast %cst_9 : f32 to vector<2x64x16xf32>
    %17 = vector.extract_strided_slice %15 {offsets = [0, 0, 0], sizes = [1, 64, 16], strides = [1, 1, 1]} : vector<9x64x16xf32> to vector<1x64x16xf32>
    %18 = vector.shape_cast %17 : vector<1x64x16xf32> to vector<64x16xf32>
    %19 = vector.shape_cast %18 : vector<64x16xf32> to vector<1x64x16xf32>
    %20 = vector.extract_strided_slice %5 {offsets = [0, 0, 0], sizes = [1, 2, 16], strides = [1, 1, 1]} : vector<9x2x16xf32> to vector<1x2x16xf32>
    %21 = vector.shape_cast %20 : vector<1x2x16xf32> to vector<2x16xf32>
    %22 = vector.shape_cast %21 : vector<2x16xf32> to vector<2x1x16xf32>
    %23 = vector.broadcast %19 : vector<1x64x16xf32> to vector<2x64x16xf32>
    %24 = vector.broadcast %22 : vector<2x1x16xf32> to vector<2x64x16xf32>
    %25 = arith.mulf %23, %24 : vector<2x64x16xf32>
    %26 = arith.addf %16, %25 : vector<2x64x16xf32>
    %27 = vector.extract_strided_slice %15 {offsets = [1, 0, 0], sizes = [1, 64, 16], strides = [1, 1, 1]} : vector<9x64x16xf32> to vector<1x64x16xf32>
    %28 = vector.shape_cast %27 : vector<1x64x16xf32> to vector<64x16xf32>
    %29 = vector.shape_cast %28 : vector<64x16xf32> to vector<1x64x16xf32>
    %30 = vector.extract_strided_slice %5 {offsets = [1, 0, 0], sizes = [1, 2, 16], strides = [1, 1, 1]} : vector<9x2x16xf32> to vector<1x2x16xf32>
    %31 = vector.shape_cast %30 : vector<1x2x16xf32> to vector<2x16xf32>
    %32 = vector.shape_cast %31 : vector<2x16xf32> to vector<2x1x16xf32>
    %33 = vector.broadcast %29 : vector<1x64x16xf32> to vector<2x64x16xf32>
    %34 = vector.broadcast %32 : vector<2x1x16xf32> to vector<2x64x16xf32>
    %35 = arith.mulf %33, %34 : vector<2x64x16xf32>
    %36 = arith.addf %26, %35 : vector<2x64x16xf32>
    %37 = vector.extract_strided_slice %15 {offsets = [2, 0, 0], sizes = [1, 64, 16], strides = [1, 1, 1]} : vector<9x64x16xf32> to vector<1x64x16xf32>
    %38 = vector.shape_cast %37 : vector<1x64x16xf32> to vector<64x16xf32>
    %39 = vector.shape_cast %38 : vector<64x16xf32> to vector<1x64x16xf32>
    %40 = vector.extract_strided_slice %5 {offsets = [2, 0, 0], sizes = [1, 2, 16], strides = [1, 1, 1]} : vector<9x2x16xf32> to vector<1x2x16xf32>
    %41 = vector.shape_cast %40 : vector<1x2x16xf32> to vector<2x16xf32>
    %42 = vector.shape_cast %41 : vector<2x16xf32> to vector<2x1x16xf32>
    %43 = vector.broadcast %39 : vector<1x64x16xf32> to vector<2x64x16xf32>
    %44 = vector.broadcast %42 : vector<2x1x16xf32> to vector<2x64x16xf32>
    %45 = arith.mulf %43, %44 : vector<2x64x16xf32>
    %46 = arith.addf %36, %45 : vector<2x64x16xf32>
    %47 = vector.extract_strided_slice %15 {offsets = [3, 0, 0], sizes = [1, 64, 16], strides = [1, 1, 1]} : vector<9x64x16xf32> to vector<1x64x16xf32>
    %48 = vector.shape_cast %47 : vector<1x64x16xf32> to vector<64x16xf32>
    %49 = vector.shape_cast %48 : vector<64x16xf32> to vector<1x64x16xf32>
    %50 = vector.extract_strided_slice %5 {offsets = [3, 0, 0], sizes = [1, 2, 16], strides = [1, 1, 1]} : vector<9x2x16xf32> to vector<1x2x16xf32>
    %51 = vector.shape_cast %50 : vector<1x2x16xf32> to vector<2x16xf32>
    %52 = vector.shape_cast %51 : vector<2x16xf32> to vector<2x1x16xf32>
    %53 = vector.broadcast %49 : vector<1x64x16xf32> to vector<2x64x16xf32>
    %54 = vector.broadcast %52 : vector<2x1x16xf32> to vector<2x64x16xf32>
    %55 = arith.mulf %53, %54 : vector<2x64x16xf32>
    %56 = arith.addf %46, %55 : vector<2x64x16xf32>
    %57 = vector.extract_strided_slice %15 {offsets = [4, 0, 0], sizes = [1, 64, 16], strides = [1, 1, 1]} : vector<9x64x16xf32> to vector<1x64x16xf32>
    %58 = vector.shape_cast %57 : vector<1x64x16xf32> to vector<64x16xf32>
    %59 = vector.shape_cast %58 : vector<64x16xf32> to vector<1x64x16xf32>
    %60 = vector.extract_strided_slice %5 {offsets = [4, 0, 0], sizes = [1, 2, 16], strides = [1, 1, 1]} : vector<9x2x16xf32> to vector<1x2x16xf32>
    %61 = vector.shape_cast %60 : vector<1x2x16xf32> to vector<2x16xf32>
    %62 = vector.shape_cast %61 : vector<2x16xf32> to vector<2x1x16xf32>
    %63 = vector.broadcast %59 : vector<1x64x16xf32> to vector<2x64x16xf32>
    %64 = vector.broadcast %62 : vector<2x1x16xf32> to vector<2x64x16xf32>
    %65 = arith.mulf %63, %64 : vector<2x64x16xf32>
    %66 = arith.addf %56, %65 : vector<2x64x16xf32>
    %67 = vector.extract_strided_slice %15 {offsets = [5, 0, 0], sizes = [1, 64, 16], strides = [1, 1, 1]} : vector<9x64x16xf32> to vector<1x64x16xf32>
    %68 = vector.shape_cast %67 : vector<1x64x16xf32> to vector<64x16xf32>
    %69 = vector.shape_cast %68 : vector<64x16xf32> to vector<1x64x16xf32>
    %70 = vector.extract_strided_slice %5 {offsets = [5, 0, 0], sizes = [1, 2, 16], strides = [1, 1, 1]} : vector<9x2x16xf32> to vector<1x2x16xf32>
    %71 = vector.shape_cast %70 : vector<1x2x16xf32> to vector<2x16xf32>
    %72 = vector.shape_cast %71 : vector<2x16xf32> to vector<2x1x16xf32>
    %73 = vector.broadcast %69 : vector<1x64x16xf32> to vector<2x64x16xf32>
    %74 = vector.broadcast %72 : vector<2x1x16xf32> to vector<2x64x16xf32>
    %75 = arith.mulf %73, %74 : vector<2x64x16xf32>
    %76 = arith.addf %66, %75 : vector<2x64x16xf32>
    %77 = vector.extract_strided_slice %15 {offsets = [6, 0, 0], sizes = [1, 64, 16], strides = [1, 1, 1]} : vector<9x64x16xf32> to vector<1x64x16xf32>
    %78 = vector.shape_cast %77 : vector<1x64x16xf32> to vector<64x16xf32>
    %79 = vector.shape_cast %78 : vector<64x16xf32> to vector<1x64x16xf32>
    %80 = vector.extract_strided_slice %5 {offsets = [6, 0, 0], sizes = [1, 2, 16], strides = [1, 1, 1]} : vector<9x2x16xf32> to vector<1x2x16xf32>
    %81 = vector.shape_cast %80 : vector<1x2x16xf32> to vector<2x16xf32>
    %82 = vector.shape_cast %81 : vector<2x16xf32> to vector<2x1x16xf32>
    %83 = vector.broadcast %79 : vector<1x64x16xf32> to vector<2x64x16xf32>
    %84 = vector.broadcast %82 : vector<2x1x16xf32> to vector<2x64x16xf32>
    %85 = arith.mulf %83, %84 : vector<2x64x16xf32>
    %86 = arith.addf %76, %85 : vector<2x64x16xf32>
    %87 = vector.extract_strided_slice %15 {offsets = [7, 0, 0], sizes = [1, 64, 16], strides = [1, 1, 1]} : vector<9x64x16xf32> to vector<1x64x16xf32>
    %88 = vector.shape_cast %87 : vector<1x64x16xf32> to vector<64x16xf32>
    %89 = vector.shape_cast %88 : vector<64x16xf32> to vector<1x64x16xf32>
    %90 = vector.extract_strided_slice %5 {offsets = [7, 0, 0], sizes = [1, 2, 16], strides = [1, 1, 1]} : vector<9x2x16xf32> to vector<1x2x16xf32>
    %91 = vector.shape_cast %90 : vector<1x2x16xf32> to vector<2x16xf32>
    %92 = vector.shape_cast %91 : vector<2x16xf32> to vector<2x1x16xf32>
    %93 = vector.broadcast %89 : vector<1x64x16xf32> to vector<2x64x16xf32>
    %94 = vector.broadcast %92 : vector<2x1x16xf32> to vector<2x64x16xf32>
    %95 = arith.mulf %93, %94 : vector<2x64x16xf32>
    %96 = arith.addf %86, %95 : vector<2x64x16xf32>
    %97 = vector.extract_strided_slice %15 {offsets = [8, 0, 0], sizes = [1, 64, 16], strides = [1, 1, 1]} : vector<9x64x16xf32> to vector<1x64x16xf32>
    %98 = vector.shape_cast %97 : vector<1x64x16xf32> to vector<64x16xf32>
    %99 = vector.shape_cast %98 : vector<64x16xf32> to vector<1x64x16xf32>
    %100 = vector.extract_strided_slice %5 {offsets = [8, 0, 0], sizes = [1, 2, 16], strides = [1, 1, 1]} : vector<9x2x16xf32> to vector<1x2x16xf32>
    %101 = vector.shape_cast %100 : vector<1x2x16xf32> to vector<2x16xf32>
    %102 = vector.shape_cast %101 : vector<2x16xf32> to vector<2x1x16xf32>
    %103 = vector.broadcast %99 : vector<1x64x16xf32> to vector<2x64x16xf32>
    %104 = vector.broadcast %102 : vector<2x1x16xf32> to vector<2x64x16xf32>
    %105 = arith.mulf %103, %104 : vector<2x64x16xf32>
    %106 = arith.addf %96, %105 : vector<2x64x16xf32>
    %c0_10 = arith.constant 0 : index
    %c0_11 = arith.constant 0 : index
    %c0_12 = arith.constant 0 : index
    %c0_13 = arith.constant 0 : index
    %107 = vector.load %arg4[%c0_10, %c0_11, %c0_12, %c0_13] : memref<1x2x64x16xf32, #tpu.memory_space<vmem>>, vector<1x2x64x16xf32>
    %108 = vector.shape_cast %107 : vector<1x2x64x16xf32> to vector<2x64x16xf32>
    %109 = vector.shape_cast %106 : vector<2x64x16xf32> to vector<1x2x64x16xf32>
    tpu.vector_store %arg4[%c0_10, %c0_11, %c0_12, %c0_13], %109 {strides = array<i32>} : memref<1x2x64x16xf32, #tpu.memory_space<vmem>>, vector<1x2x64x16xf32>,
    return
  }
  func.func @transform_0(%arg0: i32, %arg1: i32) -> (i32, i32, i32, i32) {
    %c0_i32 = arith.constant 0 : i32
    %c0_i32_0 = arith.constant 0 : i32
    %c0_i32_1 = arith.constant 0 : i32
    return %arg0, %c0_i32, %c0_i32_0, %arg1 : i32, i32, i32, i32
  }
  func.func @transform_1(%arg0: i32, %arg1: i32) -> (i32, i32, i32, i32) {
    %c0_i32 = arith.constant 0 : i32
    %c0_i32_0 = arith.constant 0 : i32
    %c0_i32_1 = arith.constant 0 : i32
    return %arg0, %c0_i32, %c0_i32_0, %arg1 : i32, i32, i32, i32
  }
  func.func @transform_2(%arg0: i32, %arg1: i32) -> (i32, i32, i32, i32) {
    %c0_i32 = arith.constant 0 : i32
    %c0_i32_0 = arith.constant 0 : i32
    %c0_i32_1 = arith.constant 0 : i32
    return %arg0, %c0_i32, %c0_i32_0, %arg1 : i32, i32, i32, i32
  }
}

module attributes {stable_mosaic.version = 11 : i64} {
  func.func @_proj_kernel(%arg0: i32, %arg1: memref<64x192xbf16, #tpu.memory_space<vmem>>, %arg2: memref<192x256xbf16, #tpu.memory_space<vmem>>, %arg3: memref<1x256xf32, #tpu.memory_space<vmem>>, %arg4: memref<64x256xf32, #tpu.memory_space<vmem>>) attributes {dimension_semantics = [#tpu.dimension_semantics<parallel>], iteration_bounds = array<i64: 1>, scalar_prefetch = 0 : i64, scratch_operands = 0 : i64, tpu.core_type = #tpu.core_type<tc>, window_params = [{transform_indices = @transform_0, window_bounds = array<i64: 64, 192>}, {pipeline_mode = #tpu.pipeline_mode<synchronous>, transform_indices = @transform_1, window_bounds = array<i64: 192, 256>}, {pipeline_mode = #tpu.pipeline_mode<synchronous>, transform_indices = @transform_2, window_bounds = array<i64: 1, 256>}, {transform_indices = @transform_3, window_bounds = array<i64: 64, 256>}]} {
    %c0 = arith.constant 0 : index
    %c0_0 = arith.constant 0 : index
    %0 = vector.load %arg1[%c0, %c0_0] : memref<64x192xbf16, #tpu.memory_space<vmem>>, vector<64x192xbf16>
    %c0_1 = arith.constant 0 : index
    %c0_2 = arith.constant 0 : index
    %1 = vector.load %arg2[%c0_1, %c0_2] : memref<192x256xbf16, #tpu.memory_space<vmem>>, vector<192x256xbf16>
    %cst = arith.constant dense<0.000000e+00> : vector<64x256xf32>
    %2 = tpu.matmul %0, %1, %cst {dimension_numbers = #tpu.dot_dimension_numbers<[1], [0], [0], [1], [0, 0, 1, 1], [], []>} : vector<64x192xbf16>, vector<192x256xbf16>, vector<64x256xf32> -> vector<64x256xf32>
    %c0_3 = arith.constant 0 : index
    %c0_4 = arith.constant 0 : index
    %3 = vector.load %arg3[%c0_3, %c0_4] : memref<1x256xf32, #tpu.memory_space<vmem>>, vector<1x256xf32>
    %4 = vector.broadcast %3 : vector<1x256xf32> to vector<64x256xf32>
    %5 = arith.addf %2, %4 : vector<64x256xf32>
    %c0_5 = arith.constant 0 : index
    %c0_6 = arith.constant 0 : index
    %6 = vector.load %arg4[%c0_5, %c0_6] : memref<64x256xf32, #tpu.memory_space<vmem>>, vector<64x256xf32>
    tpu.vector_store %arg4[%c0_5, %c0_6], %5 {strides = array<i32>} : memref<64x256xf32, #tpu.memory_space<vmem>>, vector<64x256xf32>,
    return
  }
  func.func @transform_0(%arg0: i32) -> (i32, i32) {
    %c0_i32 = arith.constant 0 : i32
    %c0_i32_0 = arith.constant 0 : i32
    return %arg0, %c0_i32 : i32, i32
  }
  func.func @transform_1(%arg0: i32) -> (i32, i32) {
    %c0_i32 = arith.constant 0 : i32
    %c0_i32_0 = arith.constant 0 : i32
    %c0_i32_1 = arith.constant 0 : i32
    return %c0_i32, %c0_i32_0 : i32, i32
  }
  func.func @transform_2(%arg0: i32) -> (i32, i32) {
    %c0_i32 = arith.constant 0 : i32
    %c0_i32_0 = arith.constant 0 : i32
    %c0_i32_1 = arith.constant 0 : i32
    return %c0_i32, %c0_i32_0 : i32, i32
  }
  func.func @transform_3(%arg0: i32) -> (i32, i32) {
    %c0_i32 = arith.constant 0 : i32
    %c0_i32_0 = arith.constant 0 : i32
    return %arg0, %c0_i32 : i32, i32
  }
}

module attributes {stable_mosaic.version = 11 : i64} {
  func.func @_corr_kernel(%arg0: i32, %arg1: i32, %arg2: i32, %arg3: memref<1x16x256xbf16, #tpu.memory_space<vmem>>, %arg4: memref<1x16x256xbf16, #tpu.memory_space<vmem>>, %arg5: memref<1x16x16xf32, #tpu.memory_space<vmem>>) attributes {dimension_semantics = [#tpu.dimension_semantics<parallel>, #tpu.dimension_semantics<parallel>, #tpu.dimension_semantics<parallel>], iteration_bounds = array<i64: 2, 1, 1>, scalar_prefetch = 0 : i64, scratch_operands = 0 : i64, tpu.core_type = #tpu.core_type<tc>, window_params = [{transform_indices = @transform_0, window_bounds = array<i64: 1, 16, 256>}, {transform_indices = @transform_1, window_bounds = array<i64: 1, 16, 256>}, {transform_indices = @transform_2, window_bounds = array<i64: 1, 16, 16>}]} {
    %c0 = arith.constant 0 : index
    %c0_0 = arith.constant 0 : index
    %c0_1 = arith.constant 0 : index
    %0 = vector.load %arg3[%c0, %c0_0, %c0_1] : memref<1x16x256xbf16, #tpu.memory_space<vmem>>, vector<1x16x256xbf16>
    %1 = vector.shape_cast %0 : vector<1x16x256xbf16> to vector<16x256xbf16>
    %c0_2 = arith.constant 0 : index
    %c0_3 = arith.constant 0 : index
    %c0_4 = arith.constant 0 : index
    %2 = vector.load %arg4[%c0_2, %c0_3, %c0_4] : memref<1x16x256xbf16, #tpu.memory_space<vmem>>, vector<1x16x256xbf16>
    %3 = vector.shape_cast %2 : vector<1x16x256xbf16> to vector<16x256xbf16>
    %cst = arith.constant dense<0.000000e+00> : vector<16x16xf32>
    %4 = tpu.matmul %1, %3, %cst {dimension_numbers = #tpu.dot_dimension_numbers<[1], [1], [0], [0], [0, 0, 1, 0], [], []>} : vector<16x256xbf16>, vector<16x256xbf16>, vector<16x16xf32> -> vector<16x16xf32>
    %c0_5 = arith.constant 0 : index
    %c0_6 = arith.constant 0 : index
    %c0_7 = arith.constant 0 : index
    %5 = vector.load %arg5[%c0_5, %c0_6, %c0_7] : memref<1x16x16xf32, #tpu.memory_space<vmem>>, vector<1x16x16xf32>
    %6 = vector.shape_cast %5 : vector<1x16x16xf32> to vector<16x16xf32>
    %7 = vector.shape_cast %4 : vector<16x16xf32> to vector<1x16x16xf32>
    tpu.vector_store %arg5[%c0_5, %c0_6, %c0_7], %7 {strides = array<i32>} : memref<1x16x16xf32, #tpu.memory_space<vmem>>, vector<1x16x16xf32>,
    return
  }
  func.func @transform_0(%arg0: i32, %arg1: i32, %arg2: i32) -> (i32, i32, i32) {
    %c0_i32 = arith.constant 0 : i32
    %c0_i32_0 = arith.constant 0 : i32
    return %arg0, %arg1, %c0_i32 : i32, i32, i32
  }
  func.func @transform_1(%arg0: i32, %arg1: i32, %arg2: i32) -> (i32, i32, i32) {
    %c0_i32 = arith.constant 0 : i32
    %c0_i32_0 = arith.constant 0 : i32
    return %arg0, %arg2, %c0_i32 : i32, i32, i32
  }
  func.func @transform_2(%arg0: i32, %arg1: i32, %arg2: i32) -> (i32, i32, i32) {
    %c0_i32 = arith.constant 0 : i32
    return %arg0, %arg1, %arg2 : i32, i32, i32
  }
}

module attributes {stable_mosaic.version = 11 : i64} {
  func.func @_proj_kernel(%arg0: i32, %arg1: memref<32x192xbf16, #tpu.memory_space<vmem>>, %arg2: memref<192x128xbf16, #tpu.memory_space<vmem>>, %arg3: memref<1x128xf32, #tpu.memory_space<vmem>>, %arg4: memref<32x128xf32, #tpu.memory_space<vmem>>) attributes {dimension_semantics = [#tpu.dimension_semantics<parallel>], iteration_bounds = array<i64: 1>, scalar_prefetch = 0 : i64, scratch_operands = 0 : i64, tpu.core_type = #tpu.core_type<tc>, window_params = [{transform_indices = @transform_0, window_bounds = array<i64: 32, 192>}, {pipeline_mode = #tpu.pipeline_mode<synchronous>, transform_indices = @transform_1, window_bounds = array<i64: 192, 128>}, {pipeline_mode = #tpu.pipeline_mode<synchronous>, transform_indices = @transform_2, window_bounds = array<i64: 1, 128>}, {transform_indices = @transform_3, window_bounds = array<i64: 32, 128>}]} {
    %c0 = arith.constant 0 : index
    %c0_0 = arith.constant 0 : index
    %0 = vector.load %arg1[%c0, %c0_0] : memref<32x192xbf16, #tpu.memory_space<vmem>>, vector<32x192xbf16>
    %c0_1 = arith.constant 0 : index
    %c0_2 = arith.constant 0 : index
    %1 = vector.load %arg2[%c0_1, %c0_2] : memref<192x128xbf16, #tpu.memory_space<vmem>>, vector<192x128xbf16>
    %cst = arith.constant dense<0.000000e+00> : vector<32x128xf32>
    %2 = tpu.matmul %0, %1, %cst {dimension_numbers = #tpu.dot_dimension_numbers<[1], [0], [0], [1], [0, 0, 1, 1], [], []>} : vector<32x192xbf16>, vector<192x128xbf16>, vector<32x128xf32> -> vector<32x128xf32>
    %c0_3 = arith.constant 0 : index
    %c0_4 = arith.constant 0 : index
    %3 = vector.load %arg3[%c0_3, %c0_4] : memref<1x128xf32, #tpu.memory_space<vmem>>, vector<1x128xf32>
    %4 = vector.broadcast %3 : vector<1x128xf32> to vector<32x128xf32>
    %5 = arith.addf %2, %4 : vector<32x128xf32>
    %cst_5 = arith.constant 0.000000e+00 : f32
    %6 = vector.broadcast %cst_5 : f32 to vector<32x128xf32>
    %7 = arith.maximumf %5, %6 : vector<32x128xf32>
    %c0_6 = arith.constant 0 : index
    %c0_7 = arith.constant 0 : index
    %8 = vector.load %arg4[%c0_6, %c0_7] : memref<32x128xf32, #tpu.memory_space<vmem>>, vector<32x128xf32>
    tpu.vector_store %arg4[%c0_6, %c0_7], %7 {strides = array<i32>} : memref<32x128xf32, #tpu.memory_space<vmem>>, vector<32x128xf32>,
    return
  }
  func.func @transform_0(%arg0: i32) -> (i32, i32) {
    %c0_i32 = arith.constant 0 : i32
    %c0_i32_0 = arith.constant 0 : i32
    return %arg0, %c0_i32 : i32, i32
  }
  func.func @transform_1(%arg0: i32) -> (i32, i32) {
    %c0_i32 = arith.constant 0 : i32
    %c0_i32_0 = arith.constant 0 : i32
    %c0_i32_1 = arith.constant 0 : i32
    return %c0_i32, %c0_i32_0 : i32, i32
  }
  func.func @transform_2(%arg0: i32) -> (i32, i32) {
    %c0_i32 = arith.constant 0 : i32
    %c0_i32_0 = arith.constant 0 : i32
    %c0_i32_1 = arith.constant 0 : i32
    return %c0_i32, %c0_i32_0 : i32, i32
  }
  func.func @transform_3(%arg0: i32) -> (i32, i32) {
    %c0_i32 = arith.constant 0 : i32
    %c0_i32_0 = arith.constant 0 : i32
    return %arg0, %c0_i32 : i32, i32
  }
}

</mosaic_0001>

<bundles_post_ra>
// kernel: sub.3
= control target key start
LH: loop header
LB: loop body
LE: loop exit
PB: predicated region body
PF: predicated region fallthrough
CT: control target
= control target key end

     0   :  { %s56_s0 = inlined_call_operand.vmem [shape: f32[1,256], index: 0, kind: input, shape index: {}]   ;;  %s57_s1 = inlined_call_operand.vmem [shape: f32[1,256], index: 1, kind: input, shape index: {}]   ;;  %s58_s2 = inlined_call_operand.vmem [shape: f32[1,256], index: 2, kind: output, shape index: {}]  }
   0x1   :  { %v3_v0 = vld [vmem:[%s56_s0] sm:$0x1]  ;;  %v20_v2 = vld [vmem:[%s56_s0 + $0x1] sm:$0x1] }
   0x2   :  { %v4_v1 = vld [vmem:[%s57_s1] sm:$0x1]  ;;  %v21_v4 = vld [vmem:[%s57_s1 + $0x1] sm:$0x1] }
   0x3   :  { %v7_v3 = vsub.f32 %v3_v0, %v4_v1  ;;  %v16_v5 = vsub.f32 %v20_v2, %v21_v4 }
   0x5   :  { %9 = vst [vmem:[%s58_s2] sm:$0x1] %v7_v3 }
   0x6   :  { %22 = vst [vmem:[%s58_s2 + $0x1] sm:$0x1] %v16_v5 }

// kernel: deqflow_base_forward.7
= control target key start
LH: loop header
LB: loop body
LE: loop exit
PB: predicated region body
PF: predicated region fallthrough
CT: control target
= control target key end

     0   :  { %s1624_s9 = smov 0   ;;  %s1626_s10 = smov 0   ;;  %s3329_s0 = inlined_call_operand.vmem [shape: f32[2,9,64,16], index: 0, kind: input, shape index: {}]   ;;  %s3330_s1 = inlined_call_operand.vmem [shape: f32[2,9,2,16], index: 1, kind: input, shape index: {}]   ;;  %s3331_s2 = inlined_call_operand.vmem [shape: f32[2,2,64,16], index: 2, kind: output, shape index: {}]  }
   0x1   :  { %s1628_s11 = smov 0  }
   0x2 LB: > { %s24_s12 = sadd.s32 1, %s1603_s10  ;;  %p1391_p0 = scmp.ge.s32.totalorder %s1607_s11, 1  ;;  %s1607_s11 = sphi %s1628_s11, %s12_s11   ;;  %s1603_s10 = sphi %s1626_s10, %s3853_s10   ;;  %s1599_s9 = sphi %s1624_s9, %s3852_s9  }
   0x3   : > { %p26_p1 = scmp.ge.s32.totalorder %s24_s12, 2  ;;  %p146_p2 = scmp.lt.s32.totalorder %s1607_s11, 3 }
   0x5   : > { %s3855_s12 = smov (%p26_p1, %s24_s12), 0  ;;  %p147_p3 = pnand %p1391_p0, %p146_p2 }
   0x7   : > { %150 = sbr.rel (%p147_p3) target bundleno = 303 (0x12f), region = 28 }
   0xc   : > { %p182_p4 = scmp.lt.s32.totalorder %s1599_s9, 1  ;;  %vm359_vm0 = vcmask 130048  }
   0xe   : > { %s3857_s9 = smov (!%p182_p4, %s1599_s9), 1 }
   0xf   : > { %s1399_s13 = smul.u32 576, %s3857_s9  ;;  %s1398_s21 = sshll.u32 %s3857_s9, 7 }
  0x10   : > { %s1400_s17 = smul.u32 18, %s3857_s9  ;;  %s3268_s24 = scalar_lea.vmem %s3331_s2, %s1398_s21 }
  0x11   : > { %s1648_s16 = scalar_lea.vmem %s3329_s0, %s1399_s13 }
  0x12   : > { %v206_v0 = vld [vmem:[%s1648_s16] sm:$0xff]  ;;  %v207_v1 = vld [vmem:[%s1648_s16 + $0x8] sm:$0xff]  ;;  %v208_v2 = vld [vmem:[%s1648_s16 + $0x10] sm:$0xff]  ;;  %s2737_s20 = scalar_lea.vmem %s3330_s1, %s1400_s17 }
  0x13   : > { %v209_v3 = vld [vmem:[%s1648_s16 + $0x18] sm:$0xff]  ;;  %v210_v4 = vld [vmem:[%s1648_s16 + $0x20] sm:$0xff]  ;;  %v211_v5 = vld [vmem:[%s1648_s16 + $0x28] sm:$0xff]  ;;  %v1664_v14 = vmul.f32 0.25, %v206_v0  ;;  %v1666_v15 = vmul.f32 0.25, %v207_v1  ;;  %v1668_v16 = vmul.f32 0.25, %v208_v2 }
  0x14   : > { %v212_v6 = vld [vmem:[%s1648_s16 + $0x30] sm:$0xff]  ;;  %v213_v7 = vld [vmem:[%s1648_s16 + $0x38] sm:$0xff]  ;;  %v214_v8 = vld [vmem:[%s1648_s16 + $0x40] sm:$0xff]  ;;  %v1673_v20 = vmul.f32 0.25, %v209_v3  ;;  %v1675_v21 = vmul.f32 0.25, %v210_v4  ;;  %v1677_v22 = vmul.f32 0.25, %v211_v5 }
  0x15   : > { %v215_v9 = vld [vmem:[%s1648_s16 + $0x48] sm:$0xff]  ;;  %v216_v10 = vld [vmem:[%s1648_s16 + $0x50] sm:$0xff]  ;;  %v217_v11 = vld [vmem:[%s1648_s16 + $0x58] sm:$0xff]  ;;  %3492 = vst [vmem:[#allocation2_spill] sm:$0xff] %v1664_v14  ;;  %v1682_v26 = vmul.f32 0.25, %v212_v6  ;;  %v1684_v27 = vmul.f32 0.25, %v213_v7 }
  0x16   : > { %v218_v12 = vld [vmem:[%s1648_s16 + $0x60] sm:$0xff]  ;;  %v219_v13 = vld [vmem:[%s1648_s16 + $0x68] sm:$0xff]  ;;  %3493 = vst [vmem:[#allocation3_spill] sm:$0xff] %v1666_v15  ;;  %v220_v17 = vld [vmem:[%s1648_s16 + $0x70] sm:$0xff]  ;;  %v1686_v28 = vmul.f32 0.25, %v214_v8  ;;  %v1691_v32 = vmul.f32 0.25, %v215_v9 }
  0x17   : > { %3494 = vst [vmem:[#allocation4_spill] sm:$0xff] %v1668_v16  ;;  %v221_v18 = vld [vmem:[%s1648_s16 + $0x78] sm:$0xff]  ;;  %v222_v19 = vld [vmem:[%s1648_s16 + $0x80] sm:$0xff]  ;;  %v223_v23 = vld [vmem:[%s1648_s16 + $0x88] sm:$0xff]  ;;  %v1693_v33 = vmul.f32 0.25, %v216_v10  ;;  %v1695_v34 = vmul.f32 0.25, %v217_v11 }
  0x18   : > { %v224_v24 = vld [vmem:[%s1648_s16 + $0x90] sm:$0xff]  ;;  %v225_v25 = vld [vmem:[%s1648_s16 + $0x98] sm:$0xff]  ;;  %3495 = vst [vmem:[#allocation5_spill] sm:$0xff] %v1686_v28  ;;  %v226_v29 = vld [vmem:[%s1648_s16 + $0xa0] sm:$0xff]  ;;  %v1700_v38 = vmul.f32 0.25, %v218_v12  ;;  %v1702_v39 = vmul.f32 0.25, %v219_v13 }
  0x19   : > { %v227_v30 = vld [vmem:[%s1648_s16 + $0xa8] sm:$0xff]  ;;  %v228_v31 = vld [vmem:[%s1648_s16 + $0xb0] sm:$0xff]  ;;  %3496 = vst [vmem:[#allocation6_spill] sm:$0xff] %v1691_v32  ;;  %v229_v35 = vld [vmem:[%s1648_s16 + $0xb8] sm:$0xff]  ;;  %v1704_v40 = vmul.f32 0.25, %v220_v17  ;;  %v1709_v44 = vmul.f32 0.25, %v221_v18 }
  0x1a   : > { %3497 = vst [vmem:[#allocation7_spill] sm:$0xff] %v1693_v33  ;;  %v230_v36 = vld [vmem:[%s1648_s16 + $0xc0] sm:$0xff]  ;;  %v231_v37 = vld [vmem:[%s1648_s16 + $0xc8] sm:$0xff]  ;;  %v232_v41 = vld [vmem:[%s1648_s16 + $0xd0] sm:$0xff]  ;;  %v1711_v45 = vmul.f32 0.25, %v222_v19  ;;  %v1713_v46 = vmul.f32 0.25, %v223_v23 }
  0x1b   : > { %3498 = vst [vmem:[#allocation8_spill] sm:$0xff] %v1695_v34  ;;  %v233_v42 = vld [vmem:[%s1648_s16 + $0xd8] sm:$0xff]  ;;  %v234_v43 = vld [vmem:[%s1648_s16 + $0xe0] sm:$0xff]  ;;  %v235_v47 = vld [vmem:[%s1648_s16 + $0xe8] sm:$0xff]  ;;  %v1718_v50 = vmul.f32 0.25, %v224_v24  ;;  %v1720_v51 = vmul.f32 0.25, %v225_v25 }
  0x1c   : > { %3499 = vst [vmem:[#allocation9_spill] sm:$0xff] %v1711_v45  ;;  %v236_v48 = vld [vmem:[%s1648_s16 + $0xf0] sm:$0xff]  ;;  %v237_v49 = vld [vmem:[%s1648_s16 + $0xf8] sm:$0xff]  ;;  %v1722_v52 = vmul.f32 0.25, %v226_v29  ;;  %v238_v53 = vld [vmem:[%s1648_s16 + $0x100] sm:$0xff]  ;;  %v1727_v56 = vmul.f32 0.25, %v227_v30 }
  0x1d   : > { %3500 = vst [vmem:[#allocation10_spill] sm:$0xff] %v1713_v46  ;;  %v239_v54 = vld [vmem:[%s1648_s16 + $0x108] sm:$0xff]  ;;  %v240_v55 = vld [vmem:[%s1648_s16 + $0x110] sm:$0xff]  ;;  %v1729_v57 = vmul.f32 0.25, %v228_v31  ;;  %v1731_v58 = vmul.f32 0.25, %v229_v35  ;;  %v241_v59 = vld [vmem:[%s1648_s16 + $0x118] sm:$0xff] }
  0x1e   : > { %v242_v60 = vld [vmem:[%s1648_s16 + $0x120] sm:$0xff]  ;;  %v243_v61 = vld [vmem:[%s1648_s16 + $0x128] sm:$0xff]  ;;  %v1736_v62 = vmul.f32 0.25, %v230_v36  ;;  %v1738_v63 = vmul.f32 0.25, %v231_v37  ;;  %v1740_v0 = vmul.f32 0.25, %v232_v41  ;;  %v244_v1 = vld [vmem:[%s1648_s16 + $0x130] sm:$0xff] }
  0x1f   : > { %3501 = vst [vmem:[#allocation11_spill] sm:$0xff] %v1731_v58  ;;  %v245_v2 = vld [vmem:[%s1648_s16 + $0x138] sm:$0xff]  ;;  %v246_v3 = vld [vmem:[%s1648_s16 + $0x140] sm:$0xff]  ;;  %v1745_v4 = vmul.f32 0.25, %v233_v42  ;;  %v1747_v5 = vmul.f32 0.25, %v234_v43  ;;  %v1749_v6 = vmul.f32 0.25, %v235_v47 }
  0x20   : > { %3502 = vst [vmem:[#allocation12_spill] sm:$0xff] %v1738_v63  ;;  %v247_v7 = vld [vmem:[%s1648_s16 + $0x148] sm:$0xff]  ;;  %v248_v8 = vld [vmem:[%s1648_s16 + $0x150] sm:$0xff]  ;;  %v249_v9 = vld [vmem:[%s1648_s16 + $0x158] sm:$0xff]  ;;  %v1754_v10 = vmul.f32 0.25, %v236_v48  ;;  %v1756_v11 = vmul.f32 0.25, %v237_v49 }
  0x21   : > { %3503 = vst [vmem:[#allocation13_spill] sm:$0xff] %v1740_v0  ;;  %v1758_v12 = vmul.f32 0.25, %v238_v53  ;;  %v250_v13 = vld [vmem:[%s1648_s16 + $0x160] sm:$0xff]  ;;  %v251_v17 = vld [vmem:[%s1648_s16 + $0x168] sm:$0xff]  ;;  %v252_v18 = vld [vmem:[%s1648_s16 + $0x170] sm:$0xff]  ;;  %v1763_v19 = vmul.f32 0.25, %v239_v54 }
  0x22   : > { %3504 = vst [vmem:[#allocation14_spill] sm:$0xff] %v1745_v4  ;;  %v1765_v23 = vmul.f32 0.25, %v240_v55  ;;  %v1767_v24 = vmul.f32 0.25, %v241_v59  ;;  %v253_v25 = vld [vmem:[%s1648_s16 + $0x178] sm:$0xff]  ;;  %v254_v29 = vld [vmem:[%s1648_s16 + $0x180] sm:$0xff]  ;;  %v255_v30 = vld [vmem:[%s1648_s16 + $0x188] sm:$0xff] }
  0x23   : > { %3505 = vst [vmem:[#allocation15_spill] sm:$0xff] %v1747_v5  ;;  %v1772_v31 = vmul.f32 0.25, %v242_v60  ;;  %v1774_v35 = vmul.f32 0.25, %v243_v61  ;;  %v1776_v36 = vmul.f32 0.25, %v244_v1  ;;  %v256_v37 = vld [vmem:[%s1648_s16 + $0x190] sm:$0xff]  ;;  %v257_v41 = vld [vmem:[%s1648_s16 + $0x198] sm:$0xff] }
  0x24   : > { %3506 = vst [vmem:[#allocation16_spill] sm:$0xff] %v1756_v11  ;;  %v258_v42 = vld [vmem:[%s1648_s16 + $0x1a0] sm:$0xff]  ;;  %v1781_v43 = vmul.f32 0.25, %v245_v2  ;;  %v1783_v47 = vmul.f32 0.25, %v246_v3  ;;  %v1785_v48 = vmul.f32 0.25, %v247_v7  ;;  %v259_v49 = vld [vmem:[%s1648_s16 + $0x1a8] sm:$0xff] }
  0x25   : > { %3507 = vst [vmem:[#allocation17_spill] sm:$0xff] %v1758_v12  ;;  %v260_v53 = vld [vmem:[%s1648_s16 + $0x1b0] sm:$0xff]  ;;  %v1789_v54 = vmul.f32 0.25, %v248_v8  ;;  %v1791_v55 = vmul.f32 0.25, %v249_v9  ;;  %v1793_v59 = vmul.f32 0.25, %v250_v13  ;;  %v1795_v60 = vmul.f32 0.25, %v251_v17 }
  0x26   : > { %3508 = vst [vmem:[#allocation18_spill] sm:$0xff] %v1763_v19  ;;  %v261_v61 = vld [vmem:[%s1648_s16 + $0x1b8] sm:$0xff]  ;;  %v262_v1 = vld [vmem:[%s1648_s16 + $0x1c0] sm:$0xff]  ;;  %v263_v2 = vld [vmem:[%s1648_s16 + $0x1c8] sm:$0xff]  ;;  %v1800_v3 = vmul.f32 0.25, %v252_v18  ;;  %v1802_v7 = vmul.f32 0.25, %v253_v25 }
  0x27   : > { %3509 = vst [vmem:[#allocation19_spill] sm:$0xff] %v1767_v24  ;;  %v264_v8 = vld [vmem:[%s1648_s16 + $0x1d0] sm:$0xff]  ;;  %v265_v11 = vld [vmem:[%s1648_s16 + $0x1d8] sm:$0xff]  ;;  %v1808_v9 = vmul.f32 0.25, %v255_v30  ;;  %v1810_v13 = vmul.f32 0.25, %v256_v37  ;;  %v1812_v17 = vmul.f32 0.25, %v257_v41 }
  0x28   : > { %3510 = vst [vmem:[#allocation20_spill] sm:$0xff] %v1772_v31  ;;  %v1817_v18 = vmul.f32 0.25, %v259_v49  ;;  %v1819_v25 = vmul.f32 0.25, %v260_v53  ;;  %v361_v30 = vsel %vm359_vm0, %v1686_v28, -inf  ;;  %v268_v37 = vld [vmem:[%s1648_s16 + $0x1f0] sm:$0xff]  ;;  %v270_v41 = vld [vmem:[%s1648_s16 + $0x200] sm:$0xff] }
  0x29   : > { %3511 = vst [vmem:[#allocation21_spill] sm:$0xff] %v1776_v36  ;;  %v266_v36 = vld [vmem:[%s1648_s16 + $0x1e0] sm:$0xff]  ;;  %v1832_v49 = vmul.f32 0.25, %v263_v2  ;;  %v1835_v53 = vmul.f32 0.25, %v264_v8  ;;  %v378_v28 = vsel %vm359_vm0, %v1691_v32, -inf  ;;  %v395_v2 = vsel %vm359_vm0, %v1693_v33, -inf }
  0x2a   : > { %3512 = vst [vmem:[#allocation22_spill] sm:$0xff] %v1781_v43  ;;  %v1804_v43 = vmul.f32 0.25, %v254_v29  ;;  %v360_v29 = vsel %vm359_vm0, %v1664_v14, -inf  ;;  %v377_v14 = vsel %vm359_vm0, %v1666_v15, -inf  ;;  %v1845_v58 = vmul.f32 0.25, %v266_v36  ;;  %v274_v8 = vld [vmem:[%s1648_s16 + $0x220] sm:$0xff] }
  0x2b   : > { %3513 = vst [vmem:[#allocation23_spill] sm:$0xff] %v1783_v47  ;;  %v1857_v15 = vmul.f32 0.25, %v270_v41  ;;  %v363_v32 = vsel %vm359_vm0, %v1711_v45, -inf  ;;  %v412_v33 = vsel %vm359_vm0, %v1695_v34, -inf  ;;  %v428_v34 = vsel %vm359_vm0, %v1675_v21, -inf }
  0x2c   : > { %3514 = vst [vmem:[#allocation24_spill] sm:$0xff] %v1785_v48 }
  0x2d   : > { %3515 = vst [vmem:[#allocation25_spill] sm:$0xff] %v1789_v54 }
  0x2e   : > { %3516 = vst [vmem:[#allocation26_spill] sm:$0xff] %v1791_v55 }
  0x2f   : > { %3517 = vst [vmem:[#allocation27_spill] sm:$0xff] %v1793_v59 }
  0x30   : > { %3518 = vst [vmem:[#allocation28_spill] sm:$0xff] %v1795_v60  ;;  %v1814_v60 = vmul.f32 0.25, %v258_v42  ;;  %v1828_v42 = vmul.f32 0.25, %v261_v61  ;;  %v362_v61 = vmax.f32 %v360_v29, %v361_v30  ;;  %v379_v29 = vmax.f32 %v377_v14, %v378_v28 }
  0x31   : > { %3519 = vst [vmem:[#allocation29_spill] sm:$0xff] %v1800_v3  ;;  %v1830_v3 = vmul.f32 0.25, %v262_v1  ;;  %v394_v1 = vsel %vm359_vm0, %v1668_v16, -inf  ;;  %v411_v30 = vsel %vm359_vm0, %v1673_v20, -inf  ;;  %v397_v14 = vsel %vm359_vm0, %v1718_v50, -inf }
  0x32   : > { %3520 = vst [vmem:[#allocation30_spill] sm:$0xff] %v1802_v7  ;;  %v267_v7 = vld [vmem:[%s1648_s16 + $0x1e8] sm:$0xff]  ;;  %v396_v41 = vmax.f32 %v394_v1, %v395_v2  ;;  %v365_v28 = vsel %vm359_vm0, %v1736_v62, -inf  ;;  %v414_v1 = vsel %vm359_vm0, %v1720_v51, -inf  ;;  %v1893_v2 = vsel %vm359_vm0, %v1783_v47, -inf }
  0x33   : > { %3521 = vst [vmem:[#allocation31_spill] sm:$0xff] %v1804_v43  ;;  %v1907_v47 = vsel %vm359_vm0, %v1857_v15, -inf }
  0x34   : > { %3522 = vst [vmem:[#allocation32_spill] sm:$0xff] %v1808_v9 }
  0x35   : > { %3523 = vst [vmem:[#allocation33_spill] sm:$0xff] %v1810_v13 }
  0x36   : > { %3524 = vst [vmem:[#allocation34_spill] sm:$0xff] %v1812_v17  ;;  %v273_v17 = vld [vmem:[%s1648_s16 + $0x218] sm:$0xff] }
  0x37   : > { %3525 = vst [vmem:[#allocation35_spill] sm:$0xff] %v1814_v60  ;;  %v272_v60 = vld [vmem:[%s1648_s16 + $0x210] sm:$0xff] }
  0x38   : > { %3526 = vst [vmem:[#allocation36_spill] sm:$0xff] %v1817_v18  ;;  %v271_v18 = vld [vmem:[%s1648_s16 + $0x208] sm:$0xff]  ;;  %v1867_v16 = vmul.f32 0.25, %v272_v60  ;;  %v367_v60 = vsel %vm359_vm0, %v1758_v12, -inf  ;;  %v399_v12 = vsel %vm359_vm0, %v1740_v0, -inf }
  0x39   : > { %3527 = vst [vmem:[#allocation37_spill] sm:$0xff] %v1819_v25  ;;  %v1837_v25 = vmul.f32 0.25, %v265_v11  ;;  %v275_v11 = vld [vmem:[%s1648_s16 + $0x228] sm:$0xff]  ;;  %v1861_v36 = vmul.f32 0.25, %v271_v18  ;;  %v364_v18 = vmax.f32 %v362_v61, %v363_v32  ;;  %v429_v32 = vsel %vm359_vm0, %v1700_v38, -inf }
  0x3a   : > { %3528 = vst [vmem:[#allocation38_spill] sm:$0xff] %v1828_v42  ;;  %v1853_v42 = vmul.f32 0.25, %v267_v7  ;;  %v1869_v7 = vmul.f32 0.25, %v273_v17  ;;  %v1875_v45 = vmul.f32 0.25, %v275_v11  ;;  %v413_v17 = vmax.f32 %v411_v30, %v412_v33 }
  0x3b   : > { %3529 = vst [vmem:[#allocation39_spill] sm:$0xff] %v1830_v3  ;;  %v431_v61 = vsel %vm359_vm0, %v1722_v52, -inf  ;;  %v382_v33 = vsel %vm359_vm0, %v1738_v63, -inf  ;;  %v430_v11 = vmax.f32 %v428_v34, %v429_v32  ;;  %v366_v30 = vmax.f32 %v364_v18, %v365_v28 }
  0x3c   : > { %3530 = vst [vmem:[#allocation40_spill] sm:$0xff] %v1832_v49  ;;  %v384_v63 = vsel %vm359_vm0, %v1763_v19, -inf  ;;  %v433_v28 = vsel %vm359_vm0, %v1747_v5, -inf  ;;  %v445_v32 = vsel %vm359_vm0, %v1677_v22, -inf  ;;  %v418_v5 = vsel %vm359_vm0, %v1767_v24, -inf  ;;  %v3579_v24 = vld [vmem:[#allocation32_spill] sm:$0xff] }
  0x3d   : > { %3531 = vst [vmem:[#allocation41_spill] sm:$0xff] %v1835_v53  ;;  %v432_v34 = vmax.f32 %v430_v11, %v431_v61  ;;  %v401_v61 = vsel %vm359_vm0, %v1765_v23, -inf  ;;  %v403_v11 = vsel %vm359_vm0, %v1789_v54, -inf }
  0x3e   : > { %3532 = vst [vmem:[#allocation42_spill] sm:$0xff] %v1837_v25  ;;  %v1855_v25 = vmul.f32 0.25, %v268_v37  ;;  %v380_v37 = vsel %vm359_vm0, %v1713_v46, -inf }
  0x3f   : > { %3533 = vst [vmem:[#allocation43_spill] sm:$0xff] %v1845_v58  ;;  %v381_v46 = vmax.f32 %v379_v29, %v380_v37  ;;  %v371_v29 = vsel %vm359_vm0, %v1804_v43, -inf  ;;  %v1901_v37 = vsel %vm359_vm0, %v1830_v3, -inf  ;;  %v386_v3 = vsel %vm359_vm0, %v1785_v48, -inf }
  0x40   : > { %3534 = vst [vmem:[#allocation44_spill] sm:$0xff] %v1855_v25  ;;  %v1873_v25 = vmul.f32 0.25, %v274_v8  ;;  %v398_v8 = vmax.f32 %v396_v41, %v397_v14  ;;  %v415_v41 = vmax.f32 %v413_v17, %v414_v1  ;;  %v416_v14 = vsel %vm359_vm0, %v1745_v4, -inf }
  0x41   : > { %3535 = vst [vmem:[#allocation45_spill] sm:$0xff] %v1857_v15  ;;  %v383_v18 = vmax.f32 %v381_v46, %v382_v33  ;;  %v446_v43 = vsel %vm359_vm0, %v1702_v39, -inf  ;;  %v448_v17 = vsel %vm359_vm0, %v1727_v56, -inf  ;;  %v368_v46 = vmax.f32 %v366_v30, %v367_v60 }
  0x42   : > { %3536 = vst [vmem:[#allocation46_spill] sm:$0xff] %v1867_v16  ;;  %v400_v15 = vmax.f32 %v398_v8, %v399_v12  ;;  %v388_v1 = vsel %vm359_vm0, %v1808_v9, -inf  ;;  %v447_v33 = vmax.f32 %v445_v32, %v446_v43  ;;  %v417_v19 = vmax.f32 %v415_v41, %v416_v14 }
  0x43   : > { %v434_v48 = vmax.f32 %v432_v34, %v433_v28  ;;  %v450_v12 = vsel %vm359_vm0, %v1749_v6, -inf  ;;  %v385_v8 = vmax.f32 %v383_v18, %v384_v63  ;;  %v435_v60 = vsel %vm359_vm0, %v1772_v31, -inf }
  0x44   : > { %v449_v30 = vmax.f32 %v447_v33, %v448_v17  ;;  %v402_v9 = vmax.f32 %v400_v15, %v401_v61  ;;  %v462_v43 = vsel %vm359_vm0, %v1682_v26, -inf  ;;  %v463_v32 = vsel %vm359_vm0, %v1704_v40, -inf }
  0x45   : > { %v465_v41 = vsel %vm359_vm0, %v1729_v57, -inf  ;;  %v370_v34 = vmax.f32 %v368_v46, %v1893_v2  ;;  %v405_v63 = vsel %vm359_vm0, %v1810_v13, -inf  ;;  %v464_v14 = vmax.f32 %v462_v43, %v463_v32 }
  0x46   : > { %v451_v18 = vmax.f32 %v449_v30, %v450_v12  ;;  %v419_v28 = vmax.f32 %v417_v19, %v418_v5  ;;  %v436_v54 = vmax.f32 %v434_v48, %v435_v60  ;;  %v452_v15 = vsel %vm359_vm0, %v1774_v35, -inf  ;;  %v3537_v19 = vld [vmem:[#allocation11_spill] sm:$0xff] }
  0x47   : > { %v467_v17 = vsel %vm359_vm0, %v1754_v10, -inf  ;;  %v387_v61 = vmax.f32 %v385_v8, %v386_v3  ;;  %v420_v33 = vsel %vm359_vm0, %v1791_v55, -inf  ;;  %v437_v2 = vsel %vm359_vm0, %v1793_v59, -inf  ;;  %v3538_v3 = vld [vmem:[#allocation21_spill] sm:$0xff]  ;;  %v3539_v59 = vld [vmem:[#allocation28_spill] sm:$0xff]  ;;  %v3541_v55 = vld [vmem:[#allocation34_spill] sm:$0xff] }
  0x48   : > { %v466_v46 = vmax.f32 %v464_v14, %v465_v41  ;;  %v404_v31 = vmax.f32 %v402_v9, %v403_v11  ;;  %v479_v12 = vsel %vm359_vm0, %v1684_v27, -inf  ;;  %v480_v5 = vsel %vm359_vm0, %v1709_v44, -inf  ;;  %v3540_v11 = vld [vmem:[#allocation16_spill] sm:$0xff] }
  0x49   : > { %v482_v48 = vsel %vm359_vm0, %v3537_v19, -inf  ;;  %v453_v60 = vmax.f32 %v451_v18, %v452_v15  ;;  %v469_v8 = vsel %vm359_vm0, %v3538_v3, -inf  ;;  %v481_v43 = vmax.f32 %v479_v12, %v480_v5  ;;  %v3542_v18 = vld [vmem:[#allocation35_spill] sm:$0xff] }
  0x4a   : > { %v468_v30 = vmax.f32 %v466_v46, %v467_v17  ;;  %v421_v32 = vmax.f32 %v419_v28, %v420_v33  ;;  %v438_v13 = vmax.f32 %v436_v54, %v437_v2  ;;  %v454_v9 = vsel %vm359_vm0, %v3539_v59, -inf  ;;  %v3543_v33 = vld [vmem:[#allocation22_spill] sm:$0xff]  ;;  %v3544_v59 = vld [vmem:[#allocation29_spill] sm:$0xff] }
  0x4b   : > { %v484_v41 = vsel %vm359_vm0, %v3540_v11, -inf  ;;  %v390_v14 = vsel %vm359_vm0, %v1832_v49, -inf  ;;  %v422_v19 = vsel %vm359_vm0, %v3541_v55, -inf  ;;  %v439_v15 = vsel %vm359_vm0, %v3542_v18, -inf }
  0x4c   : > { %v483_v17 = vmax.f32 %v481_v43, %v482_v48  ;;  %v372_v46 = vmax.f32 %v370_v34, %v371_v29  ;;  %v389_v28 = vmax.f32 %v387_v61, %v388_v1  ;;  %v470_v54 = vmax.f32 %v468_v30, %v469_v8  ;;  %v3545_v29 = vld [vmem:[#allocation36_spill] sm:$0xff]  ;;  %v3546_v34 = vld [vmem:[#allocation42_spill] sm:$0xff]  ;;  %v269_v8 = vld [vmem:[%s1648_s16 + $0x1f8] sm:$0xff] }
  0x4d   : > { %v486_v2 = vsel %vm359_vm0, %v3543_v33, -inf  ;;  %v406_v12 = vmax.f32 %v404_v31, %v405_v63  ;;  %v455_v5 = vmax.f32 %v453_v60, %v454_v9  ;;  %v471_v49 = vsel %vm359_vm0, %v3544_v59, -inf  ;;  %v3547_v60 = vld [vmem:[#allocation30_spill] sm:$0xff]  ;;  %v276_v9 = vld [vmem:[%s1648_s16 + $0x230] sm:$0xff] }
  0x4e   : > { %v485_v11 = vmax.f32 %v483_v17, %v484_v41  ;;  %v407_v55 = vsel %vm359_vm0, %v1835_v53, -inf  ;;  %v423_v18 = vmax.f32 %v421_v32, %v422_v19  ;;  %v440_v48 = vmax.f32 %v438_v13, %v439_v15  ;;  %v277_v41 = vld [vmem:[%s1648_s16 + $0x238] sm:$0xff] }
  0x4f   : > { %v456_v1 = vsel %vm359_vm0, %v3545_v29, -inf  ;;  %v424_v61 = vsel %vm359_vm0, %v3546_v34, -inf  ;;  %v441_v31 = vsel %vm359_vm0, %v1845_v58, -inf  ;;  %v488_v30 = vsel %vm359_vm0, %v3547_v60, -inf  ;;  %v3548_v58 = vld [vmem:[#allocation37_spill] sm:$0xff] }
  0x50   : > { %v487_v63 = vmax.f32 %v485_v11, %v486_v2  ;;  %v374_v43 = vmax.f32 %v372_v46, %v1901_v37  ;;  %v392_v19 = vsel %vm359_vm0, %v1861_v36, -inf  ;;  %v409_v13 = vsel %vm359_vm0, %v1867_v16, -inf }
  0x51   : > { %v472_v32 = vmax.f32 %v470_v54, %v471_v49  ;;  %v391_v15 = vmax.f32 %v389_v28, %v390_v14  ;;  %v408_v17 = vmax.f32 %v406_v12, %v407_v55  ;;  %v457_v34 = vmax.f32 %v455_v5, %v456_v1  ;;  %v3549_v14 = vld [vmem:[#allocation38_spill] sm:$0xff] }
  0x52   : > { %v473_v11 = vsel %vm359_vm0, %v3548_v58, -inf  ;;  %v425_v2 = vmax.f32 %v423_v18, %v424_v61  ;;  %v442_v53 = vmax.f32 %v440_v48, %v441_v31  ;;  %v458_v37 = vsel %vm359_vm0, %v1853_v42, -inf  ;;  %v3550_v61 = vld [vmem:[#allocation44_spill] sm:$0xff] }
  0x53   : > { %v489_v46 = vmax.f32 %v487_v63, %v488_v30  ;;  %v1996_v29 = vmul.f32 0.25, %v269_v8  ;;  %v426_v16 = vsel %vm359_vm0, %v1869_v7, -inf  ;;  %v443_v49 = vsel %vm359_vm0, %v1873_v25, -inf }
  0x54   : > { %v490_v55 = vsel %vm359_vm0, %v3549_v14, -inf  ;;  %v2004_v28 = vmul.f32 0.25, %v276_v9  ;;  %v2006_v54 = vmul.f32 0.25, %v277_v41  ;;  %v2009_v18 = vmax.f32 %v374_v43, %v1907_v47 }
  0x55   : > { %v474_v12 = vmax.f32 %v472_v32, %v473_v11  ;;  %v2011_v5 = vmax.f32 %v391_v15, %v392_v19  ;;  %v2013_v48 = vmax.f32 %v408_v17, %v409_v13  ;;  %v459_v1 = vmax.f32 %v457_v34, %v458_v37  ;;  %v3552_v32 = vld [vmem:[#allocation3_spill] sm:$0xff]  ;;  %v3553_v17 = vld [vmem:[#allocation4_spill] sm:$0xff] }
  0x56   : > { %v475_v31 = vsel %vm359_vm0, %v3550_v61, -inf  ;;  %v2017_v63 = vmax.f32 %v425_v2, %v426_v16  ;;  %v2019_v30 = vmax.f32 %v442_v53, %v443_v49  ;;  %v460_v8 = vsel %vm359_vm0, %v1875_v45, -inf  ;;  %v3551_v16 = vld [vmem:[#allocation2_spill] sm:$0xff] }
  0x57   : > { %v491_v9 = vmax.f32 %v489_v46, %v490_v55  ;;  %v492_v47 = vsel %vm359_vm0, %v1996_v29, -inf  ;;  %v476_v43 = vmax.f32 %v474_v12, %v475_v31  ;;  %v477_v19 = vsel %vm359_vm0, %v2004_v28, -inf  ;;  %v3554_v46 = vld [vmem:[#allocation5_spill] sm:$0xff]  ;;  %v3555_v55 = vld [vmem:[#allocation6_spill] sm:$0xff] }
  0x58   : > { %v2027_v13 = vmax.f32 %v459_v1, %v460_v8  ;;  %v494_v34 = vsel %vm359_vm0, %v2006_v54, -inf  ;;  %v496_v53 = vsub.f32 %v3551_v16, %v2009_v18  ;;  %v497_v41 = vsub.f32 %v3552_v32, %v2011_v5  ;;  %v3556_v1 = vld [vmem:[#allocation7_spill] sm:$0xff]  ;;  %v3557_v8 = vld [vmem:[#allocation8_spill] sm:$0xff]  ;;  %v3558_v16 = vld [vmem:[#allocation9_spill] sm:$0xff] }
  0x59   : > { %v493_v15 = vmax.f32 %v491_v9, %v492_v47  ;;  %v498_v11 = vsub.f32 %v3553_v17, %v2013_v48  ;;  %v499_v2 = vsub.f32 %v1673_v20, %v2017_v63  ;;  %v500_v37 = vsub.f32 %v1675_v21, %v2019_v30  ;;  %v3559_v32 = vld [vmem:[#allocation10_spill] sm:$0xff] }
  0x5a   : > { %v504_v49 = vsub.f32 %v3554_v46, %v2009_v18  ;;  %v505_v12 = vsub.f32 %v3555_v55, %v2011_v5  ;;  %v506_v31 = vsub.f32 %v3556_v1, %v2013_v48  ;;  %v507_v9 = vsub.f32 %v3557_v8, %v2017_v63  ;;  %v3562_v55 = vld [vmem:[#allocation17_spill] sm:$0xff]  ;;  %v3569_v1 = vld [vmem:[#allocation11_spill] sm:$0xff] }
  0x5b   : > { %v2049_v47 = vmax.f32 %v476_v43, %v477_v19  ;;  %v501_v46 = vsub.f32 %v1677_v22, %v2027_v13  ;;  %v2065_v19 = vmax.f32 %v493_v15, %v494_v34  ;;  %v568_v0 = vmul.f32 1.442695, %v496_v53 }
  0x5c   : > { %v570_v43 = vmul.f32 1.442695, %v497_v41  ;;  %v572_v4 = vmul.f32 1.442695, %v498_v11  ;;  %v574_v21 = vmul.f32 1.442695, %v499_v2 }
  0x5d   : > { %v502_v8 = vsub.f32 %v1682_v26, %v2049_v47  ;;  %v510_v17 = vsub.f32 %v1704_v40, %v2049_v47  ;;  %v503_v15 = vsub.f32 %v1684_v27, %v2065_v19  ;;  %v3563_v40 = vld [vmem:[#allocation18_spill] sm:$0xff]  ;;  %1425 = vpow2.f32 %v568_v0  ;;  %v3564_v41 = vld [vmem:[#allocation20_spill] sm:$0xff] }
  0x5e   : > { %v576_v53 = vmul.f32 1.442695, %v500_v37  ;;  %1427 = vpow2.f32 %v570_v43  ;;  %v578_v26 = vmul.f32 1.442695, %v501_v46  ;;  %v3567_v37 = vld [vmem:[#allocation25_spill] sm:$0xff]  ;;  %v511_v43 = vsub.f32 %v1709_v44, %v2065_v19  ;;  %v3568_v46 = vld [vmem:[#allocation26_spill] sm:$0xff] }
  0x5f   : > { %1429 = vpow2.f32 %v572_v4  ;;  %v580_v22 = vmul.f32 1.442695, %v502_v8  ;;  %v582_v11 = vmul.f32 1.442695, %v503_v15  ;;  %v584_v34 = vmul.f32 1.442695, %v504_v49 }
  0x60   : > { %1431 = vpow2.f32 %v574_v21  ;;  %v3570_v8 = vld [vmem:[#allocation16_spill] sm:$0xff]  ;;  %v586_v0 = vmul.f32 1.442695, %v505_v12  ;;  %v3572_v44 = vld [vmem:[#allocation27_spill] sm:$0xff]  ;;  %v588_v27 = vmul.f32 1.442695, %v506_v31  ;;  %v3577_v31 = vsub.f32 %v1700_v38, %v2019_v30 }
  0x61   : > { %1433 = vpow2.f32 %v576_v53  ;;  %v3574_v49 = vld [vmem:[#allocation28_spill] sm:$0xff]  ;;  %v590_v12 = vmul.f32 1.442695, %v507_v9  ;;  %v3580_v9 = vld [vmem:[#allocation33_spill] sm:$0xff]  ;;  %v3581_v21 = vsub.f32 %v1702_v39, %v2027_v13  ;;  %v3584_v38 = vld [vmem:[#allocation35_spill] sm:$0xff]  ;;  %v3593_v15 = vsub.f32 %v3559_v32, %v2011_v5 }
  0x62   : > { %1435 = vpow2.f32 %v578_v26  ;;  %v3586_v2 = vld [vmem:[#allocation36_spill] sm:$0xff]  ;;  %v598_v39 = vmul.f32 1.442695, %v511_v43  ;;  %v3592_v43 = vld [vmem:[#allocation41_spill] sm:$0xff] }
  0x63   : > { %v2121_v20 = vpop.eup %1425  ;;  %1437 = vpow2.f32 %v580_v22  ;;  %v592_v22 = vmul.f32 1.442695, %v3577_v31 }
  0x64   : > { %3571 = vst [vmem:[#allocation21_spill] sm:$0xff] %v2121_v20  ;;  %v2127_v53 = vpop.eup %1427  ;;  %1439 = vpow2.f32 %v582_v11 }
  0x65   : > { %3573 = vst [vmem:[#allocation22_spill] sm:$0xff] %v2127_v53  ;;  %v2133_v26 = vpop.eup %1429  ;;  %1441 = vpow2.f32 %v584_v34  ;;  %v3583_v34 = vld [vmem:[#allocation34_spill] sm:$0xff] }
  0x66   : > { %3575 = vst [vmem:[#allocation29_spill] sm:$0xff] %v2133_v26  ;;  %v2142_v53 = vpop.eup %1431  ;;  %1443 = vpow2.f32 %v586_v0  ;;  %v594_v26 = vmul.f32 1.442695, %v3581_v21  ;;  %v3597_v0 = vsub.f32 %v1718_v50, %v2013_v48  ;;  %v3601_v50 = vld [vmem:[#allocation45_spill] sm:$0xff] }
  0x67   : > { %3578 = vst [vmem:[#allocation30_spill] sm:$0xff] %v2142_v53  ;;  %v2151_v20 = vpop.eup %1433  ;;  %1445 = vpow2.f32 %v588_v27  ;;  %v596_v53 = vmul.f32 1.442695, %v510_v17  ;;  %v3589_v17 = vsub.f32 %v3558_v16, %v2009_v18  ;;  %v3596_v16 = vld [vmem:[#allocation43_spill] sm:$0xff] }
  0x68   : > { %3582 = vst [vmem:[#allocation37_spill] sm:$0xff] %v2151_v20  ;;  %v2157_v4 = vpop.eup %1435  ;;  %1447 = vpow2.f32 %v590_v12  ;;  %v3588_v20 = vld [vmem:[#allocation39_spill] sm:$0xff] }
  0x69   : > { %3585 = vst [vmem:[#allocation44_spill] sm:$0xff] %v2157_v4  ;;  %v2163_v21 = vpop.eup %1437  ;;  %1449 = vpow2.f32 %v592_v22  ;;  %v600_v27 = vmul.f32 1.442695, %v3589_v17  ;;  %v3595_v22 = vld [vmem:[#allocation42_spill] sm:$0xff] }
  0x6a   : > { %3587 = vst [vmem:[#allocation2_spill] sm:$0xff] %v2163_v21  ;;  %v2172_v4 = vpop.eup %1439  ;;  %1451 = vpow2.f32 %v594_v26  ;;  %v602_v21 = vmul.f32 1.442695, %v3593_v15  ;;  %v3599_v15 = vsub.f32 %v1720_v51, %v2017_v63  ;;  %v3602_v26 = vsub.f32 %v1722_v52, %v2019_v30  ;;  %v3604_v51 = vld [vmem:[#allocation46_spill] sm:$0xff]  ;;  %v3612_v52 = vld [vmem:[#allocation12_spill] sm:$0xff] }
  0x6b   : > { %3590 = vst [vmem:[#allocation3_spill] sm:$0xff] %v2172_v4  ;;  %v2181_v14 = vpop.eup %1441  ;;  %1453 = vpow2.f32 %v596_v53  ;;  %v604_v4 = vmul.f32 1.442695, %v3597_v0  ;;  %v3605_v53 = vsub.f32 %v1727_v56, %v2027_v13 }
  0x6c   : > { %3594 = vst [vmem:[#allocation4_spill] sm:$0xff] %v2181_v14  ;;  %v2190_v11 = vpop.eup %1443  ;;  %1455 = vpow2.f32 %v598_v39  ;;  %v606_v31 = vmul.f32 1.442695, %v3599_v15  ;;  %v608_v17 = vmul.f32 1.442695, %v3602_v26  ;;  %v3607_v26 = vsub.f32 %v1729_v57, %v2049_v47 }
  0x6d   : > { %3598 = vst [vmem:[#allocation5_spill] sm:$0xff] %v2190_v11  ;;  %v2199_v12 = vpop.eup %1445  ;;  %1457 = vpow2.f32 %v600_v27  ;;  %v610_v32 = vmul.f32 1.442695, %v3605_v53  ;;  %v3609_v53 = vsub.f32 %v3569_v1, %v2065_v19  ;;  %v3611_v57 = vsub.f32 %v1736_v62, %v2009_v18 }
  0x6e   : > { %3600 = vst [vmem:[#allocation6_spill] sm:$0xff] %v2199_v12  ;;  %v2208_v11 = vpop.eup %1447  ;;  %1459 = vpow2.f32 %v602_v21  ;;  %v612_v39 = vmul.f32 1.442695, %v3607_v26  ;;  %v3613_v21 = vsub.f32 %v3612_v52, %v2011_v5  ;;  %v3622_v52 = vsub.f32 %v1749_v6, %v2027_v13 }
  0x6f   : > { %3603 = vst [vmem:[#allocation7_spill] sm:$0xff] %v2208_v11  ;;  %v2217_v12 = vpop.eup %1449  ;;  %1461 = vpow2.f32 %v604_v4  ;;  %v614_v27 = vmul.f32 1.442695, %v3609_v53  ;;  %v616_v26 = vmul.f32 1.442695, %v3611_v57 }
  0x70   : > { %3606 = vst [vmem:[#allocation8_spill] sm:$0xff] %v2217_v12  ;;  %v2226_v0 = vpop.eup %1451  ;;  %1463 = vpow2.f32 %v606_v31  ;;  %v3615_v31 = vld [vmem:[#allocation13_spill] sm:$0xff] }
  0x71   : > { %3608 = vst [vmem:[#allocation9_spill] sm:$0xff] %v2226_v0  ;;  %v2235_v15 = vpop.eup %1453  ;;  %1465 = vpow2.f32 %v608_v17  ;;  %v618_v0 = vmul.f32 1.442695, %v3613_v21  ;;  %v3616_v1 = vsub.f32 %v3615_v31, %v2013_v48  ;;  %v3619_v17 = vld [vmem:[#allocation15_spill] sm:$0xff]  ;;  %v626_v21 = vmul.f32 1.442695, %v3622_v52 }
  0x72   : > { %3610 = vst [vmem:[#allocation10_spill] sm:$0xff] %v2235_v15  ;;  %v2245_v56 = vpop.eup %1455  ;;  %1467 = vpow2.f32 %v610_v32  ;;  %v3617_v15 = vld [vmem:[#allocation14_spill] sm:$0xff]  ;;  %v3620_v11 = vsub.f32 %v3619_v17, %v2019_v30  ;;  %v3623_v32 = vsub.f32 %v1754_v10, %v2049_v47  ;;  %v3627_v52 = vsub.f32 %v1765_v23, %v2013_v48 }
  0x73   : > { %3614 = vst [vmem:[#allocation17_spill] sm:$0xff] %v2245_v56  ;;  %v620_v53 = vmul.f32 1.442695, %v3616_v1  ;;  %v3618_v12 = vsub.f32 %v3617_v15, %v2017_v63  ;;  %v2256_v57 = vpop.eup %1457  ;;  %1469 = vpow2.f32 %v612_v39  ;;  %v3624_v1 = vsub.f32 %v3570_v8, %v2065_v19  ;;  %v3628_v8 = vld [vmem:[#allocation19_spill] sm:$0xff] }
  0x74   : > { %v624_v62 = vmul.f32 1.442695, %v3620_v11  ;;  %3621 = vst [vmem:[#allocation18_spill] sm:$0xff] %v2256_v57  ;;  %v628_v31 = vmul.f32 1.442695, %v3623_v32  ;;  %1471 = vpow2.f32 %v614_v27  ;;  %v3625_v11 = vsub.f32 %v3562_v55, %v2009_v18 }
  0x75   : > { %v622_v4 = vmul.f32 1.442695, %v3618_v12  ;;  %v630_v15 = vmul.f32 1.442695, %v3624_v1  ;;  %v2267_v12 = vpop.eup %1459  ;;  %v3626_v39 = vsub.f32 %v3563_v40, %v2011_v5  ;;  %v636_v10 = vmul.f32 1.442695, %v3627_v52 }
  0x76   : > { %v632_v17 = vmul.f32 1.442695, %v3625_v11  ;;  %v2278_v32 = vpop.eup %1461  ;;  %1473 = vpow2.f32 %v616_v26  ;;  %v3629_v1 = vsub.f32 %v3628_v8, %v2017_v63  ;;  %v3630_v27 = vsub.f32 %v3564_v41, %v2019_v30 }
  0x77   : > { %v634_v6 = vmul.f32 1.442695, %v3626_v39  ;;  %v3631_v11 = vsub.f32 %v1774_v35, %v2027_v13  ;;  %v2289_v39 = vpop.eup %1463  ;;  %1475 = vpow2.f32 %v618_v0  ;;  %v3633_v23 = vsub.f32 %v3538_v3, %v2049_v47 }
  0x78   : > { %v638_v56 = vmul.f32 1.442695, %v3629_v1  ;;  %v640_v55 = vmul.f32 1.442695, %v3630_v27  ;;  %3632 = vst [vmem:[#allocation20_spill] sm:$0xff] %v2289_v39  ;;  %v3634_v26 = vsub.f32 %v3543_v33, %v2065_v19  ;;  %v3635_v1 = vld [vmem:[#allocation23_spill] sm:$0xff]  ;;  %v2306_v35 = vpop.eup %1465  ;;  %1477 = vpow2.f32 %v620_v53 }
  0x79   : > { %v642_v40 = vmul.f32 1.442695, %v3631_v11  ;;  %v2294_v52 = vmul.f32 1.442695, %v3633_v23  ;;  %v3636_v41 = vsub.f32 %v3635_v1, %v2009_v18  ;;  %v3637_v11 = vld [vmem:[#allocation24_spill] sm:$0xff]  ;;  %v3639_v3 = vsub.f32 %v3567_v37, %v2013_v48  ;;  %v2323_v1 = vpop.eup %1467 }
  0x7a   : > { %v2299_v8 = vmul.f32 1.442695, %v3634_v26  ;;  %v3638_v0 = vsub.f32 %v3637_v11, %v2011_v5  ;;  %v3640_v33 = vsub.f32 %v3568_v46, %v2017_v63  ;;  %3641 = vst [vmem:[#allocation25_spill] sm:$0xff] %v2323_v1  ;;  %1479 = vpow2.f32 %v622_v4  ;;  %v2340_v46 = vpop.eup %1469 }
  0x7b   : > { %v2304_v27 = vmul.f32 1.442695, %v3636_v41  ;;  %v2316_v23 = vmul.f32 1.442695, %v3639_v3  ;;  %v3642_v53 = vsub.f32 %v3572_v44, %v2019_v30  ;;  %v3643_v11 = vsub.f32 %v3574_v49, %v2027_v13  ;;  %3645 = vst [vmem:[#allocation26_spill] sm:$0xff] %v2340_v46  ;;  %v3647_v44 = vld [vmem:[#allocation31_spill] sm:$0xff] }
  0x7c   : > { %v2311_v39 = vmul.f32 1.442695, %v3638_v0  ;;  %v2321_v26 = vmul.f32 1.442695, %v3640_v33  ;;  %v3644_v37 = vsub.f32 %v3544_v59, %v2049_v47  ;;  %1481 = vpow2.f32 %v624_v62  ;;  %v2357_v59 = vpop.eup %1471 }
  0x7d   : > { %v2328_v41 = vmul.f32 1.442695, %v3642_v53  ;;  %v2333_v0 = vmul.f32 1.442695, %v3643_v11  ;;  %v3646_v4 = vsub.f32 %v3547_v60, %v2065_v19  ;;  %v3648_v53 = vsub.f32 %v3647_v44, %v2009_v18  ;;  %3650 = vst [vmem:[#allocation11_spill] sm:$0xff] %v2357_v59 }
  0x7e   : > { %v2338_v3 = vmul.f32 1.442695, %v3644_v37  ;;  %v3649_v49 = vsub.f32 %v3579_v24, %v2011_v5  ;;  %1483 = vpow2.f32 %v626_v21  ;;  %v3651_v62 = vsub.f32 %v3580_v9, %v2013_v48  ;;  %v2374_v24 = vpop.eup %1473 }
  0x7f   : > { %v2345_v33 = vmul.f32 1.442695, %v3646_v4  ;;  %v2350_v1 = vmul.f32 1.442695, %v3648_v53  ;;  %v3652_v60 = vsub.f32 %v3583_v34, %v2017_v63  ;;  %v3653_v44 = vsub.f32 %v3584_v38, %v2019_v30  ;;  %v3656_v34 = vld [vmem:[#allocation38_spill] sm:$0xff]  ;;  %v2391_v38 = vpop.eup %1475 }
  0x80   : > { %v2355_v11 = vmul.f32 1.442695, %v3649_v49  ;;  %v2362_v37 = vmul.f32 1.442695, %v3651_v62  ;;  %1485 = vpow2.f32 %v628_v31  ;;  %v3654_v21 = vsub.f32 %v3586_v2, %v2027_v13  ;;  %3658 = vst [vmem:[#allocation16_spill] sm:$0xff] %v2391_v38  ;;  %v3660_v2 = vld [vmem:[#allocation40_spill] sm:$0xff] }
  0x81   : > { %v2367_v4 = vmul.f32 1.442695, %v3652_v60  ;;  %v2372_v53 = vmul.f32 1.442695, %v3653_v44  ;;  %v3655_v9 = vsub.f32 %v3548_v58, %v2049_v47  ;;  %v3657_v60 = vsub.f32 %v3656_v34, %v2065_v19  ;;  %v2408_v34 = vpop.eup %1477 }
  0x82   : > { %v2379_v49 = vmul.f32 1.442695, %v3654_v21  ;;  %1487 = vpow2.f32 %v630_v15  ;;  %v3659_v31 = vsub.f32 %v3588_v20, %v2009_v18  ;;  %v3661_v21 = vsub.f32 %v3660_v2, %v2011_v5  ;;  %3664 = vst [vmem:[#allocation28_spill] sm:$0xff] %v2408_v34  ;;  %v3667_v20 = vld [vmem:[#allocation21_spill] sm:$0xff] }
  0x83   : > { %v2384_v62 = vmul.f32 1.442695, %v3655_v9  ;;  %v2389_v59 = vmul.f32 1.442695, %v3657_v60  ;;  %v3662_v58 = vsub.f32 %v3592_v43, %v2013_v48  ;;  %1489 = vpow2.f32 %v632_v17 }
  0x84   : > { %v2396_v44 = vmul.f32 1.442695, %v3659_v31  ;;  %v2401_v46 = vmul.f32 1.442695, %v3661_v21  ;;  %v3665_v15 = vsub.f32 %v3595_v22, %v2017_v63  ;;  %v712_v31 = vsel %vm359_vm0, %v3667_v20, 0.0  ;;  %v2419_v21 = vpop.eup %1479 }
  0x85   : > { %v2406_v9 = vmul.f32 1.442695, %v3662_v58  ;;  %v713_v2 = vsel %vm359_vm0, %v2181_v14, 0.0  ;;  %1491 = vpow2.f32 %v634_v6  ;;  %v3668_v43 = vsub.f32 %v3596_v16, %v2019_v30  ;;  %v3672_v14 = vld [vmem:[#allocation5_spill] sm:$0xff] }
  0x86   : > { %v2413_v60 = vmul.f32 1.442695, %v3665_v15  ;;  %v714_v17 = vadd.f32 %v713_v2, %v712_v31  ;;  %v2428_v15 = vpop.eup %1481  ;;  %1493 = vpow2.f32 %v636_v10  ;;  %v3671_v20 = vsub.f32 %v1853_v42, %v2027_v13 }
  0x87   : > { %3663 = vst [vmem:[#allocation27_spill] sm:$0xff] %v2406_v9  ;;  %v2424_v58 = vmul.f32 1.442695, %v3668_v43  ;;  %v3669_v9 = vld [vmem:[#allocation22_spill] sm:$0xff]  ;;  %v715_v6 = vsel %vm359_vm0, %v2256_v57, 0.0  ;;  %v730_v16 = vsel %vm359_vm0, %v3672_v14, 0.0  ;;  %v2439_v43 = vpop.eup %1483  ;;  %1495 = vpow2.f32 %v638_v56 }
  0x88   : > { %3666 = vst [vmem:[#allocation32_spill] sm:$0xff] %v2413_v60  ;;  %v729_v22 = vsel %vm359_vm0, %v3669_v9, 0.0  ;;  %v2433_v60 = vmul.f32 1.442695, %v3671_v20  ;;  %v3674_v31 = vsub.f32 %v3550_v61, %v2049_v47  ;;  %v3675_v10 = vsub.f32 %v1996_v29, %v2065_v19  ;;  %v2456_v57 = vpop.eup %1485 }
  0x89   : > { %3670 = vst [vmem:[#allocation33_spill] sm:$0xff] %v2428_v15  ;;  %v3676_v20 = vsub.f32 %v3601_v50, %v2009_v18  ;;  %1497 = vpow2.f32 %v640_v55  ;;  %v3677_v56 = vsub.f32 %v1861_v36, %v2011_v5  ;;  %v3678_v61 = vsub.f32 %v3604_v51, %v2013_v48  ;;  %v3681_v51 = vld [vmem:[#allocation29_spill] sm:$0xff] }
  0x8a   : > { %3673 = vst [vmem:[#allocation34_spill] sm:$0xff] %v2439_v43  ;;  %v2444_v2 = vmul.f32 1.442695, %v3674_v31  ;;  %v2449_v42 = vmul.f32 1.442695, %v3675_v10  ;;  %v731_v29 = vadd.f32 %v730_v16, %v729_v22  ;;  %v2468_v10 = vpop.eup %1487  ;;  %1499 = vpow2.f32 %v642_v40  ;;  %v3682_v40 = vld [vmem:[#allocation6_spill] sm:$0xff] }
  0x8b   : > { %v2454_v9 = vmul.f32 1.442695, %v3676_v20  ;;  %v2461_v14 = vmul.f32 1.442695, %v3677_v56  ;;  %v2466_v31 = vmul.f32 1.442695, %v3678_v61  ;;  %v3679_v18 = vsub.f32 %v1869_v7, %v2017_v63  ;;  %v2477_v5 = vpop.eup %1489 }
  0x8c   : > { %v716_v55 = vadd.f32 %v715_v6, %v714_v17  ;;  %v732_v36 = vsel %vm359_vm0, %v2267_v12, 0.0  ;;  %3680 = vst [vmem:[#allocation35_spill] sm:$0xff] %v2477_v5  ;;  %1501 = vpow2.f32 %v2294_v52  ;;  %v717_v48 = vsel %vm359_vm0, %v2374_v24, 0.0  ;;  %v2486_v7 = vpop.eup %1491 }
  0x8d   : > { %v2473_v50 = vmul.f32 1.442695, %v3679_v18  ;;  %v746_v22 = vsel %vm359_vm0, %v3681_v51, 0.0  ;;  %v747_v16 = vsel %vm359_vm0, %v3682_v40, 0.0  ;;  %3683 = vst [vmem:[#allocation36_spill] sm:$0xff] %v2486_v7  ;;  %1503 = vpow2.f32 %v2299_v8  ;;  %v2496_v20 = vpop.eup %1493 }
  0x8e   : > { %v3684_v63 = vsub.f32 %v1873_v25, %v2019_v30  ;;  %v748_v6 = vadd.f32 %v747_v16, %v746_v22  ;;  %v749_v52 = vsel %vm359_vm0, %v2278_v32, 0.0  ;;  %3685 = vst [vmem:[#allocation39_spill] sm:$0xff] %v2496_v20  ;;  %1505 = vpow2.f32 %v2304_v27  ;;  %v2509_v30 = vpop.eup %1495 }
  0x8f   : > { %v3686_v56 = vsub.f32 %v1875_v45, %v2027_v13  ;;  %v3687_v8 = vsub.f32 %v2004_v28, %v2049_v47  ;;  %v733_v25 = vadd.f32 %v732_v36, %v731_v29  ;;  %3688 = vst [vmem:[#allocation41_spill] sm:$0xff] %v2509_v30  ;;  %1507 = vpow2.f32 %v2311_v39  ;;  %v2519_v13 = vpop.eup %1497  ;;  %v3691_v47 = vld [vmem:[#allocation30_spill] sm:$0xff]  ;;  %v3692_v36 = vld [vmem:[#allocation7_spill] sm:$0xff] }
  0x90   : > { %v2492_v17 = vmul.f32 1.442695, %v3684_v63  ;;  %v3689_v22 = vsub.f32 %v2006_v54, %v2065_v19  ;;  %v718_v27 = vadd.f32 %v717_v48, %v716_v55  ;;  %v734_v45 = vsel %vm359_vm0, %v2391_v38, 0.0  ;;  %3690 = vst [vmem:[#allocation42_spill] sm:$0xff] %v2519_v13  ;;  %v2526_v63 = vpop.eup %1499  ;;  %v3694_v55 = vld [vmem:[#allocation20_spill] sm:$0xff] }
  0x91   : > { %v2502_v61 = vmul.f32 1.442695, %v3686_v56  ;;  %v2507_v18 = vmul.f32 1.442695, %v3687_v8  ;;  %1509 = vpow2.f32 %v2316_v23  ;;  %v750_v28 = vadd.f32 %v749_v52, %v748_v6  ;;  %3693 = vst [vmem:[#allocation43_spill] sm:$0xff] %v2526_v63  ;;  %v3695_v6 = vld [vmem:[#allocation37_spill] sm:$0xff] }
  0x92   : > { %v2515_v16 = vmul.f32 1.442695, %v3689_v22  ;;  %v763_v29 = vsel %vm359_vm0, %v3691_v47, 0.0  ;;  %v764_v39 = vsel %vm359_vm0, %v3692_v36, 0.0  ;;  %1511 = vpow2.f32 %v2321_v26  ;;  %v2533_v56 = vpop.eup %1501  ;;  %v3696_v8 = vld [vmem:[#allocation8_spill] sm:$0xff] }
  0x93   : > { %v751_v54 = vsel %vm359_vm0, %v2408_v34, 0.0  ;;  %v765_v19 = vadd.f32 %v764_v39, %v763_v29  ;;  %v766_v48 = vsel %vm359_vm0, %v3694_v55, 0.0  ;;  %1513 = vpow2.f32 %v2328_v41  ;;  %v2540_v38 = vpop.eup %1503 }
  0x94   : > { %v735_v23 = vadd.f32 %v734_v45, %v733_v25  ;;  %v780_v52 = vsel %vm359_vm0, %v3695_v6, 0.0  ;;  %v781_v22 = vsel %vm359_vm0, %v3696_v8, 0.0  ;;  %1515 = vpow2.f32 %v2333_v0  ;;  %v2547_v34 = vpop.eup %1505 }
  0x95   : > { %v719_v26 = vsel %vm359_vm0, %v2477_v5, 0.0  ;;  %v736_v29 = vsel %vm359_vm0, %v2486_v7, 0.0  ;;  %v782_v39 = vadd.f32 %v781_v22, %v780_v52  ;;  %3697 = vst [vmem:[#allocation45_spill] sm:$0xff] %v2547_v34  ;;  %1517 = vpow2.f32 %v2338_v3  ;;  %v2552_v8 = vpop.eup %1507 }
  0x96   : > { %v752_v41 = vadd.f32 %v751_v54, %v750_v28  ;;  %v767_v25 = vadd.f32 %v766_v48, %v765_v19  ;;  %v783_v45 = vsel %vm359_vm0, %v2306_v35, 0.0  ;;  %3698 = vst [vmem:[#allocation46_spill] sm:$0xff] %v2552_v8  ;;  %1519 = vpow2.f32 %v2345_v33 }
  0x97   : > { %v753_v0 = vsel %vm359_vm0, %v2496_v20, 0.0  ;;  %v768_v7 = vsel %vm359_vm0, %v2419_v21, 0.0  ;;  %v784_v52 = vadd.f32 %v783_v45, %v782_v39  ;;  %v2559_v22 = vpop.eup %1509  ;;  %1521 = vpow2.f32 %v2350_v1  ;;  %v3701_v39 = vld [vmem:[#allocation44_spill] sm:$0xff] }
  0x98   : > { %3699 = vst [vmem:[#allocation12_spill] sm:$0xff] %v2559_v22  ;;  %v720_v3 = vadd.f32 %v719_v26, %v718_v27  ;;  %v737_v28 = vadd.f32 %v736_v29, %v735_v23  ;;  %v785_v54 = vsel %vm359_vm0, %v2428_v15, 0.0  ;;  %v2564_v19 = vpop.eup %1511  ;;  %1523 = vpow2.f32 %v2355_v11 }
  0x99   : > { %3700 = vst [vmem:[#allocation13_spill] sm:$0xff] %v2564_v19  ;;  %v721_v33 = vsel %vm359_vm0, %v2547_v34, 0.0  ;;  %v770_v48 = vsel %vm359_vm0, %v2509_v30, 0.0  ;;  %v797_v45 = vsel %vm359_vm0, %v3701_v39, 0.0  ;;  %v2573_v20 = vpop.eup %1513  ;;  %1525 = vpow2.f32 %v2362_v37  ;;  %v3703_v34 = vld [vmem:[#allocation9_spill] sm:$0xff] }
  0x9a   : > { %3702 = vst [vmem:[#allocation14_spill] sm:$0xff] %v2573_v20  ;;  %v738_v1 = vsel %vm359_vm0, %v2552_v8, 0.0  ;;  %v754_v27 = vadd.f32 %v753_v0, %v752_v41  ;;  %v769_v23 = vadd.f32 %v768_v7, %v767_v25  ;;  %v2578_v26 = vpop.eup %1515  ;;  %1527 = vpow2.f32 %v2367_v4  ;;  %v3704_v8 = vld [vmem:[#allocation25_spill] sm:$0xff] }
  0x9b   : > { %v786_v11 = vadd.f32 %v785_v54, %v784_v52  ;;  %v787_v29 = vsel %vm359_vm0, %v2519_v13, 0.0  ;;  %v798_v30 = vsel %vm359_vm0, %v3703_v34, 0.0  ;;  %v2585_v5 = vpop.eup %1517  ;;  %1529 = vpow2.f32 %v2372_v53 }
  0x9c   : > { %v722_v37 = vadd.f32 %v721_v33, %v720_v3  ;;  %v799_v15 = vadd.f32 %v798_v30, %v797_v45  ;;  %v800_v7 = vsel %vm359_vm0, %v3704_v8, 0.0  ;;  %v2590_v41 = vpop.eup %1519  ;;  %1531 = vpow2.f32 %v2379_v49  ;;  %v3706_v3 = vld [vmem:[#allocation2_spill] sm:$0xff] }
  0x9d   : > { %v739_v4 = vadd.f32 %v738_v1, %v737_v28  ;;  %v755_v25 = vsel %vm359_vm0, %v2559_v22, 0.0  ;;  %v802_v0 = vsel %vm359_vm0, %v2439_v43, 0.0  ;;  %v2597_v52 = vpop.eup %1521  ;;  %1533 = vpow2.f32 %v2384_v62  ;;  %v3707_v45 = vld [vmem:[#allocation10_spill] sm:$0xff]  ;;  %v3711_v43 = vld [vmem:[#allocation32_spill] sm:$0xff] }
  0x9e   : > { %3705 = vst [vmem:[#allocation15_spill] sm:$0xff] %v2597_v52  ;;  %v771_v53 = vadd.f32 %v770_v48, %v769_v23  ;;  %v801_v30 = vadd.f32 %v800_v7, %v799_v15  ;;  %v814_v54 = vsel %vm359_vm0, %v3706_v3, 0.0  ;;  %v2602_v33 = vpop.eup %1523  ;;  %1535 = vpow2.f32 %v2389_v59  ;;  %v3708_v48 = vld [vmem:[#allocation26_spill] sm:$0xff] }
  0x9f   : > { %v772_v49 = vsel %vm359_vm0, %v2564_v19, 0.0  ;;  %v788_v28 = vadd.f32 %v787_v29, %v786_v11  ;;  %v815_v1 = vsel %vm359_vm0, %v3707_v45, 0.0  ;;  %v2609_v22 = vpop.eup %1525  ;;  %1537 = vpow2.f32 %v2396_v44  ;;  %v3709_v44 = vld [vmem:[#allocation27_spill] sm:$0xff] }
  0xa0   : > { %v803_v62 = vadd.f32 %v802_v0, %v801_v30  ;;  %v804_v15 = vsel %vm359_vm0, %v2526_v63, 0.0  ;;  %v817_v23 = vsel %vm359_vm0, %v3708_v48, 0.0  ;;  %v2616_v7 = vpop.eup %1527  ;;  %1539 = vpow2.f32 %v2401_v46 }
  0xa1   : > { %v723_v59 = vsel %vm359_vm0, %v2597_v52, 0.0  ;;  %v789_v11 = vsel %vm359_vm0, %v2573_v20, 0.0  ;;  %v816_v29 = vadd.f32 %v815_v1, %v814_v54  ;;  %v2623_v19 = vpop.eup %1529  ;;  %1541 = vpow2.f32 %v3709_v44 }
  0xa2   : > { %v740_v0 = vsel %vm359_vm0, %v2602_v33, 0.0  ;;  %v756_v30 = vadd.f32 %v755_v25, %v754_v27  ;;  %v773_v63 = vadd.f32 %v772_v49, %v771_v53  ;;  %v2628_v13 = vpop.eup %1531  ;;  %1543 = vpow2.f32 %v3711_v43 }
  0xa3   : > { %3710 = vst [vmem:[#allocation19_spill] sm:$0xff] %v2628_v13  ;;  %v757_v46 = vsel %vm359_vm0, %v2609_v22, 0.0  ;;  %v805_v52 = vadd.f32 %v804_v15, %v803_v62  ;;  %v818_v48 = vadd.f32 %v817_v23, %v816_v29  ;;  %v2633_v20 = vpop.eup %1533  ;;  %1545 = vpow2.f32 %v2424_v58  ;;  %v3715_v23 = vld [vmem:[#allocation17_spill] sm:$0xff] }
  0xa4   : > { %v724_v54 = vadd.f32 %v723_v59, %v722_v37  ;;  %v790_v1 = vadd.f32 %v789_v11, %v788_v28  ;;  %v806_v44 = vsel %vm359_vm0, %v2578_v26, 0.0  ;;  %v2638_v27 = vpop.eup %1535  ;;  %1547 = vpow2.f32 %v2433_v60 }
  0xa5   : > { %v741_v25 = vadd.f32 %v740_v0, %v739_v4  ;;  %v819_v43 = vsel %vm359_vm0, %v2456_v57, 0.0  ;;  %v821_v53 = vsel %vm359_vm0, %v2533_v56, 0.0  ;;  %v2645_v49 = vpop.eup %1537  ;;  %1549 = vpow2.f32 %v2444_v2  ;;  %v3714_v4 = vld [vmem:[#allocation3_spill] sm:$0xff] }
  0xa6   : > { %3712 = vst [vmem:[#allocation23_spill] sm:$0xff] %v2645_v49  ;;  %v758_v58 = vadd.f32 %v757_v46, %v756_v30  ;;  %v774_v37 = vsel %vm359_vm0, %v2616_v7, 0.0  ;;  %v820_v28 = vadd.f32 %v819_v43, %v818_v48  ;;  %v2650_v62 = vpop.eup %1539  ;;  %1551 = vpow2.f32 %v2449_v42 }
  0xa7   : > { %3713 = vst [vmem:[#allocation24_spill] sm:$0xff] %v2650_v62  ;;  %v807_v60 = vadd.f32 %v806_v44, %v805_v52  ;;  %v831_v15 = vsel %vm359_vm0, %v3714_v4, 0.0  ;;  %v832_v59 = vsel %vm359_vm0, %v3715_v23, 0.0  ;;  %v2657_v11 = vpop.eup %1541  ;;  %1553 = vpow2.f32 %v2454_v9 }
  0xa8   : > { %3716 = vst [vmem:[#allocation31_spill] sm:$0xff] %v2657_v11  ;;  %v791_v2 = vsel %vm359_vm0, %v2623_v19, 0.0  ;;  %v808_v48 = vsel %vm359_vm0, %v2628_v13, 0.0  ;;  %v822_v29 = vadd.f32 %v821_v53, %v820_v28  ;;  %v2664_v0 = vpop.eup %1543  ;;  %1555 = vpow2.f32 %v2461_v14 }
  0xa9   : > { %v725_v42 = vsel %vm359_vm0, %v2645_v49, 0.0  ;;  %v823_v52 = vsel %vm359_vm0, %v2585_v5, 0.0  ;;  %v833_v30 = vadd.f32 %v832_v59, %v831_v15  ;;  %v2671_v46 = vpop.eup %1545  ;;  %1557 = vpow2.f32 %v2466_v31  ;;  %v3718_v49 = vld [vmem:[#allocation11_spill] sm:$0xff] }
  0xaa   : > { %v742_v9 = vsel %vm359_vm0, %v2650_v62, 0.0  ;;  %v759_v44 = vsel %vm359_vm0, %v2657_v11, 0.0  ;;  %v775_v43 = vadd.f32 %v774_v37, %v773_v63  ;;  %v2678_v53 = vpop.eup %1547  ;;  %1559 = vpow2.f32 %v2473_v50 }
  0xab   : > { %3717 = vst [vmem:[#allocation38_spill] sm:$0xff] %v2678_v53  ;;  %v792_v14 = vadd.f32 %v791_v2, %v790_v1  ;;  %v809_v28 = vadd.f32 %v808_v48, %v807_v60  ;;  %v834_v15 = vsel %vm359_vm0, %v3718_v49, 0.0  ;;  %v2683_v59 = vpop.eup %1549  ;;  %1561 = vpow2.f32 %v2492_v17 }
  0xac   : > { %3719 = vst [vmem:[#allocation40_spill] sm:$0xff] %v2683_v59  ;;  %v726_v31 = vadd.f32 %v725_v42, %v724_v54  ;;  %v824_v13 = vadd.f32 %v823_v52, %v822_v29  ;;  %v825_v62 = vsel %vm359_vm0, %v2633_v20, 0.0  ;;  %v2688_v11 = vpop.eup %1551  ;;  %1563 = vpow2.f32 %v2502_v61 }
  0xad   : > { %v743_v50 = vadd.f32 %v742_v9, %v741_v25  ;;  %v760_v63 = vadd.f32 %v759_v44, %v758_v58  ;;  %v835_v1 = vadd.f32 %v834_v15, %v833_v30  ;;  %v2691_v37 = vpop.eup %1553  ;;  %1565 = vpow2.f32 %v2507_v18 }
  0xae   : > { %3720 = vst [vmem:[#allocation29_spill] sm:$0xff] %v2691_v37  ;;  %v776_v17 = vsel %vm359_vm0, %v2664_v0, 0.0  ;;  %v836_v54 = vsel %vm359_vm0, %v2468_v10, 0.0  ;;  %v838_v60 = vsel %vm359_vm0, %v2540_v38, 0.0  ;;  %v2700_v2 = vpop.eup %1555  ;;  %1567 = vpow2.f32 %v2515_v16 }
  0xaf   : > { %3721 = vst [vmem:[#allocation6_spill] sm:$0xff] %v2700_v2  ;;  %v727_v61 = vsel %vm359_vm0, %v2691_v37, 0.0  ;;  %v793_v25 = vsel %vm359_vm0, %v2671_v46, 0.0  ;;  %v837_v18 = vadd.f32 %v836_v54, %v835_v1  ;;  %v2707_v58 = vpop.eup %1557  ;;  %v744_v48 = vsel %vm359_vm0, %v2700_v2, 0.0 }
  0xb0   : > { %3722 = vst [vmem:[#allocation30_spill] sm:$0xff] %v2707_v58  ;;  %v810_v29 = vsel %vm359_vm0, %v2678_v53, 0.0  ;;  %v826_v42 = vadd.f32 %v825_v62, %v824_v13  ;;  %v840_v16 = vsel %vm359_vm0, %v2590_v41, 0.0  ;;  %v2716_v52 = vpop.eup %1559  ;;  %v761_v30 = vsel %vm359_vm0, %v2707_v58, 0.0 }
  0xb1   : > { %v777_v9 = vadd.f32 %v776_v17, %v775_v43  ;;  %v827_v44 = vsel %vm359_vm0, %v2683_v59, 0.0  ;;  %v839_v15 = vadd.f32 %v838_v60, %v837_v18  ;;  %v2722_v1 = vpop.eup %1561  ;;  %v728_v54 = vadd.f32 %v727_v61, %v726_v31 }
  0xb2   : > { %v778_v2 = vsel %vm359_vm0, %v2716_v52, 0.0  ;;  %v794_v13 = vadd.f32 %v793_v25, %v792_v14  ;;  %v842_v62 = vsel %vm359_vm0, %v2638_v27, 0.0  ;;  %v2728_v37 = vpop.eup %1563  ;;  %v745_v53 = vadd.f32 %v744_v48, %v743_v50 }
  0xb3   : > { %v795_v43 = vsel %vm359_vm0, %v2722_v1, 0.0  ;;  %v811_v17 = vadd.f32 %v810_v29, %v809_v28  ;;  %v841_v58 = vadd.f32 %v840_v16, %v839_v15  ;;  %v2732_v59 = vpop.eup %1565  ;;  %v762_v14 = vadd.f32 %v761_v30, %v760_v63  ;;  %v350_v29 = vld [vmem:[%s2737_s20] sm:$0x3]  ;;  %v351_v30 = vld [vmem:[%s2737_s20 + $0x2] sm:$0x3] }
  0xb4   : > { %v812_v31 = vsel %vm359_vm0, %v2728_v37, 0.0  ;;  %v828_v60 = vadd.f32 %v827_v44, %v826_v42  ;;  %v844_v50 = vsel %vm359_vm0, %v2688_v11, 0.0  ;;  %v2743_v61 = vpop.eup %1567  ;;  %v779_v28 = vadd.f32 %v778_v2, %v777_v9 }
  0xb5   : > { %v829_v25 = vsel %vm359_vm0, %v2732_v59, 0.0  ;;  %v843_v18 = vadd.f32 %v842_v62, %v841_v58  ;;  %v796_v48 = vadd.f32 %v795_v43, %v794_v13  ;;  %1569 = vrcp.f32 %v728_v54  ;;  %v2754_v54 = vld [vmem:[%s2737_s20 + $0x4] sm:$0x3] }
  0xb6   : > { %v813_v16 = vadd.f32 %v812_v31, %v811_v17  ;;  %1571 = vrcp.f32 %v745_v53  ;;  %v830_v15 = vadd.f32 %v829_v25, %v828_v60  ;;  %v846_v42 = vsel %vm359_vm0, %v2743_v61, 0.0  ;;  %v3731_v60 = vld [vmem:[#allocation16_spill] sm:$0xff] }
  0xb7   : > { %v845_v63 = vadd.f32 %v844_v50, %v843_v18  ;;  %1573 = vrcp.f32 %v762_v14  ;;  %v929_v2 = vrot.slane %v350_v29, 1  ;;  %v967_v44 = vrot.slane %v351_v30, 1  ;;  %v3724_v18 = vld [vmem:[#allocation4_spill] sm:$0xff] }
  0xb8   : > { %1575 = vrcp.f32 %v779_v28  ;;  %v2760_v62 = vperm.slane %v350_v29, 0  ;;  %v2766_v14 = vperm.slane %v351_v30, 0  ;;  %v3723_v28 = vld [vmem:[#allocation21_spill] sm:$0xff]  ;;  %v3725_v29 = vld [vmem:[#allocation18_spill] sm:$0xff] }
  0xb9   : > { %1577 = vrcp.f32 %v796_v48  ;;  %v847_v9 = vadd.f32 %v846_v42, %v845_v63  ;;  %v2762_v43 = vperm.slane %v929_v2, 0  ;;  %v2768_v31 = vperm.slane %v967_v44, 0  ;;  %v3727_v2 = vld [vmem:[#allocation5_spill] sm:$0xff] }
  0xba   : > { %1579 = vrcp.f32 %v813_v16  ;;  %v2786_v63 = vperm.slane %v2754_v54, 0 }
  0xbb   : > { %v2751_v58 = vpop.eup %1569  ;;  %1581 = vrcp.f32 %v830_v15  ;;  %v3726_v15 = vld [vmem:[#allocation22_spill] sm:$0xff] }
  0xbc   : > { %v2756_v13 = vpop.eup %1571  ;;  %1583 = vrcp.f32 %v847_v9  ;;  %v2775_v25 = vmul.f32 %v2751_v58, %v3723_v28  ;;  %v2779_v48 = vmul.f32 %v2751_v58, %v3724_v18  ;;  %v2783_v16 = vmul.f32 %v2751_v58, %v3725_v29 }
  0xbd   : > { %v2758_v53 = vpop.eup %1573  ;;  %v2792_v42 = vmul.f32 %v2756_v13, %v3726_v15  ;;  %v2796_v9 = vmul.f32 %v2756_v13, %v3727_v2  ;;  %v2800_v44 = vmul.f32 %v2756_v13, %v2267_v12  ;;  %v2804_v28 = vmul.f32 %v2751_v58, %v2374_v24 }
  0xbe   : > { %v2764_v17 = vpop.eup %1575  ;;  %v2810_v29 = vmul.f32 %v2758_v53, %v3681_v51  ;;  %v2818_v2 = vmul.f32 %v2758_v53, %v3682_v40  ;;  %v2822_v12 = vmul.f32 %v2758_v53, %v2278_v32  ;;  %v2838_v40 = vmul.f32 %v2756_v13, %v3731_v60 }
  0xbf   : > { %v2771_v50 = vpop.eup %1577  ;;  %3728 = vst [vmem:[#allocation7_spill] sm:$0xff] %v2804_v28  ;;  %v2814_v15 = vmul.f32 %v2764_v17, %v3691_v47  ;;  %v2830_v51 = vmul.f32 %v2764_v17, %v3692_v36  ;;  %v2834_v47 = vmul.f32 %v2764_v17, %v3694_v55  ;;  %v3733_v28 = vld [vmem:[#allocation8_spill] sm:$0xff] }
  0xc0   : > { %v2788_v30 = vpop.eup %1579  ;;  %3729 = vst [vmem:[#allocation20_spill] sm:$0xff] %v2822_v12  ;;  %v2826_v24 = vmul.f32 %v2771_v50, %v3695_v6  ;;  %v2846_v6 = vmul.f32 %v2771_v50, %v3733_v28  ;;  %v2850_v36 = vmul.f32 %v2771_v50, %v2306_v35  ;;  %v3735_v12 = vld [vmem:[#allocation28_spill] sm:$0xff]  ;;  %v2870_v35 = vmul.f32 %v2764_v17, %v2419_v21 }
  0xc1   : > { %v2806_v18 = vpop.eup %1581  ;;  %3730 = vst [vmem:[#allocation37_spill] sm:$0xff] %v2834_v47  ;;  %v2842_v32 = vmul.f32 %v2788_v30, %v3701_v39  ;;  %v2854_v55 = vmul.f32 %v2758_v53, %v3735_v12  ;;  %v2862_v39 = vmul.f32 %v2788_v30, %v3703_v34  ;;  %v2866_v28 = vmul.f32 %v2788_v30, %v3704_v8 }
  0xc2   : > { %3732 = vst [vmem:[#allocation44_spill] sm:$0xff] %v2838_v40  ;;  %v1584_v47 = vpop.eup %1583  ;;  %v2858_v60 = vmul.f32 %v2806_v18, %v3706_v3  ;;  %v2874_v12 = vmul.f32 %v2806_v18, %v3707_v45  ;;  %v3741_v40 = vld [vmem:[#allocation33_spill] sm:$0xff]  ;;  %v2890_v21 = vmul.f32 %v2806_v18, %v2456_v57  ;;  %v3753_v57 = vld [vmem:[#allocation42_spill] sm:$0xff] }
  0xc3   : > { %3734 = vst [vmem:[#allocation9_spill] sm:$0xff] %v2850_v36  ;;  %v2882_v34 = vmul.f32 %v2771_v50, %v3741_v40  ;;  %v3743_v36 = vld [vmem:[#allocation34_spill] sm:$0xff] }
  0xc4   : > { %3736 = vst [vmem:[#allocation25_spill] sm:$0xff] %v2854_v55  ;;  %v3739_v55 = vld [vmem:[#allocation26_spill] sm:$0xff]  ;;  %v2886_v8 = vmul.f32 %v2788_v30, %v3743_v36  ;;  %v3751_v36 = vld [vmem:[#allocation41_spill] sm:$0xff] }
  0xc5   : > { %3737 = vst [vmem:[#allocation2_spill] sm:$0xff] %v2866_v28  ;;  %v2878_v3 = vmul.f32 %v2806_v18, %v3739_v55  ;;  %v3748_v28 = vld [vmem:[#allocation36_spill] sm:$0xff] }
  0xc6   : > { %3738 = vst [vmem:[#allocation10_spill] sm:$0xff] %v2870_v35  ;;  %v3746_v35 = vld [vmem:[#allocation35_spill] sm:$0xff]  ;;  %v2898_v55 = vmul.f32 %v2756_v13, %v3748_v28  ;;  %v2918_v28 = vmul.f32 %v1584_v47, %v3715_v23 }
  0xc7   : > { %3740 = vst [vmem:[#allocation27_spill] sm:$0xff] %v2878_v3  ;;  %v2894_v45 = vmul.f32 %v2751_v58, %v3746_v35  ;;  %v3749_v3 = vld [vmem:[#allocation39_spill] sm:$0xff] }
  0xc8   : > { %3742 = vst [vmem:[#allocation32_spill] sm:$0xff] %v2882_v34  ;;  %v2902_v40 = vmul.f32 %v2758_v53, %v3749_v3  ;;  %v863_v34 = vmul.f32 %v1584_v47, %v3714_v4  ;;  %v3755_v35 = vld [vmem:[#allocation43_spill] sm:$0xff]  ;;  %v2921_v3 = vmul.f32 %v1584_v47, %v3718_v49  ;;  %v2924_v4 = vmul.f32 %v1584_v47, %v2468_v10  ;;  %v3760_v49 = vld [vmem:[#allocation12_spill] sm:$0xff]  ;;  %v3762_v10 = vld [vmem:[#allocation13_spill] sm:$0xff] }
  0xc9   : > { %3744 = vst [vmem:[#allocation3_spill] sm:$0xff] %v2886_v8  ;;  %v2907_v8 = vmul.f32 %v2764_v17, %v3751_v36  ;;  %v2928_v36 = vmul.f32 %v2806_v18, %v2533_v56  ;;  %v3763_v56 = vld [vmem:[#allocation14_spill] sm:$0xff] }
  0xca   : > { %3745 = vst [vmem:[#allocation17_spill] sm:$0xff] %v2890_v21  ;;  %v2911_v21 = vmul.f32 %v2771_v50, %v3753_v57  ;;  %v2931_v57 = vmul.f32 %v1584_v47, %v2540_v38  ;;  %v2951_v38 = vmul.f32 %v2771_v50, %v3763_v56  ;;  %v2974_v56 = vmul.f32 %v2758_v53, %v2609_v22  ;;  %v3776_v22 = vld [vmem:[#allocation23_spill] sm:$0xff] }
  0xcb   : > { %3747 = vst [vmem:[#allocation11_spill] sm:$0xff] %v2894_v45  ;;  %v2915_v45 = vmul.f32 %v2788_v30, %v3755_v35 }
  0xcc   : > { %3750 = vst [vmem:[#allocation21_spill] sm:$0xff] %v2902_v40  ;;  %v2947_v40 = vmul.f32 %v2764_v17, %v3762_v10  ;;  %v2970_v10 = vmul.f32 %v2756_v13, %v2602_v33  ;;  %v2990_v33 = vmul.f32 %v2806_v18, %v2633_v20  ;;  %v3013_v20 = vmul.f32 %v2771_v50, %v2671_v46  ;;  %v3793_v46 = vld [vmem:[#allocation30_spill] sm:$0xff] }
  0xcd   : > { %3752 = vst [vmem:[#allocation4_spill] sm:$0xff] %v2907_v8  ;;  %v2943_v8 = vmul.f32 %v2758_v53, %v3760_v49  ;;  %v3766_v49 = vld [vmem:[#allocation15_spill] sm:$0xff] }
  0xce   : > { %3754 = vst [vmem:[#allocation18_spill] sm:$0xff] %v2911_v21  ;;  %v3757_v21 = vld [vmem:[#allocation45_spill] sm:$0xff] }
  0xcf   : > { %3756 = vst [vmem:[#allocation22_spill] sm:$0xff] %v2915_v45  ;;  %v2935_v35 = vmul.f32 %v2751_v58, %v3757_v21  ;;  %v3758_v45 = vld [vmem:[#allocation46_spill] sm:$0xff]  ;;  %v2955_v21 = vmul.f32 %v2788_v30, %v2578_v26  ;;  %v2978_v26 = vmul.f32 %v2764_v17, %v2616_v7  ;;  %v3778_v7 = vld [vmem:[#allocation24_spill] sm:$0xff] }
  0xd0   : > { %v2939_v23 = vmul.f32 %v2756_v13, %v3758_v45  ;;  %3761 = vst [vmem:[#allocation16_spill] sm:$0xff] %v2943_v8  ;;  %v2959_v45 = vmul.f32 %v2806_v18, %v2585_v5  ;;  %v2966_v8 = vmul.f32 %v2751_v58, %v3766_v49  ;;  %v2982_v5 = vmul.f32 %v2771_v50, %v2623_v19  ;;  %v3780_v19 = vld [vmem:[#allocation31_spill] sm:$0xff] }
  0xd1   : > { %3768 = vst [vmem:[#allocation33_spill] sm:$0xff] %v2970_v10  ;;  %v2993_v10 = vmul.f32 %v1584_v47, %v2638_v27  ;;  %v3784_v27 = vld [vmem:[#allocation38_spill] sm:$0xff] }
  0xd2   : > { %3759 = vst [vmem:[#allocation5_spill] sm:$0xff] %v2939_v23  ;;  %v2962_v23 = vmul.f32 %v1584_v47, %v2590_v41  ;;  %v3772_v41 = vld [vmem:[#allocation19_spill] sm:$0xff] }
  0xd3   : > { %3764 = vst [vmem:[#allocation8_spill] sm:$0xff] %v2959_v45  ;;  %v2986_v49 = vmul.f32 %v2788_v30, %v3772_v41  ;;  %v3009_v41 = vmul.f32 %v2764_v17, %v2664_v0  ;;  %v3791_v0 = vld [vmem:[#allocation6_spill] sm:$0xff] }
  0xd4   : > { %3765 = vst [vmem:[#allocation28_spill] sm:$0xff] %v2962_v23 }
  0xd5   : > { %3767 = vst [vmem:[#allocation26_spill] sm:$0xff] %v2966_v8 }
  0xd6   : > { %3769 = vst [vmem:[#allocation34_spill] sm:$0xff] %v2974_v56  ;;  %v2997_v56 = vmul.f32 %v2751_v58, %v3776_v22  ;;  %v3017_v22 = vmul.f32 %v2788_v30, %v3784_v27  ;;  %v3040_v27 = vmul.f32 %v2764_v17, %v2716_v52  ;;  %v935_v52 = vmul.f32 %v2760_v62, %v2792_v42 }
  0xd7   : > { %3770 = vst [vmem:[#allocation35_spill] sm:$0xff] %v2978_v26  ;;  %v3001_v26 = vmul.f32 %v2756_v13, %v3778_v7  ;;  %v938_v17 = vmul.f32 %v2760_v62, %v2826_v24 }
  0xd8   : > { %3771 = vst [vmem:[#allocation36_spill] sm:$0xff] %v2982_v5  ;;  %v3005_v5 = vmul.f32 %v2758_v53, %v3780_v19  ;;  %v3789_v19 = vld [vmem:[#allocation29_spill] sm:$0xff] }
  0xd9   : > { %3773 = vst [vmem:[#allocation39_spill] sm:$0xff] %v2986_v49 }
  0xda   : > { %3774 = vst [vmem:[#allocation41_spill] sm:$0xff] %v2990_v33  ;;  %v3800_v33 = vrot.slane %v2754_v54, 1 }
  0xdb   : > { %3775 = vst [vmem:[#allocation42_spill] sm:$0xff] %v2993_v10 }
  0xdc   : > { %3777 = vst [vmem:[#allocation43_spill] sm:$0xff] %v2997_v56  ;;  %v3786_v56 = vld [vmem:[#allocation40_spill] sm:$0xff] }
  0xdd   : > { %3779 = vst [vmem:[#allocation45_spill] sm:$0xff] %v3001_v26  ;;  %v3021_v7 = vmul.f32 %v2806_v18, %v3786_v56  ;;  %v3024_v26 = vmul.f32 %v1584_v47, %v2688_v11  ;;  %v3044_v11 = vmul.f32 %v2771_v50, %v2722_v1  ;;  %v3055_v56 = vmul.f32 %v1584_v47, %v2743_v61 }
  0xde   : > { %3781 = vst [vmem:[#allocation46_spill] sm:$0xff] %v3005_v5  ;;  %v3028_v5 = vmul.f32 %v2751_v58, %v3789_v19  ;;  %v3048_v58 = vmul.f32 %v2788_v30, %v2728_v37  ;;  %v936_v1 = vmul.f32 %v2760_v62, %v2810_v29  ;;  %v937_v37 = vmul.f32 %v2760_v62, %v2814_v15 }
  0xdf   : > { %3782 = vst [vmem:[#allocation12_spill] sm:$0xff] %v3009_v41  ;;  %v3032_v41 = vmul.f32 %v2756_v13, %v3791_v0  ;;  %v3052_v13 = vmul.f32 %v2806_v18, %v2732_v59  ;;  %v939_v59 = vmul.f32 %v2760_v62, %v2842_v32  ;;  %v940_v61 = vmul.f32 %v2760_v62, %v2858_v60 }
  0xe0   : > { %3783 = vst [vmem:[#allocation13_spill] sm:$0xff] %v3013_v20  ;;  %v3036_v20 = vmul.f32 %v2758_v53, %v3793_v46  ;;  %v934_v53 = vmul.f32 %v2760_v62, %v2775_v25  ;;  %v941_v50 = vmul.f32 %v2760_v62, %v863_v34  ;;  %v942_v30 = vmul.f32 %v2762_v43, %v2775_v25 }
  0xe1   : > { %3785 = vst [vmem:[#allocation14_spill] sm:$0xff] %v3017_v22  ;;  %v943_v18 = vmul.f32 %v2762_v43, %v2792_v42  ;;  %v944_v47 = vmul.f32 %v2762_v43, %v2810_v29  ;;  %v945_v19 = vmul.f32 %v2762_v43, %v2814_v15  ;;  %v946_v0 = vmul.f32 %v2762_v43, %v2826_v24 }
  0xe2   : > { %3787 = vst [vmem:[#allocation15_spill] sm:$0xff] %v3021_v7  ;;  %v947_v46 = vmul.f32 %v2762_v43, %v2842_v32  ;;  %v948_v62 = vmul.f32 %v2762_v43, %v2858_v60  ;;  %v949_v25 = vmul.f32 %v2762_v43, %v863_v34  ;;  %v972_v42 = vmul.f32 %v2766_v14, %v2779_v48 }
  0xe3   : > { %3788 = vst [vmem:[#allocation19_spill] sm:$0xff] %v3024_v26  ;;  %v973_v29 = vmul.f32 %v2766_v14, %v2796_v9  ;;  %v974_v15 = vmul.f32 %v2766_v14, %v2818_v2  ;;  %v975_v24 = vmul.f32 %v2766_v14, %v2830_v51  ;;  %v976_v32 = vmul.f32 %v2766_v14, %v2846_v6 }
  0xe4   : > { %3790 = vst [vmem:[#allocation23_spill] sm:$0xff] %v3028_v5  ;;  %v977_v60 = vmul.f32 %v2766_v14, %v2862_v39  ;;  %v978_v43 = vmul.f32 %v2766_v14, %v2874_v12  ;;  %v979_v34 = vmul.f32 %v2766_v14, %v2918_v28  ;;  %v985_v26 = vmul.f32 %v2768_v31, %v2862_v39 }
  0xe5   : > { %3792 = vst [vmem:[#allocation24_spill] sm:$0xff] %v3032_v41  ;;  %v986_v14 = vmul.f32 %v2768_v31, %v2874_v12  ;;  %v990_v41 = vadd.f32 %v974_v15, %v936_v1  ;;  %v991_v5 = vadd.f32 %v975_v24, %v937_v37  ;;  %v1007_v39 = vperm.slane %v3800_v33, 0  ;;  %v3801_v1 = vld [vmem:[#allocation20_spill] sm:$0xff]  ;;  %v3803_v33 = vld [vmem:[#allocation9_spill] sm:$0xff] }
  0xe6   : > { %3794 = vst [vmem:[#allocation31_spill] sm:$0xff] %v3036_v20  ;;  %v988_v20 = vadd.f32 %v972_v42, %v934_v53  ;;  %v993_v7 = vadd.f32 %v977_v60, %v939_v59  ;;  %v995_v22 = vadd.f32 %v979_v34, %v941_v50  ;;  %v1001_v23 = vadd.f32 %v985_v26, %v947_v46 }
  0xe7   : > { %3795 = vst [vmem:[#allocation38_spill] sm:$0xff] %v3040_v27  ;;  %v984_v27 = vmul.f32 %v2768_v31, %v2846_v6  ;;  %v1002_v45 = vadd.f32 %v986_v14, %v948_v62  ;;  %v1011_v53 = vmul.f32 %v2786_v63, %v2800_v44  ;;  %v1018_v59 = vmul.f32 %v1007_v39, %v2783_v16 }
  0xe8   : > { %3796 = vst [vmem:[#allocation40_spill] sm:$0xff] %v3044_v11  ;;  %v983_v11 = vmul.f32 %v2768_v31, %v2830_v51  ;;  %v994_v51 = vadd.f32 %v978_v43, %v940_v61  ;;  %v1019_v61 = vmul.f32 %v1007_v39, %v2800_v44  ;;  %v1020_v50 = vmul.f32 %v1007_v39, %v3801_v1  ;;  %v354_v44 = vld [vmem:[%s2737_s20 + $0x8] sm:$0x3]  ;;  %v3151_v43 = vld [vmem:[%s2737_s20 + $0xc] sm:$0x3] }
  0xe9   : > { %3797 = vst [vmem:[#allocation29_spill] sm:$0xff] %v3048_v58  ;;  %v982_v58 = vmul.f32 %v2768_v31, %v2818_v2  ;;  %v992_v2 = vadd.f32 %v976_v32, %v938_v17  ;;  %v1000_v12 = vadd.f32 %v984_v27, %v946_v0  ;;  %v3804_v27 = vld [vmem:[#allocation2_spill] sm:$0xff]  ;;  %v1017_v17 = vmul.f32 %v2786_v63, %v2921_v3 }
  0xea   : > { %3798 = vst [vmem:[#allocation6_spill] sm:$0xff] %v3052_v13  ;;  %v981_v13 = vmul.f32 %v2768_v31, %v2796_v9  ;;  %v989_v9 = vadd.f32 %v973_v29, %v935_v52  ;;  %v999_v8 = vadd.f32 %v983_v11, %v945_v19  ;;  %v353_v52 = vld [vmem:[%s2737_s20 + $0x6] sm:$0x3]  ;;  %v1014_v11 = vmul.f32 %v2786_v63, %v3803_v33  ;;  %v3148_v29 = vld [vmem:[%s2737_s20 + $0xa] sm:$0x3] }
  0xeb   : > { %3799 = vst [vmem:[#allocation30_spill] sm:$0xff] %v3055_v56  ;;  %v980_v56 = vmul.f32 %v2768_v31, %v2779_v48  ;;  %v987_v48 = vmul.f32 %v2768_v31, %v2918_v28  ;;  %v998_v49 = vadd.f32 %v982_v58, %v944_v47  ;;  %v1010_v28 = vmul.f32 %v2786_v63, %v2783_v16  ;;  %v3805_v58 = vld [vmem:[#allocation27_spill] sm:$0xff] }
  0xec   : > { %v997_v6 = vadd.f32 %v981_v13, %v943_v18  ;;  %v3802_v13 = vld [vmem:[#allocation37_spill] sm:$0xff]  ;;  %v1015_v26 = vmul.f32 %v2786_v63, %v3804_v27  ;;  %v1016_v37 = vmul.f32 %v2786_v63, %v3805_v58  ;;  %v1022_v18 = vmul.f32 %v1007_v39, %v3803_v33  ;;  %3806 = vst [vmem:[#allocation20_spill] sm:$0xff] %v3151_v43 }
  0xed   : > { %v996_v10 = vadd.f32 %v980_v56, %v942_v30  ;;  %v1003_v31 = vadd.f32 %v987_v48, %v949_v25  ;;  %v1012_v56 = vmul.f32 %v2786_v63, %v3801_v1  ;;  %v1013_v54 = vmul.f32 %v2786_v63, %v3802_v13 }
  0xee   : > { %v1021_v30 = vmul.f32 %v1007_v39, %v3802_v13  ;;  %v1023_v47 = vmul.f32 %v1007_v39, %v3804_v27  ;;  %v1024_v19 = vmul.f32 %v1007_v39, %v3805_v58  ;;  %v1025_v0 = vmul.f32 %v1007_v39, %v2921_v3 }
  0xef   : > { %v1026_v46 = vadd.f32 %v1010_v28, %v988_v20  ;;  %v1043_v63 = vrot.slane %v353_v52, 1  ;;  %v1027_v62 = vadd.f32 %v1011_v53, %v989_v9  ;;  %v1028_v25 = vadd.f32 %v1012_v56, %v990_v41  ;;  %v3807_v53 = vld [vmem:[#allocation7_spill] sm:$0xff] }
  0xf0   : > { %v1029_v16 = vadd.f32 %v1013_v54, %v991_v5  ;;  %v1030_v42 = vadd.f32 %v1014_v11, %v992_v2  ;;  %v1031_v15 = vadd.f32 %v1015_v26, %v993_v7  ;;  %v1032_v24 = vadd.f32 %v1016_v37, %v994_v51  ;;  %v3813_v56 = vld [vmem:[#allocation3_spill] sm:$0xff]  ;;  %v3814_v54 = vld [vmem:[#allocation17_spill] sm:$0xff] }
  0xf1   : > { %v1033_v32 = vadd.f32 %v1017_v17, %v995_v22  ;;  %v1044_v60 = vperm.slane %v353_v52, 0  ;;  %v1034_v34 = vadd.f32 %v1018_v59, %v996_v10  ;;  %v1035_v14 = vadd.f32 %v1019_v61, %v997_v6  ;;  %v3811_v6 = vld [vmem:[#allocation10_spill] sm:$0xff] }
  0xf2   : > { %v1036_v48 = vadd.f32 %v1020_v50, %v998_v49  ;;  %v1037_v1 = vadd.f32 %v1021_v30, %v999_v8  ;;  %v1038_v3 = vadd.f32 %v1022_v18, %v1000_v12  ;;  %v1039_v20 = vadd.f32 %v1023_v47, %v1001_v23  ;;  %v3809_v8 = vld [vmem:[#allocation44_spill] sm:$0xff]  ;;  %v3810_v23 = vld [vmem:[#allocation25_spill] sm:$0xff] }
  0xf3   : > { %v1040_v39 = vadd.f32 %v1024_v19, %v1002_v45  ;;  %v1045_v9 = vperm.slane %v1043_v63, 0  ;;  %v1041_v41 = vadd.f32 %v1025_v0, %v1003_v31  ;;  %v1081_v5 = vrot.slane %v354_v44, 1  ;;  %v3812_v31 = vld [vmem:[#allocation32_spill] sm:$0xff] }
  0xf4   : > { %v1082_v2 = vperm.slane %v354_v44, 0  ;;  %v1048_v7 = vmul.f32 %v1044_v60, %v3807_v53  ;;  %v3156_v22 = vperm.slane %v3148_v29, 0  ;;  %v3160_v10 = vperm.slane %v3151_v43, 0 }
  0xf5   : > { %v1049_v49 = vmul.f32 %v1044_v60, %v3809_v8  ;;  %v1050_v45 = vmul.f32 %v1044_v60, %v3810_v23  ;;  %v1051_v12 = vmul.f32 %v1044_v60, %v3811_v6  ;;  %v1052_v52 = vmul.f32 %v1044_v60, %v3812_v31 }
  0xf6   : > { %3808 = vst [vmem:[#allocation37_spill] sm:$0xff] %v3160_v10  ;;  %v1053_v13 = vmul.f32 %v1044_v60, %v3813_v56  ;;  %v1054_v33 = vmul.f32 %v1044_v60, %v3814_v54  ;;  %v1055_v11 = vmul.f32 %v1044_v60, %v2924_v4  ;;  %v1056_v27 = vmul.f32 %v1045_v9, %v3807_v53 }
  0xf7   : > { %v1057_v26 = vmul.f32 %v1045_v9, %v3809_v8  ;;  %v1058_v58 = vmul.f32 %v1045_v9, %v3810_v23  ;;  %v1059_v37 = vmul.f32 %v1045_v9, %v3811_v6  ;;  %v1060_v17 = vmul.f32 %v1045_v9, %v3812_v31 }
  0xf8   : > { %v1061_v59 = vmul.f32 %v1045_v9, %v3813_v56  ;;  %v1062_v61 = vmul.f32 %v1045_v9, %v3814_v54  ;;  %v1063_v50 = vmul.f32 %v1045_v9, %v2924_v4  ;;  %v1064_v30 = vadd.f32 %v1048_v7, %v1026_v46  ;;  %v3815_v54 = vld [vmem:[#allocation11_spill] sm:$0xff]  ;;  %v3816_v46 = vld [vmem:[#allocation21_spill] sm:$0xff] }
  0xf9   : > { %v1065_v18 = vadd.f32 %v1049_v49, %v1027_v62  ;;  %v1066_v47 = vadd.f32 %v1050_v45, %v1028_v25  ;;  %v1067_v19 = vadd.f32 %v1051_v12, %v1029_v16  ;;  %v1068_v0 = vadd.f32 %v1052_v52, %v1030_v42  ;;  %v3817_v25 = vld [vmem:[#allocation4_spill] sm:$0xff]  ;;  %v3818_v42 = vld [vmem:[#allocation18_spill] sm:$0xff] }
  0xfa   : > { %v1069_v63 = vadd.f32 %v1053_v13, %v1031_v15  ;;  %v1070_v44 = vadd.f32 %v1054_v33, %v1032_v24  ;;  %v1071_v60 = vadd.f32 %v1055_v11, %v1033_v32  ;;  %v1072_v53 = vadd.f32 %v1056_v27, %v1034_v34  ;;  %v3819_v24 = vld [vmem:[#allocation22_spill] sm:$0xff] }
  0xfb   : > { %v1073_v8 = vadd.f32 %v1057_v26, %v1035_v14  ;;  %v1074_v23 = vadd.f32 %v1058_v58, %v1036_v48  ;;  %v1075_v6 = vadd.f32 %v1059_v37, %v1037_v1  ;;  %v1083_v51 = vperm.slane %v1081_v5, 0 }
  0xfc   : > { %v1076_v31 = vadd.f32 %v1060_v17, %v1038_v3  ;;  %v1077_v28 = vadd.f32 %v1061_v59, %v1039_v20  ;;  %v1078_v56 = vadd.f32 %v1062_v61, %v1040_v39  ;;  %v1079_v10 = vadd.f32 %v1063_v50, %v1041_v41  ;;  %v3822_v50 = vld [vmem:[#allocation16_spill] sm:$0xff] }
  0xfd   : > { %v1086_v43 = vmul.f32 %v1082_v2, %v3815_v54  ;;  %v1087_v4 = vmul.f32 %v1082_v2, %v2898_v55  ;;  %v1088_v62 = vmul.f32 %v1082_v2, %v3816_v46  ;;  %v1089_v16 = vmul.f32 %v1082_v2, %v3817_v25 }
  0xfe   : > { %v1090_v15 = vmul.f32 %v1082_v2, %v3818_v42  ;;  %v1091_v32 = vmul.f32 %v1082_v2, %v3819_v24  ;;  %v1092_v34 = vmul.f32 %v1082_v2, %v2928_v36  ;;  %v1093_v14 = vmul.f32 %v1082_v2, %v2931_v57 }
  0xff   : > { %v1094_v48 = vmul.f32 %v1083_v51, %v3815_v54  ;;  %v1095_v1 = vmul.f32 %v1083_v51, %v2898_v55  ;;  %v1096_v3 = vmul.f32 %v1083_v51, %v3816_v46  ;;  %v1097_v20 = vmul.f32 %v1083_v51, %v3817_v25 }
 0x100   : > { %v1098_v39 = vmul.f32 %v1083_v51, %v3818_v42  ;;  %v1099_v9 = vmul.f32 %v1083_v51, %v3819_v24  ;;  %v1100_v41 = vmul.f32 %v1083_v51, %v2928_v36  ;;  %v1101_v5 = vmul.f32 %v1083_v51, %v2931_v57 }
 0x101   : > { %v1102_v7 = vadd.f32 %v1086_v43, %v1064_v30  ;;  %v1103_v49 = vadd.f32 %v1087_v4, %v1065_v18  ;;  %v1104_v45 = vadd.f32 %v1088_v62, %v1066_v47  ;;  %v1105_v2 = vadd.f32 %v1089_v16, %v1067_v19  ;;  %v3821_v43 = vld [vmem:[#allocation5_spill] sm:$0xff]  ;;  %v3823_v47 = vld [vmem:[#allocation8_spill] sm:$0xff] }
 0x102   : > { %v1106_v12 = vadd.f32 %v1090_v15, %v1068_v0  ;;  %v1107_v52 = vadd.f32 %v1091_v32, %v1069_v63  ;;  %v1108_v13 = vadd.f32 %v1092_v34, %v1070_v44  ;;  %v1109_v55 = vadd.f32 %v1093_v14, %v1071_v60  ;;  %v3824_v19 = vld [vmem:[#allocation28_spill] sm:$0xff] }
 0x103   : > { %v1110_v33 = vadd.f32 %v1094_v48, %v1072_v53  ;;  %v1111_v11 = vadd.f32 %v1095_v1, %v1073_v8  ;;  %v1112_v27 = vadd.f32 %v1096_v3, %v1074_v23  ;;  %v3820_v26 = vrot.slane %v3148_v29, 1  ;;  %v3827_v1 = vld [vmem:[#allocation26_spill] sm:$0xff]  ;;  %v3828_v3 = vld [vmem:[#allocation37_spill] sm:$0xff] }
 0x104   : > { %v1113_v37 = vadd.f32 %v1097_v20, %v1075_v6  ;;  %v1114_v17 = vadd.f32 %v1098_v39, %v1076_v31  ;;  %v1115_v59 = vadd.f32 %v1099_v9, %v1077_v28  ;;  %v1116_v36 = vadd.f32 %v1100_v41, %v1078_v56  ;;  %v3829_v39 = vld [vmem:[#allocation33_spill] sm:$0xff]  ;;  %v3830_v41 = vld [vmem:[#allocation34_spill] sm:$0xff] }
 0x105   : > { %v1121_v58 = vperm.slane %v3820_v26, 0  ;;  %v1117_v61 = vadd.f32 %v1101_v5, %v1079_v10  ;;  %v1124_v57 = vmul.f32 %v3156_v22, %v2935_v35  ;;  %v1125_v51 = vmul.f32 %v3156_v22, %v3821_v43 }
 0x106   : > { %v1126_v30 = vmul.f32 %v3156_v22, %v3822_v50  ;;  %v1127_v18 = vmul.f32 %v3156_v22, %v2947_v40  ;;  %v1128_v29 = vmul.f32 %v3156_v22, %v2951_v38  ;;  %v1129_v28 = vmul.f32 %v3156_v22, %v2955_v21 }
 0x107   : > { %v1130_v10 = vmul.f32 %v3156_v22, %v3823_v47  ;;  %v1131_v0 = vmul.f32 %v3156_v22, %v3824_v19  ;;  %v1132_v63 = vmul.f32 %v1121_v58, %v2935_v35  ;;  %v1133_v44 = vmul.f32 %v1121_v58, %v3821_v43 }
 0x108   : > { %v1134_v60 = vmul.f32 %v1121_v58, %v3822_v50  ;;  %v1135_v53 = vmul.f32 %v1121_v58, %v2947_v40  ;;  %v1136_v8 = vmul.f32 %v1121_v58, %v2951_v38  ;;  %v1137_v23 = vmul.f32 %v1121_v58, %v2955_v21  ;;  %v3825_v40 = vld [vmem:[#allocation20_spill] sm:$0xff] }
 0x109   : > { %v1138_v6 = vmul.f32 %v1121_v58, %v3823_v47  ;;  %v1139_v31 = vmul.f32 %v1121_v58, %v3824_v19  ;;  %v1140_v56 = vadd.f32 %v1124_v57, %v1102_v7  ;;  %v1141_v54 = vadd.f32 %v1125_v51, %v1103_v49  ;;  %v3831_v7 = vld [vmem:[#allocation35_spill] sm:$0xff] }
 0x10a   : > { %v1142_v4 = vadd.f32 %v1126_v30, %v1104_v45  ;;  %v1143_v22 = vadd.f32 %v1127_v18, %v1105_v2  ;;  %v1144_v46 = vadd.f32 %v1128_v29, %v1106_v12  ;;  %v1145_v35 = vadd.f32 %v1129_v28, %v1107_v52  ;;  %v3832_v45 = vld [vmem:[#allocation36_spill] sm:$0xff]  ;;  %v3833_v12 = vld [vmem:[#allocation39_spill] sm:$0xff] }
 0x10b   : > { %v1146_v62 = vadd.f32 %v1130_v10, %v1108_v13  ;;  %v1147_v25 = vadd.f32 %v1131_v0, %v1109_v55  ;;  %v1148_v16 = vadd.f32 %v1132_v63, %v1110_v33  ;;  %v1149_v42 = vadd.f32 %v1133_v44, %v1111_v11  ;;  %v357_v13 = vld [vmem:[%s2737_s20 + $0xe] sm:$0x3]  ;;  %v3834_v55 = vld [vmem:[#allocation41_spill] sm:$0xff]  ;;  %v3835_v11 = vld [vmem:[#allocation42_spill] sm:$0xff] }
 0x10c   : > { %v3826_v15 = vrot.slane %v3825_v40, 1  ;;  %v1150_v24 = vadd.f32 %v1134_v60, %v1112_v27  ;;  %v1151_v21 = vadd.f32 %v1135_v53, %v1113_v37  ;;  %v1152_v32 = vadd.f32 %v1136_v8, %v1114_v17  ;;  %v358_v0 = vld [vmem:[%s2737_s20 + $0x10] sm:$0x3]  ;;  %v3836_v60 = vld [vmem:[#allocation43_spill] sm:$0xff]  ;;  %v3837_v8 = vld [vmem:[#allocation45_spill] sm:$0xff] }
 0x10d   : > { %v1153_v34 = vadd.f32 %v1137_v23, %v1115_v59  ;;  %v1154_v14 = vadd.f32 %v1138_v6, %v1116_v36  ;;  %v1155_v48 = vadd.f32 %v1139_v31, %v1117_v61  ;;  %v1162_v20 = vmul.f32 %v3828_v3, %v3827_v1  ;;  %v3838_v40 = vld [vmem:[#allocation46_spill] sm:$0xff] }
 0x10e   : > { %v1159_v38 = vperm.slane %v3826_v15, 0  ;;  %v1163_v9 = vmul.f32 %v3828_v3, %v3829_v39  ;;  %v1164_v5 = vmul.f32 %v3828_v3, %v3830_v41  ;;  %v1165_v49 = vmul.f32 %v3828_v3, %v3831_v7 }
 0x10f   : > { %v1166_v2 = vmul.f32 %v3828_v3, %v3832_v45  ;;  %v1167_v52 = vmul.f32 %v3828_v3, %v3833_v12  ;;  %v1168_v33 = vmul.f32 %v3828_v3, %v3834_v55  ;;  %v1169_v27 = vmul.f32 %v3828_v3, %v3835_v11 }
 0x110   : > { %v1170_v26 = vmul.f32 %v1159_v38, %v3827_v1  ;;  %v1171_v58 = vmul.f32 %v1159_v38, %v3829_v39  ;;  %v1172_v37 = vmul.f32 %v1159_v38, %v3830_v41  ;;  %v1173_v17 = vmul.f32 %v1159_v38, %v3831_v7  ;;  %v3841_v1 = vld [vmem:[#allocation14_spill] sm:$0xff]  ;;  %v3843_v41 = vld [vmem:[#allocation23_spill] sm:$0xff] }
 0x111   : > { %v1174_v59 = vmul.f32 %v1159_v38, %v3832_v45  ;;  %v1196_v36 = vperm.slane %v357_v13, 0  ;;  %v1175_v61 = vmul.f32 %v1159_v38, %v3833_v12  ;;  %v1176_v57 = vmul.f32 %v1159_v38, %v3834_v55  ;;  %v3845_v7 = vld [vmem:[#allocation31_spill] sm:$0xff]  ;;  %v3847_v12 = vld [vmem:[#allocation38_spill] sm:$0xff] }
 0x112   : > { %v1177_v43 = vmul.f32 %v1159_v38, %v3835_v11  ;;  %v1178_v51 = vadd.f32 %v1162_v20, %v1140_v56  ;;  %v1179_v50 = vadd.f32 %v1163_v9, %v1141_v54  ;;  %v1180_v30 = vadd.f32 %v1164_v5, %v1142_v4  ;;  %v3842_v20 = vld [vmem:[#allocation15_spill] sm:$0xff]  ;;  %v3848_v11 = vld [vmem:[#allocation40_spill] sm:$0xff] }
 0x113   : > { %v1181_v18 = vadd.f32 %v1165_v49, %v1143_v22  ;;  %v1195_v29 = vrot.slane %v357_v13, 1  ;;  %v1182_v28 = vadd.f32 %v1166_v2, %v1144_v46  ;;  %v1183_v47 = vadd.f32 %v1167_v52, %v1145_v35  ;;  %v3839_v46 = vld [vmem:[#allocation12_spill] sm:$0xff] }
 0x114   : > { %v1184_v10 = vadd.f32 %v1168_v33, %v1146_v62  ;;  %v1185_v19 = vadd.f32 %v1169_v27, %v1147_v25  ;;  %v1186_v63 = vadd.f32 %v1170_v26, %v1148_v16  ;;  %v1187_v44 = vadd.f32 %v1171_v58, %v1149_v42  ;;  %v3840_v16 = vld [vmem:[#allocation13_spill] sm:$0xff] }
 0x115   : > { %v1200_v53 = vmul.f32 %v1196_v36, %v3836_v60  ;;  %v1201_v23 = vmul.f32 %v1196_v36, %v3837_v8  ;;  %v1188_v6 = vadd.f32 %v1172_v37, %v1150_v24  ;;  %v1189_v31 = vadd.f32 %v1173_v17, %v1151_v21  ;;  %v3849_v17 = vld [vmem:[#allocation29_spill] sm:$0xff] }
 0x116   : > { %v1202_v56 = vmul.f32 %v1196_v36, %v3838_v40  ;;  %v1234_v54 = vperm.slane %v358_v0, 0  ;;  %v1190_v4 = vadd.f32 %v1174_v59, %v1152_v32  ;;  %v1191_v22 = vadd.f32 %v1175_v61, %v1153_v34  ;;  %v3844_v34 = vld [vmem:[#allocation24_spill] sm:$0xff] }
 0x117   : > { %v1197_v15 = vperm.slane %v1195_v29, 0  ;;  %v1203_v35 = vmul.f32 %v1196_v36, %v3839_v46  ;;  %v1192_v62 = vadd.f32 %v1176_v57, %v1154_v14  ;;  %v3251_v25 = vadd.f32 %v1177_v43, %v1155_v48  ;;  %v3846_v14 = vld [vmem:[#allocation19_spill] sm:$0xff] }
 0x118   : > { %v1204_v42 = vmul.f32 %v1196_v36, %v3840_v16  ;;  %v1233_v38 = vrot.slane %v358_v0, 1  ;;  %v1205_v3 = vmul.f32 %v1196_v36, %v3841_v1  ;;  %v1206_v24 = vmul.f32 %v1196_v36, %v3842_v20 }
 0x119   : > { %v1216_v39 = vadd.f32 %v1200_v53, %v1178_v51  ;;  %v1217_v21 = vadd.f32 %v1201_v23, %v1179_v50  ;;  %v1218_v9 = vadd.f32 %v1202_v56, %v1180_v30  ;;  %v1238_v32 = vmul.f32 %v1234_v54, %v3843_v41 }
 0x11a   : > { %v1239_v5 = vmul.f32 %v1234_v54, %v3844_v34  ;;  %v1240_v49 = vmul.f32 %v1234_v54, %v3845_v7  ;;  %v1207_v48 = vmul.f32 %v1196_v36, %v3846_v14  ;;  %v1208_v45 = vmul.f32 %v1197_v15, %v3836_v60  ;;  %v3850_v36 = vld [vmem:[#allocation6_spill] sm:$0xff] }
 0x11b   : > { %v1219_v2 = vadd.f32 %v1203_v35, %v1181_v18  ;;  %v1241_v52 = vmul.f32 %v1234_v54, %v3847_v12  ;;  %v1209_v13 = vmul.f32 %v1197_v15, %v3837_v8  ;;  %v1220_v55 = vadd.f32 %v1204_v42, %v1182_v28  ;;  %v3851_v18 = vld [vmem:[#allocation30_spill] sm:$0xff] }
 0x11c   : > { %v1235_v33 = vperm.slane %v1233_v38, 0  ;;  %v1242_v27 = vmul.f32 %v1234_v54, %v3848_v11  ;;  %v1210_v26 = vmul.f32 %v1197_v15, %v3838_v40  ;;  %v1221_v58 = vadd.f32 %v1205_v3, %v1183_v47 }
 0x11d   : > { %v1222_v37 = vadd.f32 %v1206_v24, %v1184_v10  ;;  %v1243_v59 = vmul.f32 %v1234_v54, %v3849_v17  ;;  %v1244_v61 = vmul.f32 %v1234_v54, %v3850_v36  ;;  %v1254_v57 = vadd.f32 %v1238_v32, %v1216_v39 }
 0x11e   : > { %v1255_v43 = vadd.f32 %v1239_v5, %v1217_v21  ;;  %v1256_v51 = vadd.f32 %v1240_v49, %v1218_v9  ;;  %v1211_v50 = vmul.f32 %v1197_v15, %v3839_v46  ;;  %v1223_v30 = vadd.f32 %v1207_v48, %v1185_v19 }
 0x11f   : > { %v1245_v29 = vmul.f32 %v1234_v54, %v3851_v18  ;;  %v1257_v28 = vadd.f32 %v1241_v52, %v1219_v2  ;;  %v1212_v0 = vmul.f32 %v1197_v15, %v3840_v16  ;;  %v1224_v60 = vadd.f32 %v1208_v45, %v1186_v63  ;;  %1270 = vst.msk [vmem:[%s3268_s24] sm:$0xff] %vm359_vm0, %v1254_v57 }
 0x120   : > { %v1246_v47 = vmul.f32 %v1235_v33, %v3843_v41  ;;  %v1258_v10 = vadd.f32 %v1242_v27, %v1220_v55  ;;  %v1213_v53 = vmul.f32 %v1197_v15, %v3841_v1  ;;  %v1225_v8 = vadd.f32 %v1209_v13, %v1187_v44  ;;  %1271 = vst.msk [vmem:[%s3268_s24 + $0x8] sm:$0xff] %vm359_vm0, %v1255_v43 }
 0x121   : > { %v1247_v23 = vmul.f32 %v1235_v33, %v3844_v34  ;;  %v1259_v19 = vadd.f32 %v1243_v59, %v1221_v58  ;;  %v1214_v40 = vmul.f32 %v1197_v15, %v3842_v20  ;;  %v1226_v56 = vadd.f32 %v1210_v26, %v1188_v6  ;;  %1272 = vst.msk [vmem:[%s3268_s24 + $0x10] sm:$0xff] %vm359_vm0, %v1256_v51 }
 0x122   : > { %v1248_v63 = vmul.f32 %v1235_v33, %v3845_v7  ;;  %v1260_v54 = vadd.f32 %v1244_v61, %v1222_v37  ;;  %v1215_v46 = vmul.f32 %v1197_v15, %v3846_v14  ;;  %v1227_v35 = vadd.f32 %v1211_v50, %v1189_v31  ;;  %1273 = vst.msk [vmem:[%s3268_s24 + $0x18] sm:$0xff] %vm359_vm0, %v1257_v28 }
 0x123   : > { %v1249_v44 = vmul.f32 %v1235_v33, %v3847_v12  ;;  %v1261_v16 = vadd.f32 %v1245_v29, %v1223_v30  ;;  %v1228_v42 = vadd.f32 %v1212_v0, %v1190_v4  ;;  %v1250_v38 = vmul.f32 %v1235_v33, %v3848_v11  ;;  %1274 = vst.msk [vmem:[%s3268_s24 + $0x20] sm:$0xff] %vm359_vm0, %v1258_v10 }
 0x124   : > { %v1262_v6 = vadd.f32 %v1246_v47, %v1224_v60  ;;  %v1229_v1 = vadd.f32 %v1213_v53, %v1191_v22  ;;  %v1251_v3 = vmul.f32 %v1235_v33, %v3849_v17  ;;  %v1263_v15 = vadd.f32 %v1247_v23, %v1225_v8  ;;  %1275 = vst.msk [vmem:[%s3268_s24 + $0x28] sm:$0xff] %vm359_vm0, %v1259_v19 }
 0x125   : > { %v1230_v31 = vadd.f32 %v1214_v40, %v1192_v62  ;;  %v1252_v20 = vmul.f32 %v1235_v33, %v3850_v36  ;;  %v1264_v4 = vadd.f32 %v1248_v63, %v1226_v56  ;;  %1276 = vst.msk [vmem:[%s3268_s24 + $0x30] sm:$0xff] %vm359_vm0, %v1260_v54  ;;  %v1231_v24 = vadd.f32 %v1215_v46, %v3251_v25 }
 0x126   : > { %v1253_v22 = vmul.f32 %v1235_v33, %v3851_v18  ;;  %v1265_v39 = vadd.f32 %v1249_v44, %v1227_v35  ;;  %1277 = vst.msk [vmem:[%s3268_s24 + $0x38] sm:$0xff] %vm359_vm0, %v1261_v16  ;;  %v1266_v21 = vadd.f32 %v1250_v38, %v1228_v42  ;;  %v1267_v62 = vadd.f32 %v1251_v3, %v1229_v1 }
 0x127   : > { %1278 = vst.msk [vmem:[%s3268_s24 + $0x40] sm:$0xff] %vm359_vm0, %v1262_v6  ;;  %v1268_v9 = vadd.f32 %v1252_v20, %v1230_v31 }
 0x128   : > { %1279 = vst.msk [vmem:[%s3268_s24 + $0x48] sm:$0xff] %vm359_vm0, %v1263_v15  ;;  %v1269_v41 = vadd.f32 %v1253_v22, %v1231_v24 }
 0x129   : > { %1280 = vst.msk [vmem:[%s3268_s24 + $0x50] sm:$0xff] %vm359_vm0, %v1264_v4 }
 0x12a   : > { %1281 = vst.msk [vmem:[%s3268_s24 + $0x58] sm:$0xff] %vm359_vm0, %v1265_v39 }
 0x12b   : > { %1282 = vst.msk [vmem:[%s3268_s24 + $0x60] sm:$0xff] %vm359_vm0, %v1266_v21 }
 0x12c   : > { %1283 = vst.msk [vmem:[%s3268_s24 + $0x68] sm:$0xff] %vm359_vm0, %v1267_v62 }
 0x12d   : > { %1284 = vst.msk [vmem:[%s3268_s24 + $0x70] sm:$0xff] %vm359_vm0, %v1268_v9 }
 0x12e   : > { %1285 = vst.msk [vmem:[%s3268_s24 + $0x78] sm:$0xff] %vm359_vm0, %v1269_v41 }
 0x12f PF: > { %s12_s11 = sadd.s32 1, %s1607_s11   ;;  %s3852_s9 = smov %s1603_s10 }
 0x130   : > { %p9_p5 = scmp.ge.s32.totalorder %s12_s11, 4   ;;  %s3853_s10 = smov %s3855_s12 }
 0x132   :  { %11 = sbr.rel (!%p9_p5) target bundleno = 2 (0x2), region = 61 }

// kernel: deqflow_base_forward.4
= control target key start
LH: loop header
LB: loop body
LE: loop exit
PB: predicated region body
PF: predicated region fallthrough
CT: control target
= control target key end

     0   :  { %vm209_vm0 = vcmask 523264   ;;  %s817_s1 = inlined_call_operand.vmem [shape: bf16[192,256], index: 1, kind: input, shape index: {}]   ;;  %s818_s0 = inlined_call_operand.vmem [shape: bf16[64,192], index: 0, kind: input, shape index: {}]   ;;  %s819_s2 = inlined_call_operand.vmem [shape: f32[1,256], index: 2, kind: input, shape index: {}]   ;;  %s820_s3 = inlined_call_operand.vmem [shape: f32[64,256], index: 3, kind: output, shape index: {}]  }
   0x1   :  { %v448_v0 = vld [vmem:[%s817_s1 + $0x70] sm:$0xf]  ;;  %v517_v1 = vld [vmem:[%s817_s1 + $0x74] sm:$0xf0]  ;;  %v516_v2 = vld [vmem:[%s817_s1 + $0x74] sm:$0xf] }
   0x2   :  { %v449_v3 = vor.u32 %v517_v1, %v448_v0  ;;  %v450_v4 = vld [vmem:[%s817_s1 + $0x78] sm:$0xf0]  ;;  %v440_v5 = vld [vmem:[%s817_s1 + $0x60] sm:$0xf]  ;;  %v515_v6 = vld [vmem:[%s817_s1 + $0x64] sm:$0xf0] }
   0x3   :  { %v453_v7 = vor.u32 %v516_v2, %v450_v4  ;;  %v514_v8 = vld [vmem:[%s817_s1 + $0x64] sm:$0xf]  ;;  %v442_v9 = vld [vmem:[%s817_s1 + $0x68] sm:$0xf0]  ;;  %v441_v10 = vor.u32 %v515_v6, %v440_v5  ;;  %v432_v11 = vld [vmem:[%s817_s1 + $0x50] sm:$0xf] }
   0x4   :  { %222 = vmatpush.bf16.msra.mxu0 %v449_v3  ;;  %v445_v12 = vor.u32 %v514_v8, %v442_v9  ;;  %v513_v13 = vld [vmem:[%s817_s1 + $0x54] sm:$0xf0]  ;;  %v524_v14 = vld [vmem:[%s817_s1 + $0xb4] sm:$0xf]  ;;  %v482_v15 = vld [vmem:[%s817_s1 + $0xb8] sm:$0xf0] }
   0x5   :  { %280 = vmatpush.bf16.msra.mxu2 %v453_v7  ;;  %v512_v16 = vld [vmem:[%s817_s1 + $0x54] sm:$0xf]  ;;  %v434_v17 = vld [vmem:[%s817_s1 + $0x58] sm:$0xf0]  ;;  %v485_v18 = vor.u32 %v524_v14, %v482_v15  ;;  %v522_v19 = vld [vmem:[%s817_s1 + $0xa4] sm:$0xf]  ;;  %v433_v21 = vor.u32 %v513_v13, %v432_v11 }
   0x6   :  { %v474_v20 = vld [vmem:[%s817_s1 + $0xa8] sm:$0xf0]  ;;  %v480_v23 = vld [vmem:[%s817_s1 + $0xb0] sm:$0xf]  ;;  %v525_v24 = vld [vmem:[%s817_s1 + $0xb4] sm:$0xf0]  ;;  %v437_v25 = vor.u32 %v512_v16, %v434_v17 }
   0x7   :  { %313 = vmatpush.bf16.msra.mxu3 %v485_v18  ;;  %v477_v22 = vor.u32 %v522_v19, %v474_v20  ;;  %v424_v26 = vld [vmem:[%s817_s1 + $0x40] sm:$0xf]  ;;  %v511_v27 = vld [vmem:[%s817_s1 + $0x44] sm:$0xf0]  ;;  %v481_v28 = vor.u32 %v525_v24, %v480_v23  ;;  %v520_v29 = vld [vmem:[%s817_s1 + $0x94] sm:$0xf] }
   0x8   :  { %223 = vmatpush.bf16.msra.mxu0 %v441_v10  ;;  %v510_v30 = vld [vmem:[%s817_s1 + $0x44] sm:$0xf]  ;;  %v426_v31 = vld [vmem:[%s817_s1 + $0x48] sm:$0xf0]  ;;  %v466_v32 = vld [vmem:[%s817_s1 + $0x98] sm:$0xf0]  ;;  %v425_v35 = vor.u32 %v511_v27, %v424_v26 }
   0x9   :  { %281 = vmatpush.bf16.msra.mxu2 %v445_v12  ;;  %255 = vmatpush.bf16.msra.mxu1 %v481_v28  ;;  %v472_v33 = vld [vmem:[%s817_s1 + $0xa0] sm:$0xf]  ;;  %v523_v34 = vld [vmem:[%s817_s1 + $0xa4] sm:$0xf0]  ;;  %v416_v36 = vld [vmem:[%s817_s1 + $0x30] sm:$0xf]  ;;  %v469_v38 = vor.u32 %v520_v29, %v466_v32  ;;  %v429_v40 = vor.u32 %v510_v30, %v426_v31 }
   0xa   :  { %v509_v37 = vld [vmem:[%s817_s1 + $0x34] sm:$0xf0]  ;;  %v473_v39 = vor.u32 %v523_v34, %v472_v33  ;;  %v518_v41 = vld [vmem:[%s817_s1 + $0x84] sm:$0xf]  ;;  %v458_v42 = vld [vmem:[%s817_s1 + $0x88] sm:$0xf0] }
   0xb   :  { %314 = vmatpush.bf16.msra.mxu3 %v477_v22  ;;  %v464_v43 = vld [vmem:[%s817_s1 + $0x90] sm:$0xf]  ;;  %v508_v44 = vld [vmem:[%s817_s1 + $0x34] sm:$0xf]  ;;  %v418_v45 = vld [vmem:[%s817_s1 + $0x38] sm:$0xf0]  ;;  %v417_v49 = vor.u32 %v509_v37, %v416_v36  ;;  %v461_v50 = vor.u32 %v518_v41, %v458_v42 }
   0xc   :  { %224 = vmatpush.bf16.msra.mxu0 %v433_v21  ;;  %v521_v46 = vld [vmem:[%s817_s1 + $0x94] sm:$0xf0]  ;;  %v494_v48 = vld [vmem:[%s818_s0 + $0x4] sm:$0xf]  ;;  %v362_v51 = vld [vmem:[%s818_s0 + $0x8] sm:$0xf0]  ;;  %v421_v54 = vor.u32 %v508_v44, %v418_v45 }
   0xd   :  { %282 = vmatpush.bf16.msra.mxu2 %v437_v25  ;;  %256 = vmatpush.bf16.msra.mxu1 %v473_v39  ;;  %v465_v47 = vor.u32 %v521_v46, %v464_v43  ;;  %v456_v52 = vld [vmem:[%s817_s1 + $0x80] sm:$0xf]  ;;  %v519_v53 = vld [vmem:[%s817_s1 + $0x84] sm:$0xf0]  ;;  %v506_v57 = vld [vmem:[%s817_s1 + $0x24] sm:$0xf]  ;;  %v365_v59 = vor.u32 %v494_v48, %v362_v51 }
   0xe   :  { %v408_v55 = vld [vmem:[%s817_s1 + $0x20] sm:$0xf]  ;;  %v507_v56 = vld [vmem:[%s817_s1 + $0x24] sm:$0xf0]  ;;  %v410_v58 = vld [vmem:[%s817_s1 + $0x28] sm:$0xf0]  ;;  %v457_v60 = vor.u32 %v519_v53, %v456_v52 }
   0xf   :  { %315 = vmatpush.bf16.msra.mxu3 %v469_v38  ;;  %v409_v61 = vor.u32 %v507_v56, %v408_v55  ;;  %v413_v62 = vor.u32 %v506_v57, %v410_v58  ;;  %v400_v63 = vld [vmem:[%s817_s1 + $0x10] sm:$0xf]  ;;  %v505_v0 = vld [vmem:[%s817_s1 + $0x14] sm:$0xf0]  ;;  %v504_v1 = vld [vmem:[%s817_s1 + $0x14] sm:$0xf] }
  0x10   :  { %225 = vmatpush.bf16.msra.mxu0 %v425_v35  ;;  %v402_v2 = vld [vmem:[%s817_s1 + $0x18] sm:$0xf0]  ;;  %v401_v3 = vor.u32 %v505_v0, %v400_v63  ;;  %v392_v5 = vld [vmem:[%s817_s1] sm:$0xf]  ;;  %v503_v6 = vld [vmem:[%s817_s1 + $0x4] sm:$0xf0] }
  0x11   :  { %283 = vmatpush.bf16.msra.mxu2 %v429_v40  ;;  %257 = vmatpush.bf16.msra.mxu1 %v465_v47  ;;  %v405_v4 = vor.u32 %v504_v1, %v402_v2  ;;  %v502_v7 = vld [vmem:[%s817_s1 + $0x4] sm:$0xf]  ;;  %v394_v8 = vld [vmem:[%s817_s1 + $0x8] sm:$0xf0]  ;;  %v393_v9 = vor.u32 %v503_v6, %v392_v5  ;;  %v360_v10 = vld [vmem:[%s818_s0] sm:$0xf] }
  0x12   :  { %v495_v11 = vld [vmem:[%s818_s0 + $0x4] sm:$0xf0]  ;;  %v397_v12 = vor.u32 %v502_v7, %v394_v8  ;;  %v496_v14 = vld [vmem:[%s818_s0 + $0x14] sm:$0xf]  ;;  %v370_v15 = vld [vmem:[%s818_s0 + $0x18] sm:$0xf0] }
  0x13   :  { %316 = vmatpush.bf16.msra.mxu3 %v461_v50  ;;  %v361_v13 = vor.u32 %v495_v11, %v360_v10  ;;  %v373_v16 = vor.u32 %v496_v14, %v370_v15  ;;  %v368_v17 = vld [vmem:[%s818_s0 + $0x10] sm:$0xf]  ;;  %v497_v18 = vld [vmem:[%s818_s0 + $0x14] sm:$0xf0]  ;;  %v498_v20 = vld [vmem:[%s818_s0 + $0x24] sm:$0xf] }
  0x14   :  { %226 = vmatpush.bf16.msra.mxu0 %v417_v49  ;;  %v369_v19 = vor.u32 %v497_v18, %v368_v17  ;;  %v378_v21 = vld [vmem:[%s818_s0 + $0x28] sm:$0xf0]  ;;  %v376_v23 = vld [vmem:[%s818_s0 + $0x20] sm:$0xf]  ;;  %v499_v24 = vld [vmem:[%s818_s0 + $0x24] sm:$0xf0] }
  0x15   :  { %284 = vmatpush.bf16.msra.mxu2 %v421_v54  ;;  %258 = vmatpush.bf16.msra.mxu1 %v457_v60  ;;  %v381_v22 = vor.u32 %v498_v20, %v378_v21  ;;  %v377_v25 = vor.u32 %v499_v24, %v376_v23  ;;  %v500_v26 = vld [vmem:[%s818_s0 + $0x34] sm:$0xf]  ;;  %v386_v27 = vld [vmem:[%s818_s0 + $0x38] sm:$0xf0]  ;;  %v384_v29 = vld [vmem:[%s818_s0 + $0x30] sm:$0xf] }
  0x16   :  { %490 = vmatmul.msk.bf16.vlgmr.msra.gmra.mxu3 %vm209_vm0, %v365_v59  ;;  %v389_v28 = vor.u32 %v500_v26, %v386_v27  ;;  %v501_v30 = vld [vmem:[%s818_s0 + $0x34] sm:$0xf0]  ;;  %v47_v33 = vld [vmem:[%s819_s2] sm:$0x3] }
  0x17   :  { %v385_v31 = vor.u32 %v501_v30, %v384_v29  ;;  %v749_v35 = vperm.slane %v47_v33, 0  ;;  %v752_v40 = vperm.slane %v47_v33, 1 }
  0x18   :  { %227 = vmatpush.bf16.msra.mxu0 %v409_v61  ;;  %486 = vmatmul.msk.bf16.vlgmr.msra.gmra.mxu1 %vm209_vm0, %v365_v59 }
  0x19   :  { %285 = vmatpush.bf16.msra.mxu2 %v413_v62 }
  0x1c   :  { %228 = vmatpush.bf16.msra.mxu0 %v401_v3 }
  0x1d   :  { %286 = vmatpush.bf16.msra.mxu2 %v405_v4 }
  0x20   :  { %229 = vmatpush.bf16.msra.mxu0 %v393_v9 }
  0x21   :  { %287 = vmatpush.bf16.msra.mxu2 %v397_v12 }
  0x23   :  { %230 = vmatmul.bf16.vlgmr.msra.gmra.mxu0 %v361_v13 }
  0x24   :  { %288 = vmatmul.bf16.vlgmr.msra.gmra.mxu2 %v361_v13 }
  0x26   :  { %491 = vmatmul.msk.bf16.gmra.mxu3 %vm209_vm0, %v373_v16 }
  0x28   :  { %487 = vmatmul.msk.bf16.gmra.mxu1 %vm209_vm0, %v373_v16 }
  0x33   :  { %235 = vmatmul.bf16.gmra.mxu0 %v369_v19 }
  0x34   :  { %293 = vmatmul.bf16.gmra.mxu2 %v369_v19 }
  0x36   :  { %492 = vmatmul.msk.bf16.gmra.mxu3 %vm209_vm0, %v381_v22 }
  0x38   :  { %488 = vmatmul.msk.bf16.gmra.mxu1 %vm209_vm0, %v381_v22 }
  0x43   :  { %240 = vmatmul.bf16.gmra.mxu0 %v377_v25 }
  0x44   :  { %298 = vmatmul.bf16.gmra.mxu2 %v377_v25 }
  0x46   :  { %493 = vmatmul.msk.bf16.gmra.mxu3 %vm209_vm0, %v389_v28 }
  0x48   :  { %489 = vmatmul.msk.bf16.gmra.mxu1 %vm209_vm0, %v389_v28 }
  0x53   :  { %245 = vmatmul.bf16.gmra.mxu0 %v385_v31 }
  0x54   :  { %303 = vmatmul.bf16.gmra.mxu2 %v385_v31 }
  0x95   :  { %v260_v32 = vpop.f32.mrf.mxu1 }
  0x99   :  { %v318_v34 = vpop.f32.mrf.mxu3 }
  0x9d   :  { %v262_v36 = vpop.f32.mrf.mxu1 }
  0xa0   :  { %v231_v37 = vpop.f32.mrf.mxu0 }
  0xa1   :  { %v232_v38 = vadd.f32 %v231_v37, %v749_v35  ;;  %v320_v41 = vpop.f32.mrf.mxu3 }
  0xa3   :  { %v261_v39 = vadd.f32 %v260_v32, %v232_v38 }
  0xa5   :  { %338 = vst [vmem:[%s820_s3] sm:$0xff] %v261_v39  ;;  %v265_v45 = vpop.f32.mrf.mxu1 }
  0xa7   :  { %v289_v42 = vpop.f32.mrf.mxu2 }
  0xa8   :  { %v290_v43 = vadd.f32 %v289_v42, %v752_v40  ;;  %v233_v44 = vpop.f32.mrf.mxu0 }
  0xa9   :  { %v234_v46 = vadd.f32 %v233_v44, %v749_v35  ;;  %v323_v50 = vpop.f32.mrf.mxu3 }
  0xaa   :  { %v319_v47 = vadd.f32 %v318_v34, %v290_v43 }
  0xab   :  { %v263_v48 = vadd.f32 %v262_v36, %v234_v46 }
  0xac   :  { %339 = vst [vmem:[%s820_s3 + $0x8] sm:$0xff] %v319_v47 }
  0xad   :  { %340 = vst [vmem:[%s820_s3 + $0x10] sm:$0xff] %v263_v48  ;;  %v267_v55 = vpop.f32.mrf.mxu1 }
  0xaf   :  { %v291_v49 = vpop.f32.mrf.mxu2 }
  0xb0   :  { %v292_v51 = vadd.f32 %v291_v49, %v752_v40  ;;  %v236_v52 = vpop.f32.mrf.mxu0 }
  0xb1   :  { %v237_v53 = vadd.f32 %v236_v52, %v749_v35  ;;  %v325_v61 = vpop.f32.mrf.mxu3 }
  0xb2   :  { %v321_v54 = vadd.f32 %v320_v41, %v292_v51 }
  0xb3   :  { %v266_v56 = vadd.f32 %v265_v45, %v237_v53 }
  0xb4   :  { %341 = vst [vmem:[%s820_s3 + $0x18] sm:$0xff] %v321_v54 }
  0xb5   :  { %342 = vst [vmem:[%s820_s3 + $0x20] sm:$0xff] %v266_v56  ;;  %v270_v0 = vpop.f32.mrf.mxu1 }
  0xb7   :  { %v294_v57 = vpop.f32.mrf.mxu2 }
  0xb8   :  { %v295_v58 = vadd.f32 %v294_v57, %v752_v40  ;;  %v238_v59 = vpop.f32.mrf.mxu0 }
  0xb9   :  { %v239_v60 = vadd.f32 %v238_v59, %v749_v35  ;;  %v328_v7 = vpop.f32.mrf.mxu3 }
  0xba   :  { %v324_v62 = vadd.f32 %v323_v50, %v295_v58 }
  0xbb   :  { %v268_v63 = vadd.f32 %v267_v55, %v239_v60 }
  0xbc   :  { %343 = vst [vmem:[%s820_s3 + $0x28] sm:$0xff] %v324_v62 }
  0xbd   :  { %344 = vst [vmem:[%s820_s3 + $0x30] sm:$0xff] %v268_v63  ;;  %v272_v8 = vpop.f32.mrf.mxu1 }
  0xbf   :  { %v296_v1 = vpop.f32.mrf.mxu2 }
  0xc0   :  { %v297_v2 = vadd.f32 %v296_v1, %v752_v40  ;;  %v241_v3 = vpop.f32.mrf.mxu0 }
  0xc1   :  { %v242_v4 = vadd.f32 %v241_v3, %v749_v35  ;;  %v330_v15 = vpop.f32.mrf.mxu3 }
  0xc2   :  { %v326_v5 = vadd.f32 %v325_v61, %v297_v2 }
  0xc3   :  { %v271_v6 = vadd.f32 %v270_v0, %v242_v4 }
  0xc4   :  { %345 = vst [vmem:[%s820_s3 + $0x38] sm:$0xff] %v326_v5 }
  0xc5   :  { %346 = vst [vmem:[%s820_s3 + $0x40] sm:$0xff] %v271_v6  ;;  %v275_v19 = vpop.f32.mrf.mxu1 }
  0xc7   :  { %v299_v9 = vpop.f32.mrf.mxu2 }
  0xc8   :  { %v300_v10 = vadd.f32 %v299_v9, %v752_v40  ;;  %v243_v11 = vpop.f32.mrf.mxu0 }
  0xc9   :  { %v244_v12 = vadd.f32 %v243_v11, %v749_v35  ;;  %v333_v23 = vpop.f32.mrf.mxu3 }
  0xca   :  { %v329_v13 = vadd.f32 %v328_v7, %v300_v10 }
  0xcb   :  { %v273_v14 = vadd.f32 %v272_v8, %v244_v12 }
  0xcc   :  { %347 = vst [vmem:[%s820_s3 + $0x48] sm:$0xff] %v329_v13 }
  0xcd   :  { %348 = vst [vmem:[%s820_s3 + $0x50] sm:$0xff] %v273_v14  ;;  %v277_v29 = vpop.f32.mrf.mxu1 }
  0xcf   :  { %v301_v16 = vpop.f32.mrf.mxu2 }
  0xd0   :  { %v302_v17 = vadd.f32 %v301_v16, %v752_v40  ;;  %v246_v18 = vpop.f32.mrf.mxu0 }
  0xd1   :  { %v247_v20 = vadd.f32 %v246_v18, %v749_v35  ;;  %v335_v33 = vpop.f32.mrf.mxu3 }
  0xd2   :  { %v331_v21 = vadd.f32 %v330_v15, %v302_v17 }
  0xd3   :  { %v276_v22 = vadd.f32 %v275_v19, %v247_v20 }
  0xd4   :  { %349 = vst [vmem:[%s820_s3 + $0x58] sm:$0xff] %v331_v21 }
  0xd5   :  { %350 = vst [vmem:[%s820_s3 + $0x60] sm:$0xff] %v276_v22 }
  0xd7   :  { %v304_v24 = vpop.f32.mrf.mxu2 }
  0xd8   :  { %v305_v25 = vadd.f32 %v304_v24, %v752_v40  ;;  %v248_v26 = vpop.f32.mrf.mxu0 }
  0xd9   :  { %v249_v27 = vadd.f32 %v248_v26, %v749_v35 }
  0xda   :  { %v334_v28 = vadd.f32 %v333_v23, %v305_v25 }
  0xdb   :  { %v278_v30 = vadd.f32 %v277_v29, %v249_v27 }
  0xdc   :  { %351 = vst [vmem:[%s820_s3 + $0x68] sm:$0xff] %v334_v28 }
  0xdd   :  { %352 = vst [vmem:[%s820_s3 + $0x70] sm:$0xff] %v278_v30 }
  0xdf   :  { %v306_v31 = vpop.f32.mrf.mxu2 }
  0xe0   :  { %v307_v32 = vadd.f32 %v306_v31, %v752_v40 }
  0xe2   :  { %v336_v34 = vadd.f32 %v335_v33, %v307_v32 }
  0xe4   :  { %353 = vst [vmem:[%s820_s3 + $0x78] sm:$0xff] %v336_v34 }

// kernel: deqflow_base_forward.5
= control target key start
LH: loop header
LB: loop body
LE: loop exit
PB: predicated region body
PF: predicated region fallthrough
CT: control target
= control target key end

     0   :  { %s519_s9 = smov 0   ;;  %s521_s10 = smov 0   ;;  %s555_s0 = inlined_call_operand.vmem [shape: bf16[2,16,256], index: 0, kind: input, shape index: {}]   ;;  %s556_s1 = inlined_call_operand.vmem [shape: bf16[2,16,256], index: 1, kind: input, shape index: {}]   ;;  %s557_s2 = inlined_call_operand.vmem [shape: f32[2,16,16], index: 2, kind: output, shape index: {}]  }
   0x1   :  { %s523_s11 = smov 0  }
   0x2 LB: > { %s31_s12 = sadd.s32 1, %s498_s10  ;;  %p424_p0 = scmp.ge.s32.totalorder %s502_s11, 1  ;;  %s502_s11 = sphi %s523_s11, %s12_s11   ;;  %s498_s10 = sphi %s521_s10, %s559_s10   ;;  %s494_s9 = sphi %s519_s9, %s558_s9  }
   0x3   : > { %p33_p1 = scmp.ge.s32.totalorder %s31_s12, 2  ;;  %p161_p2 = scmp.lt.s32.totalorder %s502_s11, 3 }
   0x5   : > { %s561_s12 = smov (%p33_p1, %s31_s12), 0  ;;  %p162_p3 = pnand %p424_p0, %p161_p2 }
   0x6   : > { %p206_p4 = scmp.lt.s32.totalorder (!%p162_p3), %s494_s9, 1 }
   0x7   : > { %165 = sbr.rel (%p162_p3) target bundleno = 163 (0xa3), region = 28 }
   0xc   : > { %s563_s9 = smov (!%p206_p4, %s494_s9), 1  ;;  %vm293_vm0 = vcmask 130048  }
   0xd   : > { %s449_s13 = sshll.u32 %s563_s9, 4 }
   0xe   : > { %s225_s16 = scalar_lea.vmem %s556_s1, %s449_s13  ;;  %s214_s19 = scalar_lea.vmem %s555_s0, %s449_s13 }
   0xf   : > { %v441_v0 = vld [vmem:[%s225_s16] sm:$0xf]  ;;  %v455_v1 = vld [vmem:[%s225_s16 + $0x4] sm:$0xf0]  ;;  %v454_v2 = vld [vmem:[%s225_s16 + $0x4] sm:$0xf]  ;;  %s238_s22 = scalar_lea.vmem %s557_s2, %s449_s13 }
  0x10   : > { %v442_v3 = vor.u32 %v455_v1, %v441_v0  ;;  %v443_v4 = vld [vmem:[%s225_s16 + $0x8] sm:$0xf0]  ;;  %v433_v6 = vld [vmem:[%s214_s19] sm:$0xf]  ;;  %v453_v7 = vld [vmem:[%s214_s19 + $0x4] sm:$0xf0] }
  0x11   : > { %v446_v5 = vor.u32 %v454_v2, %v443_v4  ;;  %v452_v8 = vld [vmem:[%s214_s19 + $0x4] sm:$0xf]  ;;  %v435_v9 = vld [vmem:[%s214_s19 + $0x8] sm:$0xf0]  ;;  %v434_v10 = vor.u32 %v453_v7, %v433_v6 }
  0x12   : > { %272 = vmatpush.bf16.xpose.msra.mxu0 %v442_v3  ;;  %v438_v11 = vor.u32 %v452_v8, %v435_v9 }
  0x13   : > { %286 = vmatpush.bf16.xpose.msra.mxu1 %v446_v5 }
  0x19   : > { %273 = vmatmul.bf16.vlgmr.msra.gmra.mxu0 %v434_v10 }
  0x1a   : > { %287 = vmatmul.bf16.vlgmr.msra.gmra.mxu1 %v438_v11 }
  0x96   : > { %v274_v12 = vpop.f32.mrf.mxu0 }
  0x97   : > { %v288_v13 = vpop.f32.mrf.mxu1 }
  0x98   : > { %v289_v14 = vadd.f32 %v288_v13, %v274_v12 }
  0x9a   : > { %294 = vst.msk [vmem:[%s238_s22] sm:$0xff] %vm293_vm0, %v289_v14 }
  0x9e   : > { %v276_v15 = vpop.f32.mrf.mxu0 }
  0x9f   : > { %v290_v16 = vpop.f32.mrf.mxu1 }
  0xa0   : > { %v291_v17 = vadd.f32 %v290_v16, %v276_v15 }
  0xa2   : > { %295 = vst.msk [vmem:[%s238_s22 + $0x8] sm:$0xff] %vm293_vm0, %v291_v17 }
  0xa3 PF: > { %s12_s11 = sadd.s32 1, %s502_s11   ;;  %s558_s9 = smov %s498_s10 }
  0xa4   : > { %p9_p5 = scmp.ge.s32.totalorder %s12_s11, 4   ;;  %s559_s10 = smov %s561_s12 }
  0xa6   :  { %11 = sbr.rel (!%p9_p5) target bundleno = 2 (0x2), region = 61 }

// kernel: deqflow_base_forward.6
= control target key start
LH: loop header
LB: loop body
LE: loop exit
PB: predicated region body
PF: predicated region fallthrough
CT: control target
= control target key end

     0   :  { %s420_s0 = inlined_call_operand.vmem [shape: bf16[32,192], index: 0, kind: input, shape index: {}]   ;;  %s421_s1 = inlined_call_operand.vmem [shape: bf16[192,128], index: 1, kind: input, shape index: {}]   ;;  %s422_s2 = inlined_call_operand.vmem [shape: f32[1,128], index: 2, kind: input, shape index: {}]   ;;  %s423_s3 = inlined_call_operand.hbm [shape: f32[32,128], index: 3, kind: output, shape index: {}]  }
   0x1   :  { %v286_v0 = vld [vmem:[%s421_s1 + $0x38] sm:$0xff]  ;;  %v285_v2 = vld [vmem:[%s421_s1 + $0x30] sm:$0xff]  ;;  %v284_v4 = vld [vmem:[%s421_s1 + $0x28] sm:$0xff] }
   0x2   :  { %v290_v1 = vld [vmem:[%s421_s1 + $0x58] sm:$0xff]  ;;  %145 = vmatpush.bf16.msra.mxu0 %v286_v0  ;;  %291 = vmatpush.bf16.msra.mxu2 %v286_v0  ;;  %v289_v3 = vld [vmem:[%s421_s1 + $0x50] sm:$0xff]  ;;  %v288_v5 = vld [vmem:[%s421_s1 + $0x48] sm:$0xff] }
   0x3   :  { %168 = vmatpush.bf16.msra.mxu1 %v290_v1 }
   0x6   :  { %146 = vmatpush.bf16.msra.mxu0 %v285_v2  ;;  %292 = vmatpush.bf16.msra.mxu2 %v285_v2 }
   0x7   :  { %169 = vmatpush.bf16.msra.mxu1 %v289_v3 }
   0x8   :  { %8 = vsyncpa [#allocation3], 0  ;;  %v283_v6 = vld [vmem:[%s421_s1 + $0x20] sm:$0xff]  ;;  %v213_v9 = vld [vmem:[%s420_s0 + $0x8] sm:$0xf0]  ;;  %vm138_vm0 = vcmask 523264  }
   0x9   :  { %v287_v7 = vld [vmem:[%s421_s1 + $0x40] sm:$0xff]  ;;  %v282_v11 = vld [vmem:[%s421_s1 + $0x18] sm:$0xff]  ;;  %v281_v12 = vld [vmem:[%s421_s1 + $0x10] sm:$0xff]  ;;  %s197_s28 = sshll.u32 %s423_s3, 4  ;;  %s330_s29 = smov 128   ;;  %s198_s28 = int_to_ptr.hbm [resolvable:$true] %s197_s28 }
   0xa   :  { %147 = vmatpush.bf16.msra.mxu0 %v284_v4  ;;  %293 = vmatpush.bf16.msra.mxu2 %v284_v4  ;;  %v275_v8 = vld [vmem:[%s420_s0 + $0x4] sm:$0xf]  ;;  %v280_v13 = vld [vmem:[%s421_s1 + $0x8] sm:$0xff]  ;;  %v211_v15 = vld [vmem:[%s420_s0] sm:$0xf]  ;;  %s331_s30 = smov 8  }
   0xb   :  { %170 = vmatpush.bf16.msra.mxu1 %v288_v5  ;;  %v216_v10 = vor.u32 %v275_v8, %v213_v9  ;;  %v279_v14 = vld [vmem:[%s421_s1] sm:$0xff]  ;;  %v276_v16 = vld [vmem:[%s420_s0 + $0x4] sm:$0xf0]  ;;  %v219_v17 = vld [vmem:[%s420_s0 + $0x10] sm:$0xf] }
   0xc   :  { %v278_v18 = vld [vmem:[%s420_s0 + $0x14] sm:$0xf0]  ;;  %v277_v19 = vld [vmem:[%s420_s0 + $0x14] sm:$0xf]  ;;  %v221_v20 = vld [vmem:[%s420_s0 + $0x18] sm:$0xf0]  ;;  %v212_v21 = vor.u32 %v276_v16, %v211_v15 }
   0xd   :  { %v220_v22 = vor.u32 %v278_v18, %v219_v17  ;;  %v224_v23 = vor.u32 %v277_v19, %v221_v20  ;;  %v302_v26 = vld [vmem:[%s422_s2] ss:$0 sm:$0xff]  ;;  %s329_s0 = smov [#allocation2]  }
   0xe   :  { %148 = vmatpush.bf16.msra.mxu0 %v283_v6  ;;  %294 = vmatpush.bf16.msra.mxu2 %v283_v6  ;;  %s195_s2 = sshll.u32 %s329_s0, 4  ;;  %s196_s2 = int_to_ptr.vmem [resolvable:$true] %s195_s2 }
   0xf   :  { %171 = vmatpush.bf16.msra.mxu1 %v287_v7 }
  0x12   :  { %273 = vmatmul.msk.bf16.vlgmr.msra.gmra.mxu1 %vm138_vm0, %v216_v10  ;;  %149 = vmatpush.bf16.msra.mxu0 %v282_v11 }
  0x13   :  { %295 = vmatpush.bf16.msra.mxu2 %v282_v11 }
  0x16   :  { %150 = vmatpush.bf16.msra.mxu0 %v281_v12 }
  0x17   :  { %296 = vmatpush.bf16.msra.mxu2 %v281_v12 }
  0x1a   :  { %151 = vmatpush.bf16.msra.mxu0 %v280_v13 }
  0x1b   :  { %297 = vmatpush.bf16.msra.mxu2 %v280_v13 }
  0x1e   :  { %152 = vmatpush.bf16.msra.mxu0 %v279_v14 }
  0x1f   :  { %298 = vmatpush.bf16.msra.mxu2 %v279_v14 }
  0x21   :  { %153 = vmatmul.bf16.vlgmr.msra.gmra.mxu0 %v212_v21 }
  0x22   :  { %158 = vmatmul.bf16.vlgmr.msra.gmra.mxu2 %v220_v22  ;;  %274 = vmatmul.msk.bf16.gmra.mxu1 %vm138_vm0, %v224_v23 }
  0x8f   :  { %v173_v24 = vpop.f32.mrf.mxu1 }
  0x97   :  { %v175_v25 = vpop.f32.mrf.mxu1 }
  0x9e   :  { %v154_v27 = vpop.f32.mrf.mxu0 }
  0x9f   :  { %v155_v28 = vadd.f32 %v302_v26, %v154_v27  ;;  %v178_v31 = vpop.f32.mrf.mxu1 }
  0xa1   :  { %v174_v29 = vadd.f32 %v173_v24, %v155_v28 }
  0xa3   :  { %v183_v30 = vmax.f32 %v174_v29, 0.0 }
  0xa5   :  { %187 = vst [vmem:[#allocation2] sm:$0xff] %v183_v30  ;;  %v159_v32 = vpop.f32.mrf.mxu2 }
  0xa6   :  { %v160_v33 = vadd.f32 %v302_v26, %v159_v32  ;;  %v156_v34 = vpop.f32.mrf.mxu0 }
  0xa7   :  { %v157_v35 = vadd.f32 %v302_v26, %v156_v34  ;;  %v180_v42 = vpop.f32.mrf.mxu1 }
  0xa8   :  { %v179_v36 = vadd.f32 %v178_v31, %v160_v33 }
  0xa9   :  { %v176_v37 = vadd.f32 %v175_v25, %v157_v35 }
  0xaa   :  { %v185_v38 = vmax.f32 %v179_v36, 0.0 }
  0xab   :  { %v184_v39 = vmax.f32 %v176_v37, 0.0 }
  0xac   :  { %189 = vst [vmem:[#allocation2 + $0x10] sm:$0xff] %v185_v38 }
  0xad   :  { %188 = vst [vmem:[#allocation2 + $0x8] sm:$0xff] %v184_v39  ;;  %v161_v40 = vpop.f32.mrf.mxu2 }
  0xae   :  { %v162_v41 = vadd.f32 %v302_v26, %v161_v40 }
  0xb0   :  { %v181_v43 = vadd.f32 %v180_v42, %v162_v41 }
  0xb2   :  { %v186_v44 = vmax.f32 %v181_v43, 0.0 }
  0xb4   :  { %190 = vst [vmem:[#allocation2 + $0x18] sm:$0xff] %v186_v44 }
  0xb5   :  { %203 = dma.vmem_to_hbm [thread:$0]  %s196_s2, 512, %s198_s28, [#allocation3], %s330_s29, %s330_s29, %s331_s30  }
  0xb6   :  { %327 = dma.done.wait [#allocation3], 512  }
  0xb7   :  { %328 = vsyncadd [#allocation3], 4294966784 }
  0xb8   :  { %208 = vsyncpa [#allocation3], 1 }

</bundles_post_ra>
